<compile_context>
chip_gen: v6e
topology: v6e:2x2x1
jax: 0.10.0
libtpu: 0.0.40
codegen_flags: <defaults>
</compile_context>

<pallas_src>
import functools

import jax
import jax.numpy as jnp
from jax import lax
from jax.experimental import pallas as pl
from jax.experimental.pallas import tpu as pltpu


# ----------------------------------------------------------------------------
# Fused kernel: one batch element per grid step.
# Activation layout inside the kernel: (channels, flattened padded spatial),
# i.e. channels on sublanes and Hp*Wp on lanes.  Padded scratches carry an
# extra MARGIN on both sides so every 3x3 tap is a contiguous lane slice.
# ----------------------------------------------------------------------------
def _fused_kernel(pred_ref, guide_ref,
                  w3f_ref, b3f_ref, w1f_ref, b1f_ref,
                  w3g_ref, b3g_ref, w1g_ref, b1g_ref,
                  se1_ref, se2_ref,
                  wc3_ref, bc3_ref, wc1_ref, bc1_ref,
                  wr_ref, br_ref,
                  o_ref,
                  ppad_ref, gpad_ref, xypad_ref,
                  *, H, W):
    Hp, Wp = H + 2, W + 2
    NF = Hp * Wp                      # flattened padded image length
    MARGIN = Wp + 1                   # extra lanes so tap shifts stay in-bounds
    HW = H * W
    Chalf = w1f_ref.shape[0]          # expand//2
    Cc = se1_ref.shape[0]             # comb channels = 2 * Chalf

    # ---- build zero-halo flattened-padded pred/guide copies in VMEM ----
    ppad_ref[...] = jnp.zeros_like(ppad_ref)
    gpad_ref[...] = jnp.zeros_like(gpad_ref)
    xypad_ref[...] = jnp.zeros_like(xypad_ref)
    for i in range(H):
        row0 = (i + 1) * Wp + 1               # flat index of first interior col of row i
        dst = MARGIN + row0
        ppad_ref[:, dst:dst + W] = pred_ref[0, :, i * W:(i + 1) * W]
        gpad_ref[:, dst:dst + W] = guide_ref[0, :, i * W:(i + 1) * W]

    def conv3x3(src_ref, w_ref):
        # src_ref: (Cin_, LPAD) zero-halo padded scratch; w_ref: (3, 3, Cout_, Cin_)
        o_ch = w_ref.shape[2]
        acc = jnp.zeros((o_ch, NF), jnp.float32)
        for dy in range(3):
            for dx in range(3):
                s = MARGIN + (dy - 1) * Wp + (dx - 1)
                acc = acc + jnp.dot(w_ref[dy, dx], src_ref[:, s:s + NF],
                                    preferred_element_type=jnp.float32)
        return acc                                    # (Cout_, NF); halo cols are junk

    # ---- feature / guide branches: conv3x3+BN+relu, conv1x1+BN+relu (BN folded) ----
    hf = jnp.maximum(conv3x3(ppad_ref, w3f_ref) + b3f_ref[...], 0.0)
    xb = jnp.maximum(jnp.dot(w1f_ref[...], hf, preferred_element_type=jnp.float32)
                     + b1f_ref[...], 0.0)             # (Chalf, NF)
    hg = jnp.maximum(conv3x3(gpad_ref, w3g_ref) + b3g_ref[...], 0.0)
    yb = jnp.maximum(jnp.dot(w1g_ref[...], hg, preferred_element_type=jnp.float32)
                     + b1g_ref[...], 0.0)             # (Chalf, NF)

    # ---- concat-for-free: scatter interior rows of x,y into the padded xy scratch.
    #      Halo stays zero (scratch pre-zeroed) -> exact zero padding for comb conv
    #      and exact interior-only SE mean.
    for i in range(H):
        row0 = (i + 1) * Wp + 1
        dst = MARGIN + row0
        xypad_ref[0:Chalf, dst:dst + W] = xb[:, row0:row0 + W]
        xypad_ref[Chalf:Cc, dst:dst + W] = yb[:, row0:row0 + W]

    # ---- SE gate (reduction=1): global mean over valid pixels, 2-layer MLP, sigmoid ----
    xy_img = xypad_ref[:, MARGIN:MARGIN + NF]                       # (Cc, NF), zero halo
    mean = jnp.sum(xy_img, axis=1, keepdims=True) * (1.0 / float(HW))   # (Cc, 1)
    mean_b = jnp.broadcast_to(mean, (Cc, Cc))                       # avoid N=1 matmul
    g1 = jnp.maximum(jnp.dot(se1_ref[...], mean_b,
                             preferred_element_type=jnp.float32), 0.0)
    gate = jax.nn.sigmoid(jnp.dot(se2_ref[...], g1,
                                  preferred_element_type=jnp.float32))[:, 0:1]  # (Cc, 1)
    xypad_ref[...] = xypad_ref[...] * gate            # channel-wise scale; zeros stay zero

    # ---- comb conv (3x3 + 1x1) -> residual, add pred, reduce 1x1 ----
    hc = jnp.maximum(conv3x3(xypad_ref, wc3_ref) + bc3_ref[...], 0.0)
    residual = jnp.maximum(jnp.dot(wc1_ref[...], hc, preferred_element_type=jnp.float32)
                           + bc1_ref[...], 0.0)                       # (Cin, NF)
    z = residual + ppad_ref[:, MARGIN:MARGIN + NF]                    # + pred (zero halo)
    out = jnp.dot(wr_ref[...], z, preferred_element_type=jnp.float32) + br_ref[...]

    # ---- lane-dense store: crop interior rows into (Cout, H*W) ----
    for i in range(H):
        row0 = (i + 1) * Wp + 1
        o_ref[0, :, i * W:(i + 1) * W] = out[:, row0:row0 + W].astype(o_ref.dtype)


# ----------------------------------------------------------------------------
# Wrapper: NCHW in, NCHW out.  Inputs are reshaped (not transposed) to (B, C, H*W).
# ----------------------------------------------------------------------------
@jax.jit
def aux_sparse_upsampling_block(params, guide_nchw, pred_nchw):
    B, Cin, H, W = pred_nchw.shape
    Cg = guide_nchw.shape[1]
    HW = H * W
    Hp, Wp = H + 2, W + 2
    NF = Hp * Wp
    MARGIN = Wp + 1
    LPAD = ((NF + 2 * MARGIN + 127) // 128) * 128

    w3f, b3f, w1f, b1f = params["feature"]
    w3g, b3g, w1g, b1g = params["guide"]
    wc3, bc3, wc1, bc1 = params["comb"]
    wr, br = params["reduce"]
    se1, se2 = params["se1"], params["se2"]
    Cc = se1.shape[0]
    Cout = wr.shape[0]

    pred_flat = pred_nchw.reshape(B, Cin, HW)
    guide_flat = guide_nchw.reshape(B, Cg, HW)

    const2 = lambda b: (0, 0)
    const4 = lambda b: (0, 0, 0, 0)

    out_flat = pl.pallas_call(
        functools.partial(_fused_kernel, H=H, W=W),
        out_shape=jax.ShapeDtypeStruct((B, Cout, HW), jnp.float32),
        grid=(B,),
        in_specs=[
            pl.BlockSpec((1, Cin, HW), lambda b: (b, 0, 0)),
            pl.BlockSpec((1, Cg, HW), lambda b: (b, 0, 0)),
            pl.BlockSpec(w3f.shape, const4), pl.BlockSpec(b3f.shape, const2),
            pl.BlockSpec(w1f.shape, const2), pl.BlockSpec(b1f.shape, const2),
            pl.BlockSpec(w3g.shape, const4), pl.BlockSpec(b3g.shape, const2),
            pl.BlockSpec(w1g.shape, const2), pl.BlockSpec(b1g.shape, const2),
            pl.BlockSpec(se1.shape, const2), pl.BlockSpec(se2.shape, const2),
            pl.BlockSpec(wc3.shape, const4), pl.BlockSpec(bc3.shape, const2),
            pl.BlockSpec(wc1.shape, const2), pl.BlockSpec(bc1.shape, const2),
            pl.BlockSpec(wr.shape, const2), pl.BlockSpec(br.shape, const2),
        ],
        out_specs=pl.BlockSpec((1, Cout, HW), lambda b: (b, 0, 0)),
        scratch_shapes=[
            pltpu.VMEM((Cin, LPAD), jnp.float32),
            pltpu.VMEM((Cg, LPAD), jnp.float32),
            pltpu.VMEM((Cc, LPAD), jnp.float32),
        ],
        compiler_params=pltpu.CompilerParams(dimension_semantics=("parallel",)),
    )(pred_flat, guide_flat,
      w3f, b3f, w1f, b1f,
      w3g, b3g, w1g, b1g,
      se1, se2,
      wc3, bc3, wc1, bc1,
      wr, br)

    return out_flat.reshape(B, Cout, H, W)


# ----------------------------------------------------------------------------
# Parameter construction (deterministic, synthetic) + inference-mode BN folding.
# ----------------------------------------------------------------------------
def _fold_bn(w_oihw, b, gamma, beta, mean, var, eps=1e-5):
    s = gamma / jnp.sqrt(var + eps)
    w_eff = w_oihw * s[:, None, None, None]
    b_eff = (b - mean) * s + beta
    return w_eff, b_eff


def make_params(in_features=4, expand_features=8, out_features=4, guide_features=3,
                key=jax.random.PRNGKey(42)):
    comb = expand_features // 2 * 2
    keys = iter(jax.random.split(key, 64))

    def conv_w(co, ci, k):
        return 0.1 * jax.random.normal(next(keys), (co, ci, k, k), jnp.float32)

    def vec(c, lo=0.0, hi=0.2):
        return jax.random.uniform(next(keys), (c,), jnp.float32, lo, hi)

    def bn(c):
        gamma = jax.random.uniform(next(keys), (c,), jnp.float32, 0.8, 1.2)
        beta = 0.1 * jax.random.normal(next(keys), (c,), jnp.float32)
        mean = 0.1 * jax.random.normal(next(keys), (c,), jnp.float32)
        var = jax.random.uniform(next(keys), (c,), jnp.float32, 0.5, 1.5)
        return gamma, beta, mean, var

    def block(cin, cexp, cout):
        w3, b3 = conv_w(cexp, cin, 3), vec(cexp)
        w3, b3 = _fold_bn(w3, b3, *bn(cexp))
        w1, b1 = conv_w(cout, cexp, 1), vec(cout)
        w1, b1 = _fold_bn(w1, b1, *bn(cout))
        # kernel layouts: 3x3 -> (kh, kw, O, I); 1x1 -> (O, I); biases as (C, 1) columns
        return (jnp.transpose(w3, (2, 3, 0, 1)), b3.reshape(-1, 1),
                w1[:, :, 0, 0], b1.reshape(-1, 1))

    params = {}
    params["feature"] = block(in_features, expand_features, expand_features // 2)
    params["guide"] = block(guide_features, expand_features, expand_features // 2)
    params["comb"] = block(comb, expand_features, in_features)
    # SE (reduction=1): Linear(comb->comb, bias=False) x2, stored as raw (out, in)
    params["se1"] = 0.2 * jax.random.normal(next(keys), (comb, comb), jnp.float32)
    params["se2"] = 0.2 * jax.random.normal(next(keys), (comb, comb), jnp.float32)
    wr = conv_w(out_features, in_features, 1)
    params["reduce"] = (wr[:, :, 0, 0], vec(out_features).reshape(-1, 1))
    return params


# ----------------------------------------------------------------------------
# Pure-JAX reference (same folded parameters) for correctness checking.
# ----------------------------------------------------------------------------
def _conv3x3_nchw(x, w_kkoi, b_col):
    w = jnp.transpose(w_kkoi, (2, 3, 0, 1))  # -> OIHW
    y = lax.conv_general_dilated(x, w, (1, 1), [(1, 1), (1, 1)],
                                 dimension_numbers=("NCHW", "OIHW", "NCHW"))
    return y + b_col.reshape(1, -1, 1, 1)


def _conv1x1_nchw(x, w_oi, b_col):
    y = lax.conv_general_dilated(x, w_oi[:, :, None, None], (1, 1), [(0, 0), (0, 0)],
                                 dimension_numbers=("NCHW", "OIHW", "NCHW"))
    return y + b_col.reshape(1, -1, 1, 1)


def reference_forward(params, guide_nchw, pred_nchw):
    def branch(inp, p):
        w3, b3, w1, b1 = p
        h = jax.nn.relu(_conv3x3_nchw(inp, w3, b3))
        return jax.nn.relu(_conv1x1_nchw(h, w1, b1))

    x = branch(pred_nchw, params["feature"])
    y = branch(guide_nchw, params["guide"])
    xy = jnp.concatenate([x, y], axis=1)

    m = jnp.mean(xy, axis=(2, 3))                                       # (B, Cc)
    gate = jax.nn.sigmoid(jax.nn.relu(m @ params["se1"].T) @ params["se2"].T)
    xy = xy * gate[:, :, None, None]

    wc3, bc3, wc1, bc1 = params["comb"]
    h = jax.nn.relu(_conv3x3_nchw(xy, wc3, bc3))
    residual = jax.nn.relu(_conv1x1_nchw(h, wc1, bc1))

    wr, br = params["reduce"]
    return _conv1x1_nchw(residual + pred_nchw, wr, br)


# ----------------------------------------------------------------------------
if __name__ == "__main__":
    B, Cin, H, W = 2, 4, 16, 16
    expand_features, out_features, guide_features = 8, 4, 3

    key = jax.random.PRNGKey(0)
    kg, kp = jax.random.split(key)
    guide = jax.random.normal(kg, (B, guide_features, H, W), jnp.float32)
    pred = jax.random.normal(kp, (B, Cin, H, W), jnp.float32)

    params = make_params(Cin, expand_features, out_features, guide_features)

    out = jax.block_until_ready(aux_sparse_upsampling_block(params, guide, pred))
    ref = jax.block_until_ready(reference_forward(params, guide, pred))

    assert out.shape == (B, out_features, H, W), out.shape
    assert jnp.allclose(out, ref, rtol=1e-3, atol=1e-3), \
        f"max abs diff {jnp.max(jnp.abs(out - ref))}"

    print("KERNEL_OK")
</pallas_src>

<mosaic_0001>
module attributes {stable_mosaic.version = 11 : i64} {
  func.func @_fused_kernel(%arg0: i32, %arg1: memref<1x4x256xf32, #tpu.memory_space<vmem>>, %arg2: memref<1x3x256xf32, #tpu.memory_space<vmem>>, %arg3: memref<3x3x8x4xf32, #tpu.memory_space<vmem>>, %arg4: memref<8x1xf32, #tpu.memory_space<vmem>>, %arg5: memref<4x8xf32, #tpu.memory_space<vmem>>, %arg6: memref<4x1xf32, #tpu.memory_space<vmem>>, %arg7: memref<3x3x8x3xf32, #tpu.memory_space<vmem>>, %arg8: memref<8x1xf32, #tpu.memory_space<vmem>>, %arg9: memref<4x8xf32, #tpu.memory_space<vmem>>, %arg10: memref<4x1xf32, #tpu.memory_space<vmem>>, %arg11: memref<8x8xf32, #tpu.memory_space<vmem>>, %arg12: memref<8x8xf32, #tpu.memory_space<vmem>>, %arg13: memref<3x3x8x8xf32, #tpu.memory_space<vmem>>, %arg14: memref<8x1xf32, #tpu.memory_space<vmem>>, %arg15: memref<4x8xf32, #tpu.memory_space<vmem>>, %arg16: memref<4x1xf32, #tpu.memory_space<vmem>>, %arg17: memref<4x4xf32, #tpu.memory_space<vmem>>, %arg18: memref<4x1xf32, #tpu.memory_space<vmem>>, %arg19: memref<1x4x256xf32, #tpu.memory_space<vmem>>, %arg20: memref<4x384xf32, #tpu.memory_space<vmem>>, %arg21: memref<3x384xf32, #tpu.memory_space<vmem>>, %arg22: memref<8x384xf32, #tpu.memory_space<vmem>>) attributes {dimension_semantics = [#tpu.dimension_semantics<parallel>], iteration_bounds = array<i64: 2>, scalar_prefetch = 0 : i64, scratch_operands = 3 : i64, tpu.core_type = #tpu.core_type<tc>, window_params = [{transform_indices = @transform_0, window_bounds = array<i64: 1, 4, 256>}, {transform_indices = @transform_1, window_bounds = array<i64: 1, 3, 256>}, {pipeline_mode = #tpu.pipeline_mode<synchronous>, transform_indices = @transform_2, window_bounds = array<i64: 3, 3, 8, 4>}, {pipeline_mode = #tpu.pipeline_mode<synchronous>, transform_indices = @transform_3, window_bounds = array<i64: 8, 1>}, {pipeline_mode = #tpu.pipeline_mode<synchronous>, transform_indices = @transform_4, window_bounds = array<i64: 4, 8>}, {pipeline_mode = #tpu.pipeline_mode<synchronous>, transform_indices = @transform_5, window_bounds = array<i64: 4, 1>}, {pipeline_mode = #tpu.pipeline_mode<synchronous>, transform_indices = @transform_6, window_bounds = array<i64: 3, 3, 8, 3>}, {pipeline_mode = #tpu.pipeline_mode<synchronous>, transform_indices = @transform_7, window_bounds = array<i64: 8, 1>}, {pipeline_mode = #tpu.pipeline_mode<synchronous>, transform_indices = @transform_8, window_bounds = array<i64: 4, 8>}, {pipeline_mode = #tpu.pipeline_mode<synchronous>, transform_indices = @transform_9, window_bounds = array<i64: 4, 1>}, {pipeline_mode = #tpu.pipeline_mode<synchronous>, transform_indices = @transform_10, window_bounds = array<i64: 8, 8>}, {pipeline_mode = #tpu.pipeline_mode<synchronous>, transform_indices = @transform_11, window_bounds = array<i64: 8, 8>}, {pipeline_mode = #tpu.pipeline_mode<synchronous>, transform_indices = @transform_12, window_bounds = array<i64: 3, 3, 8, 8>}, {pipeline_mode = #tpu.pipeline_mode<synchronous>, transform_indices = @transform_13, window_bounds = array<i64: 8, 1>}, {pipeline_mode = #tpu.pipeline_mode<synchronous>, transform_indices = @transform_14, window_bounds = array<i64: 4, 8>}, {pipeline_mode = #tpu.pipeline_mode<synchronous>, transform_indices = @transform_15, window_bounds = array<i64: 4, 1>}, {pipeline_mode = #tpu.pipeline_mode<synchronous>, transform_indices = @transform_16, window_bounds = array<i64: 4, 4>}, {pipeline_mode = #tpu.pipeline_mode<synchronous>, transform_indices = @transform_17, window_bounds = array<i64: 4, 1>}, {transform_indices = @transform_18, window_bounds = array<i64: 1, 4, 256>}]} {
    %cst = arith.constant 0.000000e+00 : f32
    %0 = vector.broadcast %cst : f32 to vector<4x384xf32>
    %c0 = arith.constant 0 : index
    %c0_0 = arith.constant 0 : index
    %1 = vector.load %arg20[%c0, %c0_0] : memref<4x384xf32, #tpu.memory_space<vmem>>, vector<4x384xf32>
    tpu.vector_store %arg20[%c0, %c0_0], %0 {strides = array<i32>} : memref<4x384xf32, #tpu.memory_space<vmem>>, vector<4x384xf32>,
    %cst_1 = arith.constant 0.000000e+00 : f32
    %2 = vector.broadcast %cst_1 : f32 to vector<3x384xf32>
    %c0_2 = arith.constant 0 : index
    %c0_3 = arith.constant 0 : index
    %3 = vector.load %arg21[%c0_2, %c0_3] : memref<3x384xf32, #tpu.memory_space<vmem>>, vector<3x384xf32>
    tpu.vector_store %arg21[%c0_2, %c0_3], %2 {strides = array<i32>} : memref<3x384xf32, #tpu.memory_space<vmem>>, vector<3x384xf32>,
    %cst_4 = arith.constant 0.000000e+00 : f32
    %4 = vector.broadcast %cst_4 : f32 to vector<8x384xf32>
    %c0_5 = arith.constant 0 : index
    %c0_6 = arith.constant 0 : index
    %5 = vector.load %arg22[%c0_5, %c0_6] : memref<8x384xf32, #tpu.memory_space<vmem>>, vector<8x384xf32>
    tpu.vector_store %arg22[%c0_5, %c0_6], %4 {strides = array<i32>} : memref<8x384xf32, #tpu.memory_space<vmem>>, vector<8x384xf32>,
    %c0_7 = arith.constant 0 : index
    %c0_8 = arith.constant 0 : index
    %c0_9 = arith.constant 0 : index
    %6 = vector.load %arg1[%c0_7, %c0_8, %c0_9] : memref<1x4x256xf32, #tpu.memory_space<vmem>>, vector<1x4x16xf32>
    %7 = vector.shape_cast %6 : vector<1x4x16xf32> to vector<4x16xf32>
    %c0_10 = arith.constant 0 : index
    %c38 = arith.constant 38 : index
    %8 = vector.load %arg20[%c0_10, %c38] : memref<4x384xf32, #tpu.memory_space<vmem>>, vector<4x16xf32>
    tpu.vector_store %arg20[%c0_10, %c38], %7 {strides = array<i32>} : memref<4x384xf32, #tpu.memory_space<vmem>>, vector<4x16xf32>,
    %c0_11 = arith.constant 0 : index
    %c0_12 = arith.constant 0 : index
    %c0_13 = arith.constant 0 : index
    %9 = vector.load %arg2[%c0_11, %c0_12, %c0_13] : memref<1x3x256xf32, #tpu.memory_space<vmem>>, vector<1x3x16xf32>
    %10 = vector.shape_cast %9 : vector<1x3x16xf32> to vector<3x16xf32>
    %c0_14 = arith.constant 0 : index
    %c38_15 = arith.constant 38 : index
    %11 = vector.load %arg21[%c0_14, %c38_15] : memref<3x384xf32, #tpu.memory_space<vmem>>, vector<3x16xf32>
    tpu.vector_store %arg21[%c0_14, %c38_15], %10 {strides = array<i32>} : memref<3x384xf32, #tpu.memory_space<vmem>>, vector<3x16xf32>,
    %c0_16 = arith.constant 0 : index
    %c0_17 = arith.constant 0 : index
    %c16 = arith.constant 16 : index
    %12 = vector.load %arg1[%c0_16, %c0_17, %c16] : memref<1x4x256xf32, #tpu.memory_space<vmem>>, vector<1x4x16xf32>
    %13 = vector.shape_cast %12 : vector<1x4x16xf32> to vector<4x16xf32>
    %c0_18 = arith.constant 0 : index
    %c56 = arith.constant 56 : index
    %14 = vector.load %arg20[%c0_18, %c56] : memref<4x384xf32, #tpu.memory_space<vmem>>, vector<4x16xf32>
    tpu.vector_store %arg20[%c0_18, %c56], %13 {strides = array<i32>} : memref<4x384xf32, #tpu.memory_space<vmem>>, vector<4x16xf32>,
    %c0_19 = arith.constant 0 : index
    %c0_20 = arith.constant 0 : index
    %c16_21 = arith.constant 16 : index
    %15 = vector.load %arg2[%c0_19, %c0_20, %c16_21] : memref<1x3x256xf32, #tpu.memory_space<vmem>>, vector<1x3x16xf32>
    %16 = vector.shape_cast %15 : vector<1x3x16xf32> to vector<3x16xf32>
    %c0_22 = arith.constant 0 : index
    %c56_23 = arith.constant 56 : index
    %17 = vector.load %arg21[%c0_22, %c56_23] : memref<3x384xf32, #tpu.memory_space<vmem>>, vector<3x16xf32>
    tpu.vector_store %arg21[%c0_22, %c56_23], %16 {strides = array<i32>} : memref<3x384xf32, #tpu.memory_space<vmem>>, vector<3x16xf32>,
    %c0_24 = arith.constant 0 : index
    %c0_25 = arith.constant 0 : index
    %c32 = arith.constant 32 : index
    %18 = vector.load %arg1[%c0_24, %c0_25, %c32] : memref<1x4x256xf32, #tpu.memory_space<vmem>>, vector<1x4x16xf32>
    %19 = vector.shape_cast %18 : vector<1x4x16xf32> to vector<4x16xf32>
    %c0_26 = arith.constant 0 : index
    %c74 = arith.constant 74 : index
    %20 = vector.load %arg20[%c0_26, %c74] : memref<4x384xf32, #tpu.memory_space<vmem>>, vector<4x16xf32>
    tpu.vector_store %arg20[%c0_26, %c74], %19 {strides = array<i32>} : memref<4x384xf32, #tpu.memory_space<vmem>>, vector<4x16xf32>,
    %c0_27 = arith.constant 0 : index
    %c0_28 = arith.constant 0 : index
    %c32_29 = arith.constant 32 : index
    %21 = vector.load %arg2[%c0_27, %c0_28, %c32_29] : memref<1x3x256xf32, #tpu.memory_space<vmem>>, vector<1x3x16xf32>
    %22 = vector.shape_cast %21 : vector<1x3x16xf32> to vector<3x16xf32>
    %c0_30 = arith.constant 0 : index
    %c74_31 = arith.constant 74 : index
    %23 = vector.load %arg21[%c0_30, %c74_31] : memref<3x384xf32, #tpu.memory_space<vmem>>, vector<3x16xf32>
    tpu.vector_store %arg21[%c0_30, %c74_31], %22 {strides = array<i32>} : memref<3x384xf32, #tpu.memory_space<vmem>>, vector<3x16xf32>,
    %c0_32 = arith.constant 0 : index
    %c0_33 = arith.constant 0 : index
    %c48 = arith.constant 48 : index
    %24 = vector.load %arg1[%c0_32, %c0_33, %c48] : memref<1x4x256xf32, #tpu.memory_space<vmem>>, vector<1x4x16xf32>
    %25 = vector.shape_cast %24 : vector<1x4x16xf32> to vector<4x16xf32>
    %c0_34 = arith.constant 0 : index
    %c92 = arith.constant 92 : index
    %26 = vector.load %arg20[%c0_34, %c92] : memref<4x384xf32, #tpu.memory_space<vmem>>, vector<4x16xf32>
    tpu.vector_store %arg20[%c0_34, %c92], %25 {strides = array<i32>} : memref<4x384xf32, #tpu.memory_space<vmem>>, vector<4x16xf32>,
    %c0_35 = arith.constant 0 : index
    %c0_36 = arith.constant 0 : index
    %c48_37 = arith.constant 48 : index
    %27 = vector.load %arg2[%c0_35, %c0_36, %c48_37] : memref<1x3x256xf32, #tpu.memory_space<vmem>>, vector<1x3x16xf32>
    %28 = vector.shape_cast %27 : vector<1x3x16xf32> to vector<3x16xf32>
    %c0_38 = arith.constant 0 : index
    %c92_39 = arith.constant 92 : index
    %29 = vector.load %arg21[%c0_38, %c92_39] : memref<3x384xf32, #tpu.memory_space<vmem>>, vector<3x16xf32>
    tpu.vector_store %arg21[%c0_38, %c92_39], %28 {strides = array<i32>} : memref<3x384xf32, #tpu.memory_space<vmem>>, vector<3x16xf32>,
    %c0_40 = arith.constant 0 : index
    %c0_41 = arith.constant 0 : index
    %c64 = arith.constant 64 : index
    %30 = vector.load %arg1[%c0_40, %c0_41, %c64] : memref<1x4x256xf32, #tpu.memory_space<vmem>>, vector<1x4x16xf32>
    %31 = vector.shape_cast %30 : vector<1x4x16xf32> to vector<4x16xf32>
    %c0_42 = arith.constant 0 : index
    %c110 = arith.constant 110 : index
    %32 = vector.load %arg20[%c0_42, %c110] : memref<4x384xf32, #tpu.memory_space<vmem>>, vector<4x16xf32>
    tpu.vector_store %arg20[%c0_42, %c110], %31 {strides = array<i32>} : memref<4x384xf32, #tpu.memory_space<vmem>>, vector<4x16xf32>,
    %c0_43 = arith.constant 0 : index
    %c0_44 = arith.constant 0 : index
    %c64_45 = arith.constant 64 : index
    %33 = vector.load %arg2[%c0_43, %c0_44, %c64_45] : memref<1x3x256xf32, #tpu.memory_space<vmem>>, vector<1x3x16xf32>
    %34 = vector.shape_cast %33 : vector<1x3x16xf32> to vector<3x16xf32>
    %c0_46 = arith.constant 0 : index
    %c110_47 = arith.constant 110 : index
    %35 = vector.load %arg21[%c0_46, %c110_47] : memref<3x384xf32, #tpu.memory_space<vmem>>, vector<3x16xf32>
    tpu.vector_store %arg21[%c0_46, %c110_47], %34 {strides = array<i32>} : memref<3x384xf32, #tpu.memory_space<vmem>>, vector<3x16xf32>,
    %c0_48 = arith.constant 0 : index
    %c0_49 = arith.constant 0 : index
    %c80 = arith.constant 80 : index
    %36 = vector.load %arg1[%c0_48, %c0_49, %c80] : memref<1x4x256xf32, #tpu.memory_space<vmem>>, vector<1x4x16xf32>
    %37 = vector.shape_cast %36 : vector<1x4x16xf32> to vector<4x16xf32>
    %c0_50 = arith.constant 0 : index
    %c128 = arith.constant 128 : index
    %38 = vector.load %arg20[%c0_50, %c128] : memref<4x384xf32, #tpu.memory_space<vmem>>, vector<4x16xf32>
    tpu.vector_store %arg20[%c0_50, %c128], %37 {strides = array<i32>} : memref<4x384xf32, #tpu.memory_space<vmem>>, vector<4x16xf32>,
    %c0_51 = arith.constant 0 : index
    %c0_52 = arith.constant 0 : index
    %c80_53 = arith.constant 80 : index
    %39 = vector.load %arg2[%c0_51, %c0_52, %c80_53] : memref<1x3x256xf32, #tpu.memory_space<vmem>>, vector<1x3x16xf32>
    %40 = vector.shape_cast %39 : vector<1x3x16xf32> to vector<3x16xf32>
    %c0_54 = arith.constant 0 : index
    %c128_55 = arith.constant 128 : index
    %41 = vector.load %arg21[%c0_54, %c128_55] : memref<3x384xf32, #tpu.memory_space<vmem>>, vector<3x16xf32>
    tpu.vector_store %arg21[%c0_54, %c128_55], %40 {strides = array<i32>} : memref<3x384xf32, #tpu.memory_space<vmem>>, vector<3x16xf32>,
    %c0_56 = arith.constant 0 : index
    %c0_57 = arith.constant 0 : index
    %c96 = arith.constant 96 : index
    %42 = vector.load %arg1[%c0_56, %c0_57, %c96] : memref<1x4x256xf32, #tpu.memory_space<vmem>>, vector<1x4x16xf32>
    %43 = vector.shape_cast %42 : vector<1x4x16xf32> to vector<4x16xf32>
    %c0_58 = arith.constant 0 : index
    %c146 = arith.constant 146 : index
    %44 = vector.load %arg20[%c0_58, %c146] : memref<4x384xf32, #tpu.memory_space<vmem>>, vector<4x16xf32>
    tpu.vector_store %arg20[%c0_58, %c146], %43 {strides = array<i32>} : memref<4x384xf32, #tpu.memory_space<vmem>>, vector<4x16xf32>,
    %c0_59 = arith.constant 0 : index
    %c0_60 = arith.constant 0 : index
    %c96_61 = arith.constant 96 : index
    %45 = vector.load %arg2[%c0_59, %c0_60, %c96_61] : memref<1x3x256xf32, #tpu.memory_space<vmem>>, vector<1x3x16xf32>
    %46 = vector.shape_cast %45 : vector<1x3x16xf32> to vector<3x16xf32>
    %c0_62 = arith.constant 0 : index
    %c146_63 = arith.constant 146 : index
    %47 = vector.load %arg21[%c0_62, %c146_63] : memref<3x384xf32, #tpu.memory_space<vmem>>, vector<3x16xf32>
    tpu.vector_store %arg21[%c0_62, %c146_63], %46 {strides = array<i32>} : memref<3x384xf32, #tpu.memory_space<vmem>>, vector<3x16xf32>,
    %c0_64 = arith.constant 0 : index
    %c0_65 = arith.constant 0 : index
    %c112 = arith.constant 112 : index
    %48 = vector.load %arg1[%c0_64, %c0_65, %c112] : memref<1x4x256xf32, #tpu.memory_space<vmem>>, vector<1x4x16xf32>
    %49 = vector.shape_cast %48 : vector<1x4x16xf32> to vector<4x16xf32>
    %c0_66 = arith.constant 0 : index
    %c164 = arith.constant 164 : index
    %50 = vector.load %arg20[%c0_66, %c164] : memref<4x384xf32, #tpu.memory_space<vmem>>, vector<4x16xf32>
    tpu.vector_store %arg20[%c0_66, %c164], %49 {strides = array<i32>} : memref<4x384xf32, #tpu.memory_space<vmem>>, vector<4x16xf32>,
    %c0_67 = arith.constant 0 : index
    %c0_68 = arith.constant 0 : index
    %c112_69 = arith.constant 112 : index
    %51 = vector.load %arg2[%c0_67, %c0_68, %c112_69] : memref<1x3x256xf32, #tpu.memory_space<vmem>>, vector<1x3x16xf32>
    %52 = vector.shape_cast %51 : vector<1x3x16xf32> to vector<3x16xf32>
    %c0_70 = arith.constant 0 : index
    %c164_71 = arith.constant 164 : index
    %53 = vector.load %arg21[%c0_70, %c164_71] : memref<3x384xf32, #tpu.memory_space<vmem>>, vector<3x16xf32>
    tpu.vector_store %arg21[%c0_70, %c164_71], %52 {strides = array<i32>} : memref<3x384xf32, #tpu.memory_space<vmem>>, vector<3x16xf32>,
    %c0_72 = arith.constant 0 : index
    %c0_73 = arith.constant 0 : index
    %c128_74 = arith.constant 128 : index
    %54 = vector.load %arg1[%c0_72, %c0_73, %c128_74] : memref<1x4x256xf32, #tpu.memory_space<vmem>>, vector<1x4x16xf32>
    %55 = vector.shape_cast %54 : vector<1x4x16xf32> to vector<4x16xf32>
    %c0_75 = arith.constant 0 : index
    %c182 = arith.constant 182 : index
    %56 = vector.load %arg20[%c0_75, %c182] : memref<4x384xf32, #tpu.memory_space<vmem>>, vector<4x16xf32>
    tpu.vector_store %arg20[%c0_75, %c182], %55 {strides = array<i32>} : memref<4x384xf32, #tpu.memory_space<vmem>>, vector<4x16xf32>,
    %c0_76 = arith.constant 0 : index
    %c0_77 = arith.constant 0 : index
    %c128_78 = arith.constant 128 : index
    %57 = vector.load %arg2[%c0_76, %c0_77, %c128_78] : memref<1x3x256xf32, #tpu.memory_space<vmem>>, vector<1x3x16xf32>
    %58 = vector.shape_cast %57 : vector<1x3x16xf32> to vector<3x16xf32>
    %c0_79 = arith.constant 0 : index
    %c182_80 = arith.constant 182 : index
    %59 = vector.load %arg21[%c0_79, %c182_80] : memref<3x384xf32, #tpu.memory_space<vmem>>, vector<3x16xf32>
    tpu.vector_store %arg21[%c0_79, %c182_80], %58 {strides = array<i32>} : memref<3x384xf32, #tpu.memory_space<vmem>>, vector<3x16xf32>,
    %c0_81 = arith.constant 0 : index
    %c0_82 = arith.constant 0 : index
    %c144 = arith.constant 144 : index
    %60 = vector.load %arg1[%c0_81, %c0_82, %c144] : memref<1x4x256xf32, #tpu.memory_space<vmem>>, vector<1x4x16xf32>
    %61 = vector.shape_cast %60 : vector<1x4x16xf32> to vector<4x16xf32>
    %c0_83 = arith.constant 0 : index
    %c200 = arith.constant 200 : index
    %62 = vector.load %arg20[%c0_83, %c200] : memref<4x384xf32, #tpu.memory_space<vmem>>, vector<4x16xf32>
    tpu.vector_store %arg20[%c0_83, %c200], %61 {strides = array<i32>} : memref<4x384xf32, #tpu.memory_space<vmem>>, vector<4x16xf32>,
    %c0_84 = arith.constant 0 : index
    %c0_85 = arith.constant 0 : index
    %c144_86 = arith.constant 144 : index
    %63 = vector.load %arg2[%c0_84, %c0_85, %c144_86] : memref<1x3x256xf32, #tpu.memory_space<vmem>>, vector<1x3x16xf32>
    %64 = vector.shape_cast %63 : vector<1x3x16xf32> to vector<3x16xf32>
    %c0_87 = arith.constant 0 : index
    %c200_88 = arith.constant 200 : index
    %65 = vector.load %arg21[%c0_87, %c200_88] : memref<3x384xf32, #tpu.memory_space<vmem>>, vector<3x16xf32>
    tpu.vector_store %arg21[%c0_87, %c200_88], %64 {strides = array<i32>} : memref<3x384xf32, #tpu.memory_space<vmem>>, vector<3x16xf32>,
    %c0_89 = arith.constant 0 : index
    %c0_90 = arith.constant 0 : index
    %c160 = arith.constant 160 : index
    %66 = vector.load %arg1[%c0_89, %c0_90, %c160] : memref<1x4x256xf32, #tpu.memory_space<vmem>>, vector<1x4x16xf32>
    %67 = vector.shape_cast %66 : vector<1x4x16xf32> to vector<4x16xf32>
    %c0_91 = arith.constant 0 : index
    %c218 = arith.constant 218 : index
    %68 = vector.load %arg20[%c0_91, %c218] : memref<4x384xf32, #tpu.memory_space<vmem>>, vector<4x16xf32>
    tpu.vector_store %arg20[%c0_91, %c218], %67 {strides = array<i32>} : memref<4x384xf32, #tpu.memory_space<vmem>>, vector<4x16xf32>,
    %c0_92 = arith.constant 0 : index
    %c0_93 = arith.constant 0 : index
    %c160_94 = arith.constant 160 : index
    %69 = vector.load %arg2[%c0_92, %c0_93, %c160_94] : memref<1x3x256xf32, #tpu.memory_space<vmem>>, vector<1x3x16xf32>
    %70 = vector.shape_cast %69 : vector<1x3x16xf32> to vector<3x16xf32>
    %c0_95 = arith.constant 0 : index
    %c218_96 = arith.constant 218 : index
    %71 = vector.load %arg21[%c0_95, %c218_96] : memref<3x384xf32, #tpu.memory_space<vmem>>, vector<3x16xf32>
    tpu.vector_store %arg21[%c0_95, %c218_96], %70 {strides = array<i32>} : memref<3x384xf32, #tpu.memory_space<vmem>>, vector<3x16xf32>,
    %c0_97 = arith.constant 0 : index
    %c0_98 = arith.constant 0 : index
    %c176 = arith.constant 176 : index
    %72 = vector.load %arg1[%c0_97, %c0_98, %c176] : memref<1x4x256xf32, #tpu.memory_space<vmem>>, vector<1x4x16xf32>
    %73 = vector.shape_cast %72 : vector<1x4x16xf32> to vector<4x16xf32>
    %c0_99 = arith.constant 0 : index
    %c236 = arith.constant 236 : index
    %74 = vector.load %arg20[%c0_99, %c236] : memref<4x384xf32, #tpu.memory_space<vmem>>, vector<4x16xf32>
    tpu.vector_store %arg20[%c0_99, %c236], %73 {strides = array<i32>} : memref<4x384xf32, #tpu.memory_space<vmem>>, vector<4x16xf32>,
    %c0_100 = arith.constant 0 : index
    %c0_101 = arith.constant 0 : index
    %c176_102 = arith.constant 176 : index
    %75 = vector.load %arg2[%c0_100, %c0_101, %c176_102] : memref<1x3x256xf32, #tpu.memory_space<vmem>>, vector<1x3x16xf32>
    %76 = vector.shape_cast %75 : vector<1x3x16xf32> to vector<3x16xf32>
    %c0_103 = arith.constant 0 : index
    %c236_104 = arith.constant 236 : index
    %77 = vector.load %arg21[%c0_103, %c236_104] : memref<3x384xf32, #tpu.memory_space<vmem>>, vector<3x16xf32>
    tpu.vector_store %arg21[%c0_103, %c236_104], %76 {strides = array<i32>} : memref<3x384xf32, #tpu.memory_space<vmem>>, vector<3x16xf32>,
    %c0_105 = arith.constant 0 : index
    %c0_106 = arith.constant 0 : index
    %c192 = arith.constant 192 : index
    %78 = vector.load %arg1[%c0_105, %c0_106, %c192] : memref<1x4x256xf32, #tpu.memory_space<vmem>>, vector<1x4x16xf32>
    %79 = vector.shape_cast %78 : vector<1x4x16xf32> to vector<4x16xf32>
    %c0_107 = arith.constant 0 : index
    %c254 = arith.constant 254 : index
    %80 = vector.load %arg20[%c0_107, %c254] : memref<4x384xf32, #tpu.memory_space<vmem>>, vector<4x16xf32>
    tpu.vector_store %arg20[%c0_107, %c254], %79 {strides = array<i32>} : memref<4x384xf32, #tpu.memory_space<vmem>>, vector<4x16xf32>,
    %c0_108 = arith.constant 0 : index
    %c0_109 = arith.constant 0 : index
    %c192_110 = arith.constant 192 : index
    %81 = vector.load %arg2[%c0_108, %c0_109, %c192_110] : memref<1x3x256xf32, #tpu.memory_space<vmem>>, vector<1x3x16xf32>
    %82 = vector.shape_cast %81 : vector<1x3x16xf32> to vector<3x16xf32>
    %c0_111 = arith.constant 0 : index
    %c254_112 = arith.constant 254 : index
    %83 = vector.load %arg21[%c0_111, %c254_112] : memref<3x384xf32, #tpu.memory_space<vmem>>, vector<3x16xf32>
    tpu.vector_store %arg21[%c0_111, %c254_112], %82 {strides = array<i32>} : memref<3x384xf32, #tpu.memory_space<vmem>>, vector<3x16xf32>,
    %c0_113 = arith.constant 0 : index
    %c0_114 = arith.constant 0 : index
    %c208 = arith.constant 208 : index
    %84 = vector.load %arg1[%c0_113, %c0_114, %c208] : memref<1x4x256xf32, #tpu.memory_space<vmem>>, vector<1x4x16xf32>
    %85 = vector.shape_cast %84 : vector<1x4x16xf32> to vector<4x16xf32>
    %c0_115 = arith.constant 0 : index
    %c272 = arith.constant 272 : index
    %86 = vector.load %arg20[%c0_115, %c272] : memref<4x384xf32, #tpu.memory_space<vmem>>, vector<4x16xf32>
    tpu.vector_store %arg20[%c0_115, %c272], %85 {strides = array<i32>} : memref<4x384xf32, #tpu.memory_space<vmem>>, vector<4x16xf32>,
    %c0_116 = arith.constant 0 : index
    %c0_117 = arith.constant 0 : index
    %c208_118 = arith.constant 208 : index
    %87 = vector.load %arg2[%c0_116, %c0_117, %c208_118] : memref<1x3x256xf32, #tpu.memory_space<vmem>>, vector<1x3x16xf32>
    %88 = vector.shape_cast %87 : vector<1x3x16xf32> to vector<3x16xf32>
    %c0_119 = arith.constant 0 : index
    %c272_120 = arith.constant 272 : index
    %89 = vector.load %arg21[%c0_119, %c272_120] : memref<3x384xf32, #tpu.memory_space<vmem>>, vector<3x16xf32>
    tpu.vector_store %arg21[%c0_119, %c272_120], %88 {strides = array<i32>} : memref<3x384xf32, #tpu.memory_space<vmem>>, vector<3x16xf32>,
    %c0_121 = arith.constant 0 : index
    %c0_122 = arith.constant 0 : index
    %c224 = arith.constant 224 : index
    %90 = vector.load %arg1[%c0_121, %c0_122, %c224] : memref<1x4x256xf32, #tpu.memory_space<vmem>>, vector<1x4x16xf32>
    %91 = vector.shape_cast %90 : vector<1x4x16xf32> to vector<4x16xf32>
    %c0_123 = arith.constant 0 : index
    %c290 = arith.constant 290 : index
    %92 = vector.load %arg20[%c0_123, %c290] : memref<4x384xf32, #tpu.memory_space<vmem>>, vector<4x16xf32>
    tpu.vector_store %arg20[%c0_123, %c290], %91 {strides = array<i32>} : memref<4x384xf32, #tpu.memory_space<vmem>>, vector<4x16xf32>,
    %c0_124 = arith.constant 0 : index
    %c0_125 = arith.constant 0 : index
    %c224_126 = arith.constant 224 : index
    %93 = vector.load %arg2[%c0_124, %c0_125, %c224_126] : memref<1x3x256xf32, #tpu.memory_space<vmem>>, vector<1x3x16xf32>
    %94 = vector.shape_cast %93 : vector<1x3x16xf32> to vector<3x16xf32>
    %c0_127 = arith.constant 0 : index
    %c290_128 = arith.constant 290 : index
    %95 = vector.load %arg21[%c0_127, %c290_128] : memref<3x384xf32, #tpu.memory_space<vmem>>, vector<3x16xf32>
    tpu.vector_store %arg21[%c0_127, %c290_128], %94 {strides = array<i32>} : memref<3x384xf32, #tpu.memory_space<vmem>>, vector<3x16xf32>,
    %c0_129 = arith.constant 0 : index
    %c0_130 = arith.constant 0 : index
    %c240 = arith.constant 240 : index
    %96 = vector.load %arg1[%c0_129, %c0_130, %c240] : memref<1x4x256xf32, #tpu.memory_space<vmem>>, vector<1x4x16xf32>
    %97 = vector.shape_cast %96 : vector<1x4x16xf32> to vector<4x16xf32>
    %c0_131 = arith.constant 0 : index
    %c308 = arith.constant 308 : index
    %98 = vector.load %arg20[%c0_131, %c308] : memref<4x384xf32, #tpu.memory_space<vmem>>, vector<4x16xf32>
    tpu.vector_store %arg20[%c0_131, %c308], %97 {strides = array<i32>} : memref<4x384xf32, #tpu.memory_space<vmem>>, vector<4x16xf32>,
    %c0_132 = arith.constant 0 : index
    %c0_133 = arith.constant 0 : index
    %c240_134 = arith.constant 240 : index
    %99 = vector.load %arg2[%c0_132, %c0_133, %c240_134] : memref<1x3x256xf32, #tpu.memory_space<vmem>>, vector<1x3x16xf32>
    %100 = vector.shape_cast %99 : vector<1x3x16xf32> to vector<3x16xf32>
    %c0_135 = arith.constant 0 : index
    %c308_136 = arith.constant 308 : index
    %101 = vector.load %arg21[%c0_135, %c308_136] : memref<3x384xf32, #tpu.memory_space<vmem>>, vector<3x16xf32>
    tpu.vector_store %arg21[%c0_135, %c308_136], %100 {strides = array<i32>} : memref<3x384xf32, #tpu.memory_space<vmem>>, vector<3x16xf32>,
    %cst_137 = arith.constant 0.000000e+00 : f32
    %102 = vector.broadcast %cst_137 : f32 to vector<8x324xf32>
    %c0_138 = arith.constant 0 : index
    %c0_139 = arith.constant 0 : index
    %c0_140 = arith.constant 0 : index
    %c0_141 = arith.constant 0 : index
    %103 = vector.load %arg3[%c0_138, %c0_139, %c0_140, %c0_141] : memref<3x3x8x4xf32, #tpu.memory_space<vmem>>, vector<1x1x8x4xf32>
    %104 = vector.shape_cast %103 : vector<1x1x8x4xf32> to vector<8x4xf32>
    %c0_142 = arith.constant 0 : index
    %c0_143 = arith.constant 0 : index
    %105 = vector.load %arg20[%c0_142, %c0_143] : memref<4x384xf32, #tpu.memory_space<vmem>>, vector<4x324xf32>
    %cst_144 = arith.constant dense<0.000000e+00> : vector<8x324xf32>
    %106 = tpu.matmul %104, %105, %cst_144 {dimension_numbers = #tpu.dot_dimension_numbers<[1], [0], [0], [1], [0, 0, 1, 1], [], []>} : vector<8x4xf32>, vector<4x324xf32>, vector<8x324xf32> -> vector<8x324xf32>
    %107 = arith.addf %102, %106 : vector<8x324xf32>
    %c0_145 = arith.constant 0 : index
    %c1 = arith.constant 1 : index
    %c0_146 = arith.constant 0 : index
    %c0_147 = arith.constant 0 : index
    %108 = vector.load %arg3[%c0_145, %c1, %c0_146, %c0_147] : memref<3x3x8x4xf32, #tpu.memory_space<vmem>>, vector<1x1x8x4xf32>
    %109 = vector.shape_cast %108 : vector<1x1x8x4xf32> to vector<8x4xf32>
    %c0_148 = arith.constant 0 : index
    %c1_149 = arith.constant 1 : index
    %110 = vector.load %arg20[%c0_148, %c1_149] : memref<4x384xf32, #tpu.memory_space<vmem>>, vector<4x324xf32>
    %cst_150 = arith.constant dense<0.000000e+00> : vector<8x324xf32>
    %111 = tpu.matmul %109, %110, %cst_150 {dimension_numbers = #tpu.dot_dimension_numbers<[1], [0], [0], [1], [0, 0, 1, 1], [], []>} : vector<8x4xf32>, vector<4x324xf32>, vector<8x324xf32> -> vector<8x324xf32>
    %112 = arith.addf %107, %111 : vector<8x324xf32>
    %c0_151 = arith.constant 0 : index
    %c2 = arith.constant 2 : index
    %c0_152 = arith.constant 0 : index
    %c0_153 = arith.constant 0 : index
    %113 = vector.load %arg3[%c0_151, %c2, %c0_152, %c0_153] : memref<3x3x8x4xf32, #tpu.memory_space<vmem>>, vector<1x1x8x4xf32>
    %114 = vector.shape_cast %113 : vector<1x1x8x4xf32> to vector<8x4xf32>
    %c0_154 = arith.constant 0 : index
    %c2_155 = arith.constant 2 : index
    %115 = vector.load %arg20[%c0_154, %c2_155] : memref<4x384xf32, #tpu.memory_space<vmem>>, vector<4x324xf32>
    %cst_156 = arith.constant dense<0.000000e+00> : vector<8x324xf32>
    %116 = tpu.matmul %114, %115, %cst_156 {dimension_numbers = #tpu.dot_dimension_numbers<[1], [0], [0], [1], [0, 0, 1, 1], [], []>} : vector<8x4xf32>, vector<4x324xf32>, vector<8x324xf32> -> vector<8x324xf32>
    %117 = arith.addf %112, %116 : vector<8x324xf32>
    %c1_157 = arith.constant 1 : index
    %c0_158 = arith.constant 0 : index
    %c0_159 = arith.constant 0 : index
    %c0_160 = arith.constant 0 : index
    %118 = vector.load %arg3[%c1_157, %c0_158, %c0_159, %c0_160] : memref<3x3x8x4xf32, #tpu.memory_space<vmem>>, vector<1x1x8x4xf32>
    %119 = vector.shape_cast %118 : vector<1x1x8x4xf32> to vector<8x4xf32>
    %c0_161 = arith.constant 0 : index
    %c18 = arith.constant 18 : index
    %120 = vector.load %arg20[%c0_161, %c18] : memref<4x384xf32, #tpu.memory_space<vmem>>, vector<4x324xf32>
    %cst_162 = arith.constant dense<0.000000e+00> : vector<8x324xf32>
    %121 = tpu.matmul %119, %120, %cst_162 {dimension_numbers = #tpu.dot_dimension_numbers<[1], [0], [0], [1], [0, 0, 1, 1], [], []>} : vector<8x4xf32>, vector<4x324xf32>, vector<8x324xf32> -> vector<8x324xf32>
    %122 = arith.addf %117, %121 : vector<8x324xf32>
    %c1_163 = arith.constant 1 : index
    %c1_164 = arith.constant 1 : index
    %c0_165 = arith.constant 0 : index
    %c0_166 = arith.constant 0 : index
    %123 = vector.load %arg3[%c1_163, %c1_164, %c0_165, %c0_166] : memref<3x3x8x4xf32, #tpu.memory_space<vmem>>, vector<1x1x8x4xf32>
    %124 = vector.shape_cast %123 : vector<1x1x8x4xf32> to vector<8x4xf32>
    %c0_167 = arith.constant 0 : index
    %c19 = arith.constant 19 : index
    %125 = vector.load %arg20[%c0_167, %c19] : memref<4x384xf32, #tpu.memory_space<vmem>>, vector<4x324xf32>
    %cst_168 = arith.constant dense<0.000000e+00> : vector<8x324xf32>
    %126 = tpu.matmul %124, %125, %cst_168 {dimension_numbers = #tpu.dot_dimension_numbers<[1], [0], [0], [1], [0, 0, 1, 1], [], []>} : vector<8x4xf32>, vector<4x324xf32>, vector<8x324xf32> -> vector<8x324xf32>
    %127 = arith.addf %122, %126 : vector<8x324xf32>
    %c1_169 = arith.constant 1 : index
    %c2_170 = arith.constant 2 : index
    %c0_171 = arith.constant 0 : index
    %c0_172 = arith.constant 0 : index
    %128 = vector.load %arg3[%c1_169, %c2_170, %c0_171, %c0_172] : memref<3x3x8x4xf32, #tpu.memory_space<vmem>>, vector<1x1x8x4xf32>
    %129 = vector.shape_cast %128 : vector<1x1x8x4xf32> to vector<8x4xf32>
    %c0_173 = arith.constant 0 : index
    %c20 = arith.constant 20 : index
    %130 = vector.load %arg20[%c0_173, %c20] : memref<4x384xf32, #tpu.memory_space<vmem>>, vector<4x324xf32>
    %cst_174 = arith.constant dense<0.000000e+00> : vector<8x324xf32>
    %131 = tpu.matmul %129, %130, %cst_174 {dimension_numbers = #tpu.dot_dimension_numbers<[1], [0], [0], [1], [0, 0, 1, 1], [], []>} : vector<8x4xf32>, vector<4x324xf32>, vector<8x324xf32> -> vector<8x324xf32>
    %132 = arith.addf %127, %131 : vector<8x324xf32>
    %c2_175 = arith.constant 2 : index
    %c0_176 = arith.constant 0 : index
    %c0_177 = arith.constant 0 : index
    %c0_178 = arith.constant 0 : index
    %133 = vector.load %arg3[%c2_175, %c0_176, %c0_177, %c0_178] : memref<3x3x8x4xf32, #tpu.memory_space<vmem>>, vector<1x1x8x4xf32>
    %134 = vector.shape_cast %133 : vector<1x1x8x4xf32> to vector<8x4xf32>
    %c0_179 = arith.constant 0 : index
    %c36 = arith.constant 36 : index
    %135 = vector.load %arg20[%c0_179, %c36] : memref<4x384xf32, #tpu.memory_space<vmem>>, vector<4x324xf32>
    %cst_180 = arith.constant dense<0.000000e+00> : vector<8x324xf32>
    %136 = tpu.matmul %134, %135, %cst_180 {dimension_numbers = #tpu.dot_dimension_numbers<[1], [0], [0], [1], [0, 0, 1, 1], [], []>} : vector<8x4xf32>, vector<4x324xf32>, vector<8x324xf32> -> vector<8x324xf32>
    %137 = arith.addf %132, %136 : vector<8x324xf32>
    %c2_181 = arith.constant 2 : index
    %c1_182 = arith.constant 1 : index
    %c0_183 = arith.constant 0 : index
    %c0_184 = arith.constant 0 : index
    %138 = vector.load %arg3[%c2_181, %c1_182, %c0_183, %c0_184] : memref<3x3x8x4xf32, #tpu.memory_space<vmem>>, vector<1x1x8x4xf32>
    %139 = vector.shape_cast %138 : vector<1x1x8x4xf32> to vector<8x4xf32>
    %c0_185 = arith.constant 0 : index
    %c37 = arith.constant 37 : index
    %140 = vector.load %arg20[%c0_185, %c37] : memref<4x384xf32, #tpu.memory_space<vmem>>, vector<4x324xf32>
    %cst_186 = arith.constant dense<0.000000e+00> : vector<8x324xf32>
    %141 = tpu.matmul %139, %140, %cst_186 {dimension_numbers = #tpu.dot_dimension_numbers<[1], [0], [0], [1], [0, 0, 1, 1], [], []>} : vector<8x4xf32>, vector<4x324xf32>, vector<8x324xf32> -> vector<8x324xf32>
    %142 = arith.addf %137, %141 : vector<8x324xf32>
    %c2_187 = arith.constant 2 : index
    %c2_188 = arith.constant 2 : index
    %c0_189 = arith.constant 0 : index
    %c0_190 = arith.constant 0 : index
    %143 = vector.load %arg3[%c2_187, %c2_188, %c0_189, %c0_190] : memref<3x3x8x4xf32, #tpu.memory_space<vmem>>, vector<1x1x8x4xf32>
    %144 = vector.shape_cast %143 : vector<1x1x8x4xf32> to vector<8x4xf32>
    %c0_191 = arith.constant 0 : index
    %c38_192 = arith.constant 38 : index
    %145 = vector.load %arg20[%c0_191, %c38_192] : memref<4x384xf32, #tpu.memory_space<vmem>>, vector<4x324xf32>
    %cst_193 = arith.constant dense<0.000000e+00> : vector<8x324xf32>
    %146 = tpu.matmul %144, %145, %cst_193 {dimension_numbers = #tpu.dot_dimension_numbers<[1], [0], [0], [1], [0, 0, 1, 1], [], []>} : vector<8x4xf32>, vector<4x324xf32>, vector<8x324xf32> -> vector<8x324xf32>
    %147 = arith.addf %142, %146 : vector<8x324xf32>
    %c0_194 = arith.constant 0 : index
    %c0_195 = arith.constant 0 : index
    %148 = vector.load %arg4[%c0_194, %c0_195] : memref<8x1xf32, #tpu.memory_space<vmem>>, vector<8x1xf32>
    %149 = vector.broadcast %148 : vector<8x1xf32> to vector<8x324xf32>
    %150 = arith.addf %147, %149 : vector<8x324xf32>
    %cst_196 = arith.constant 0.000000e+00 : f32
    %151 = vector.broadcast %cst_196 : f32 to vector<8x324xf32>
    %152 = arith.maximumf %150, %151 : vector<8x324xf32>
    %c0_197 = arith.constant 0 : index
    %c0_198 = arith.constant 0 : index
    %153 = vector.load %arg5[%c0_197, %c0_198] : memref<4x8xf32, #tpu.memory_space<vmem>>, vector<4x8xf32>
    %cst_199 = arith.constant dense<0.000000e+00> : vector<4x324xf32>
    %154 = tpu.matmul %153, %152, %cst_199 {dimension_numbers = #tpu.dot_dimension_numbers<[1], [0], [0], [1], [0, 0, 1, 1], [], []>} : vector<4x8xf32>, vector<8x324xf32>, vector<4x324xf32> -> vector<4x324xf32>
    %c0_200 = arith.constant 0 : index
    %c0_201 = arith.constant 0 : index
    %155 = vector.load %arg6[%c0_200, %c0_201] : memref<4x1xf32, #tpu.memory_space<vmem>>, vector<4x1xf32>
    %156 = vector.broadcast %155 : vector<4x1xf32> to vector<4x324xf32>
    %157 = arith.addf %154, %156 : vector<4x324xf32>
    %cst_202 = arith.constant 0.000000e+00 : f32
    %158 = vector.broadcast %cst_202 : f32 to vector<4x324xf32>
    %159 = arith.maximumf %157, %158 : vector<4x324xf32>
    %cst_203 = arith.constant 0.000000e+00 : f32
    %160 = vector.broadcast %cst_203 : f32 to vector<8x324xf32>
    %c0_204 = arith.constant 0 : index
    %c0_205 = arith.constant 0 : index
    %c0_206 = arith.constant 0 : index
    %c0_207 = arith.constant 0 : index
    %161 = vector.load %arg7[%c0_204, %c0_205, %c0_206, %c0_207] : memref<3x3x8x3xf32, #tpu.memory_space<vmem>>, vector<1x1x8x3xf32>
    %162 = vector.shape_cast %161 : vector<1x1x8x3xf32> to vector<8x3xf32>
    %c0_208 = arith.constant 0 : index
    %c0_209 = arith.constant 0 : index
    %163 = vector.load %arg21[%c0_208, %c0_209] : memref<3x384xf32, #tpu.memory_space<vmem>>, vector<3x324xf32>
    %cst_210 = arith.constant dense<0.000000e+00> : vector<8x324xf32>
    %164 = tpu.matmul %162, %163, %cst_210 {dimension_numbers = #tpu.dot_dimension_numbers<[1], [0], [0], [1], [0, 0, 1, 1], [], []>} : vector<8x3xf32>, vector<3x324xf32>, vector<8x324xf32> -> vector<8x324xf32>
    %165 = arith.addf %160, %164 : vector<8x324xf32>
    %c0_211 = arith.constant 0 : index
    %c1_212 = arith.constant 1 : index
    %c0_213 = arith.constant 0 : index
    %c0_214 = arith.constant 0 : index
    %166 = vector.load %arg7[%c0_211, %c1_212, %c0_213, %c0_214] : memref<3x3x8x3xf32, #tpu.memory_space<vmem>>, vector<1x1x8x3xf32>
    %167 = vector.shape_cast %166 : vector<1x1x8x3xf32> to vector<8x3xf32>
    %c0_215 = arith.constant 0 : index
    %c1_216 = arith.constant 1 : index
    %168 = vector.load %arg21[%c0_215, %c1_216] : memref<3x384xf32, #tpu.memory_space<vmem>>, vector<3x324xf32>
    %cst_217 = arith.constant dense<0.000000e+00> : vector<8x324xf32>
    %169 = tpu.matmul %167, %168, %cst_217 {dimension_numbers = #tpu.dot_dimension_numbers<[1], [0], [0], [1], [0, 0, 1, 1], [], []>} : vector<8x3xf32>, vector<3x324xf32>, vector<8x324xf32> -> vector<8x324xf32>
    %170 = arith.addf %165, %169 : vector<8x324xf32>
    %c0_218 = arith.constant 0 : index
    %c2_219 = arith.constant 2 : index
    %c0_220 = arith.constant 0 : index
    %c0_221 = arith.constant 0 : index
    %171 = vector.load %arg7[%c0_218, %c2_219, %c0_220, %c0_221] : memref<3x3x8x3xf32, #tpu.memory_space<vmem>>, vector<1x1x8x3xf32>
    %172 = vector.shape_cast %171 : vector<1x1x8x3xf32> to vector<8x3xf32>
    %c0_222 = arith.constant 0 : index
    %c2_223 = arith.constant 2 : index
    %173 = vector.load %arg21[%c0_222, %c2_223] : memref<3x384xf32, #tpu.memory_space<vmem>>, vector<3x324xf32>
    %cst_224 = arith.constant dense<0.000000e+00> : vector<8x324xf32>
    %174 = tpu.matmul %172, %173, %cst_224 {dimension_numbers = #tpu.dot_dimension_numbers<[1], [0], [0], [1], [0, 0, 1, 1], [], []>} : vector<8x3xf32>, vector<3x324xf32>, vector<8x324xf32> -> vector<8x324xf32>
    %175 = arith.addf %170, %174 : vector<8x324xf32>
    %c1_225 = arith.constant 1 : index
    %c0_226 = arith.constant 0 : index
    %c0_227 = arith.constant 0 : index
    %c0_228 = arith.constant 0 : index
    %176 = vector.load %arg7[%c1_225, %c0_226, %c0_227, %c0_228] : memref<3x3x8x3xf32, #tpu.memory_space<vmem>>, vector<1x1x8x3xf32>
    %177 = vector.shape_cast %176 : vector<1x1x8x3xf32> to vector<8x3xf32>
    %c0_229 = arith.constant 0 : index
    %c18_230 = arith.constant 18 : index
    %178 = vector.load %arg21[%c0_229, %c18_230] : memref<3x384xf32, #tpu.memory_space<vmem>>, vector<3x324xf32>
    %cst_231 = arith.constant dense<0.000000e+00> : vector<8x324xf32>
    %179 = tpu.matmul %177, %178, %cst_231 {dimension_numbers = #tpu.dot_dimension_numbers<[1], [0], [0], [1], [0, 0, 1, 1], [], []>} : vector<8x3xf32>, vector<3x324xf32>, vector<8x324xf32> -> vector<8x324xf32>
    %180 = arith.addf %175, %179 : vector<8x324xf32>
    %c1_232 = arith.constant 1 : index
    %c1_233 = arith.constant 1 : index
    %c0_234 = arith.constant 0 : index
    %c0_235 = arith.constant 0 : index
    %181 = vector.load %arg7[%c1_232, %c1_233, %c0_234, %c0_235] : memref<3x3x8x3xf32, #tpu.memory_space<vmem>>, vector<1x1x8x3xf32>
    %182 = vector.shape_cast %181 : vector<1x1x8x3xf32> to vector<8x3xf32>
    %c0_236 = arith.constant 0 : index
    %c19_237 = arith.constant 19 : index
    %183 = vector.load %arg21[%c0_236, %c19_237] : memref<3x384xf32, #tpu.memory_space<vmem>>, vector<3x324xf32>
    %cst_238 = arith.constant dense<0.000000e+00> : vector<8x324xf32>
    %184 = tpu.matmul %182, %183, %cst_238 {dimension_numbers = #tpu.dot_dimension_numbers<[1], [0], [0], [1], [0, 0, 1, 1], [], []>} : vector<8x3xf32>, vector<3x324xf32>, vector<8x324xf32> -> vector<8x324xf32>
    %185 = arith.addf %180, %184 : vector<8x324xf32>
    %c1_239 = arith.constant 1 : index
    %c2_240 = arith.constant 2 : index
    %c0_241 = arith.constant 0 : index
    %c0_242 = arith.constant 0 : index
    %186 = vector.load %arg7[%c1_239, %c2_240, %c0_241, %c0_242] : memref<3x3x8x3xf32, #tpu.memory_space<vmem>>, vector<1x1x8x3xf32>
    %187 = vector.shape_cast %186 : vector<1x1x8x3xf32> to vector<8x3xf32>
    %c0_243 = arith.constant 0 : index
    %c20_244 = arith.constant 20 : index
    %188 = vector.load %arg21[%c0_243, %c20_244] : memref<3x384xf32, #tpu.memory_space<vmem>>, vector<3x324xf32>
    %cst_245 = arith.constant dense<0.000000e+00> : vector<8x324xf32>
    %189 = tpu.matmul %187, %188, %cst_245 {dimension_numbers = #tpu.dot_dimension_numbers<[1], [0], [0], [1], [0, 0, 1, 1], [], []>} : vector<8x3xf32>, vector<3x324xf32>, vector<8x324xf32> -> vector<8x324xf32>
    %190 = arith.addf %185, %189 : vector<8x324xf32>
    %c2_246 = arith.constant 2 : index
    %c0_247 = arith.constant 0 : index
    %c0_248 = arith.constant 0 : index
    %c0_249 = arith.constant 0 : index
    %191 = vector.load %arg7[%c2_246, %c0_247, %c0_248, %c0_249] : memref<3x3x8x3xf32, #tpu.memory_space<vmem>>, vector<1x1x8x3xf32>
    %192 = vector.shape_cast %191 : vector<1x1x8x3xf32> to vector<8x3xf32>
    %c0_250 = arith.constant 0 : index
    %c36_251 = arith.constant 36 : index
    %193 = vector.load %arg21[%c0_250, %c36_251] : memref<3x384xf32, #tpu.memory_space<vmem>>, vector<3x324xf32>
    %cst_252 = arith.constant dense<0.000000e+00> : vector<8x324xf32>
    %194 = tpu.matmul %192, %193, %cst_252 {dimension_numbers = #tpu.dot_dimension_numbers<[1], [0], [0], [1], [0, 0, 1, 1], [], []>} : vector<8x3xf32>, vector<3x324xf32>, vector<8x324xf32> -> vector<8x324xf32>
    %195 = arith.addf %190, %194 : vector<8x324xf32>
    %c2_253 = arith.constant 2 : index
    %c1_254 = arith.constant 1 : index
    %c0_255 = arith.constant 0 : index
    %c0_256 = arith.constant 0 : index
    %196 = vector.load %arg7[%c2_253, %c1_254, %c0_255, %c0_256] : memref<3x3x8x3xf32, #tpu.memory_space<vmem>>, vector<1x1x8x3xf32>
    %197 = vector.shape_cast %196 : vector<1x1x8x3xf32> to vector<8x3xf32>
    %c0_257 = arith.constant 0 : index
    %c37_258 = arith.constant 37 : index
    %198 = vector.load %arg21[%c0_257, %c37_258] : memref<3x384xf32, #tpu.memory_space<vmem>>, vector<3x324xf32>
    %cst_259 = arith.constant dense<0.000000e+00> : vector<8x324xf32>
    %199 = tpu.matmul %197, %198, %cst_259 {dimension_numbers = #tpu.dot_dimension_numbers<[1], [0], [0], [1], [0, 0, 1, 1], [], []>} : vector<8x3xf32>, vector<3x324xf32>, vector<8x324xf32> -> vector<8x324xf32>
    %200 = arith.addf %195, %199 : vector<8x324xf32>
    %c2_260 = arith.constant 2 : index
    %c2_261 = arith.constant 2 : index
    %c0_262 = arith.constant 0 : index
    %c0_263 = arith.constant 0 : index
    %201 = vector.load %arg7[%c2_260, %c2_261, %c0_262, %c0_263] : memref<3x3x8x3xf32, #tpu.memory_space<vmem>>, vector<1x1x8x3xf32>
    %202 = vector.shape_cast %201 : vector<1x1x8x3xf32> to vector<8x3xf32>
    %c0_264 = arith.constant 0 : index
    %c38_265 = arith.constant 38 : index
    %203 = vector.load %arg21[%c0_264, %c38_265] : memref<3x384xf32, #tpu.memory_space<vmem>>, vector<3x324xf32>
    %cst_266 = arith.constant dense<0.000000e+00> : vector<8x324xf32>
    %204 = tpu.matmul %202, %203, %cst_266 {dimension_numbers = #tpu.dot_dimension_numbers<[1], [0], [0], [1], [0, 0, 1, 1], [], []>} : vector<8x3xf32>, vector<3x324xf32>, vector<8x324xf32> -> vector<8x324xf32>
    %205 = arith.addf %200, %204 : vector<8x324xf32>
    %c0_267 = arith.constant 0 : index
    %c0_268 = arith.constant 0 : index
    %206 = vector.load %arg8[%c0_267, %c0_268] : memref<8x1xf32, #tpu.memory_space<vmem>>, vector<8x1xf32>
    %207 = vector.broadcast %206 : vector<8x1xf32> to vector<8x324xf32>
    %208 = arith.addf %205, %207 : vector<8x324xf32>
    %cst_269 = arith.constant 0.000000e+00 : f32
    %209 = vector.broadcast %cst_269 : f32 to vector<8x324xf32>
    %210 = arith.maximumf %208, %209 : vector<8x324xf32>
    %c0_270 = arith.constant 0 : index
    %c0_271 = arith.constant 0 : index
    %211 = vector.load %arg9[%c0_270, %c0_271] : memref<4x8xf32, #tpu.memory_space<vmem>>, vector<4x8xf32>
    %cst_272 = arith.constant dense<0.000000e+00> : vector<4x324xf32>
    %212 = tpu.matmul %211, %210, %cst_272 {dimension_numbers = #tpu.dot_dimension_numbers<[1], [0], [0], [1], [0, 0, 1, 1], [], []>} : vector<4x8xf32>, vector<8x324xf32>, vector<4x324xf32> -> vector<4x324xf32>
    %c0_273 = arith.constant 0 : index
    %c0_274 = arith.constant 0 : index
    %213 = vector.load %arg10[%c0_273, %c0_274] : memref<4x1xf32, #tpu.memory_space<vmem>>, vector<4x1xf32>
    %214 = vector.broadcast %213 : vector<4x1xf32> to vector<4x324xf32>
    %215 = arith.addf %212, %214 : vector<4x324xf32>
    %cst_275 = arith.constant 0.000000e+00 : f32
    %216 = vector.broadcast %cst_275 : f32 to vector<4x324xf32>
    %217 = arith.maximumf %215, %216 : vector<4x324xf32>
    %218 = vector.extract_strided_slice %159 {offsets = [0, 19], sizes = [4, 16], strides = [1, 1]} : vector<4x324xf32> to vector<4x16xf32>
    %c0_276 = arith.constant 0 : index
    %c38_277 = arith.constant 38 : index
    %219 = vector.load %arg22[%c0_276, %c38_277] : memref<8x384xf32, #tpu.memory_space<vmem>>, vector<4x16xf32>
    tpu.vector_store %arg22[%c0_276, %c38_277], %218 {strides = array<i32>} : memref<8x384xf32, #tpu.memory_space<vmem>>, vector<4x16xf32>,
    %220 = vector.extract_strided_slice %217 {offsets = [0, 19], sizes = [4, 16], strides = [1, 1]} : vector<4x324xf32> to vector<4x16xf32>
    %c4 = arith.constant 4 : index
    %c38_278 = arith.constant 38 : index
    %221 = vector.load %arg22[%c4, %c38_278] : memref<8x384xf32, #tpu.memory_space<vmem>>, vector<4x16xf32>
    tpu.vector_store %arg22[%c4, %c38_278], %220 {strides = array<i32>} : memref<8x384xf32, #tpu.memory_space<vmem>>, vector<4x16xf32>,
    %222 = vector.extract_strided_slice %159 {offsets = [0, 37], sizes = [4, 16], strides = [1, 1]} : vector<4x324xf32> to vector<4x16xf32>
    %c0_279 = arith.constant 0 : index
    %c56_280 = arith.constant 56 : index
    %223 = vector.load %arg22[%c0_279, %c56_280] : memref<8x384xf32, #tpu.memory_space<vmem>>, vector<4x16xf32>
    tpu.vector_store %arg22[%c0_279, %c56_280], %222 {strides = array<i32>} : memref<8x384xf32, #tpu.memory_space<vmem>>, vector<4x16xf32>,
    %224 = vector.extract_strided_slice %217 {offsets = [0, 37], sizes = [4, 16], strides = [1, 1]} : vector<4x324xf32> to vector<4x16xf32>
    %c4_281 = arith.constant 4 : index
    %c56_282 = arith.constant 56 : index
    %225 = vector.load %arg22[%c4_281, %c56_282] : memref<8x384xf32, #tpu.memory_space<vmem>>, vector<4x16xf32>
    tpu.vector_store %arg22[%c4_281, %c56_282], %224 {strides = array<i32>} : memref<8x384xf32, #tpu.memory_space<vmem>>, vector<4x16xf32>,
    %226 = vector.extract_strided_slice %159 {offsets = [0, 55], sizes = [4, 16], strides = [1, 1]} : vector<4x324xf32> to vector<4x16xf32>
    %c0_283 = arith.constant 0 : index
    %c74_284 = arith.constant 74 : index
    %227 = vector.load %arg22[%c0_283, %c74_284] : memref<8x384xf32, #tpu.memory_space<vmem>>, vector<4x16xf32>
    tpu.vector_store %arg22[%c0_283, %c74_284], %226 {strides = array<i32>} : memref<8x384xf32, #tpu.memory_space<vmem>>, vector<4x16xf32>,
    %228 = vector.extract_strided_slice %217 {offsets = [0, 55], sizes = [4, 16], strides = [1, 1]} : vector<4x324xf32> to vector<4x16xf32>
    %c4_285 = arith.constant 4 : index
    %c74_286 = arith.constant 74 : index
    %229 = vector.load %arg22[%c4_285, %c74_286] : memref<8x384xf32, #tpu.memory_space<vmem>>, vector<4x16xf32>
    tpu.vector_store %arg22[%c4_285, %c74_286], %228 {strides = array<i32>} : memref<8x384xf32, #tpu.memory_space<vmem>>, vector<4x16xf32>,
    %230 = vector.extract_strided_slice %159 {offsets = [0, 73], sizes = [4, 16], strides = [1, 1]} : vector<4x324xf32> to vector<4x16xf32>
    %c0_287 = arith.constant 0 : index
    %c92_288 = arith.constant 92 : index
    %231 = vector.load %arg22[%c0_287, %c92_288] : memref<8x384xf32, #tpu.memory_space<vmem>>, vector<4x16xf32>
    tpu.vector_store %arg22[%c0_287, %c92_288], %230 {strides = array<i32>} : memref<8x384xf32, #tpu.memory_space<vmem>>, vector<4x16xf32>,
    %232 = vector.extract_strided_slice %217 {offsets = [0, 73], sizes = [4, 16], strides = [1, 1]} : vector<4x324xf32> to vector<4x16xf32>
    %c4_289 = arith.constant 4 : index
    %c92_290 = arith.constant 92 : index
    %233 = vector.load %arg22[%c4_289, %c92_290] : memref<8x384xf32, #tpu.memory_space<vmem>>, vector<4x16xf32>
    tpu.vector_store %arg22[%c4_289, %c92_290], %232 {strides = array<i32>} : memref<8x384xf32, #tpu.memory_space<vmem>>, vector<4x16xf32>,
    %234 = vector.extract_strided_slice %159 {offsets = [0, 91], sizes = [4, 16], strides = [1, 1]} : vector<4x324xf32> to vector<4x16xf32>
    %c0_291 = arith.constant 0 : index
    %c110_292 = arith.constant 110 : index
    %235 = vector.load %arg22[%c0_291, %c110_292] : memref<8x384xf32, #tpu.memory_space<vmem>>, vector<4x16xf32>
    tpu.vector_store %arg22[%c0_291, %c110_292], %234 {strides = array<i32>} : memref<8x384xf32, #tpu.memory_space<vmem>>, vector<4x16xf32>,
    %236 = vector.extract_strided_slice %217 {offsets = [0, 91], sizes = [4, 16], strides = [1, 1]} : vector<4x324xf32> to vector<4x16xf32>
    %c4_293 = arith.constant 4 : index
    %c110_294 = arith.constant 110 : index
    %237 = vector.load %arg22[%c4_293, %c110_294] : memref<8x384xf32, #tpu.memory_space<vmem>>, vector<4x16xf32>
    tpu.vector_store %arg22[%c4_293, %c110_294], %236 {strides = array<i32>} : memref<8x384xf32, #tpu.memory_space<vmem>>, vector<4x16xf32>,
    %238 = vector.extract_strided_slice %159 {offsets = [0, 109], sizes = [4, 16], strides = [1, 1]} : vector<4x324xf32> to vector<4x16xf32>
    %c0_295 = arith.constant 0 : index
    %c128_296 = arith.constant 128 : index
    %239 = vector.load %arg22[%c0_295, %c128_296] : memref<8x384xf32, #tpu.memory_space<vmem>>, vector<4x16xf32>
    tpu.vector_store %arg22[%c0_295, %c128_296], %238 {strides = array<i32>} : memref<8x384xf32, #tpu.memory_space<vmem>>, vector<4x16xf32>,
    %240 = vector.extract_strided_slice %217 {offsets = [0, 109], sizes = [4, 16], strides = [1, 1]} : vector<4x324xf32> to vector<4x16xf32>
    %c4_297 = arith.constant 4 : index
    %c128_298 = arith.constant 128 : index
    %241 = vector.load %arg22[%c4_297, %c128_298] : memref<8x384xf32, #tpu.memory_space<vmem>>, vector<4x16xf32>
    tpu.vector_store %arg22[%c4_297, %c128_298], %240 {strides = array<i32>} : memref<8x384xf32, #tpu.memory_space<vmem>>, vector<4x16xf32>,
    %242 = vector.extract_strided_slice %159 {offsets = [0, 127], sizes = [4, 16], strides = [1, 1]} : vector<4x324xf32> to vector<4x16xf32>
    %c0_299 = arith.constant 0 : index
    %c146_300 = arith.constant 146 : index
    %243 = vector.load %arg22[%c0_299, %c146_300] : memref<8x384xf32, #tpu.memory_space<vmem>>, vector<4x16xf32>
    tpu.vector_store %arg22[%c0_299, %c146_300], %242 {strides = array<i32>} : memref<8x384xf32, #tpu.memory_space<vmem>>, vector<4x16xf32>,
    %244 = vector.extract_strided_slice %217 {offsets = [0, 127], sizes = [4, 16], strides = [1, 1]} : vector<4x324xf32> to vector<4x16xf32>
    %c4_301 = arith.constant 4 : index
    %c146_302 = arith.constant 146 : index
    %245 = vector.load %arg22[%c4_301, %c146_302] : memref<8x384xf32, #tpu.memory_space<vmem>>, vector<4x16xf32>
    tpu.vector_store %arg22[%c4_301, %c146_302], %244 {strides = array<i32>} : memref<8x384xf32, #tpu.memory_space<vmem>>, vector<4x16xf32>,
    %246 = vector.extract_strided_slice %159 {offsets = [0, 145], sizes = [4, 16], strides = [1, 1]} : vector<4x324xf32> to vector<4x16xf32>
    %c0_303 = arith.constant 0 : index
    %c164_304 = arith.constant 164 : index
    %247 = vector.load %arg22[%c0_303, %c164_304] : memref<8x384xf32, #tpu.memory_space<vmem>>, vector<4x16xf32>
    tpu.vector_store %arg22[%c0_303, %c164_304], %246 {strides = array<i32>} : memref<8x384xf32, #tpu.memory_space<vmem>>, vector<4x16xf32>,
    %248 = vector.extract_strided_slice %217 {offsets = [0, 145], sizes = [4, 16], strides = [1, 1]} : vector<4x324xf32> to vector<4x16xf32>
    %c4_305 = arith.constant 4 : index
    %c164_306 = arith.constant 164 : index
    %249 = vector.load %arg22[%c4_305, %c164_306] : memref<8x384xf32, #tpu.memory_space<vmem>>, vector<4x16xf32>
    tpu.vector_store %arg22[%c4_305, %c164_306], %248 {strides = array<i32>} : memref<8x384xf32, #tpu.memory_space<vmem>>, vector<4x16xf32>,
    %250 = vector.extract_strided_slice %159 {offsets = [0, 163], sizes = [4, 16], strides = [1, 1]} : vector<4x324xf32> to vector<4x16xf32>
    %c0_307 = arith.constant 0 : index
    %c182_308 = arith.constant 182 : index
    %251 = vector.load %arg22[%c0_307, %c182_308] : memref<8x384xf32, #tpu.memory_space<vmem>>, vector<4x16xf32>
    tpu.vector_store %arg22[%c0_307, %c182_308], %250 {strides = array<i32>} : memref<8x384xf32, #tpu.memory_space<vmem>>, vector<4x16xf32>,
    %252 = vector.extract_strided_slice %217 {offsets = [0, 163], sizes = [4, 16], strides = [1, 1]} : vector<4x324xf32> to vector<4x16xf32>
    %c4_309 = arith.constant 4 : index
    %c182_310 = arith.constant 182 : index
    %253 = vector.load %arg22[%c4_309, %c182_310] : memref<8x384xf32, #tpu.memory_space<vmem>>, vector<4x16xf32>
    tpu.vector_store %arg22[%c4_309, %c182_310], %252 {strides = array<i32>} : memref<8x384xf32, #tpu.memory_space<vmem>>, vector<4x16xf32>,
    %254 = vector.extract_strided_slice %159 {offsets = [0, 181], sizes = [4, 16], strides = [1, 1]} : vector<4x324xf32> to vector<4x16xf32>
    %c0_311 = arith.constant 0 : index
    %c200_312 = arith.constant 200 : index
    %255 = vector.load %arg22[%c0_311, %c200_312] : memref<8x384xf32, #tpu.memory_space<vmem>>, vector<4x16xf32>
    tpu.vector_store %arg22[%c0_311, %c200_312], %254 {strides = array<i32>} : memref<8x384xf32, #tpu.memory_space<vmem>>, vector<4x16xf32>,
    %256 = vector.extract_strided_slice %217 {offsets = [0, 181], sizes = [4, 16], strides = [1, 1]} : vector<4x324xf32> to vector<4x16xf32>
    %c4_313 = arith.constant 4 : index
    %c200_314 = arith.constant 200 : index
    %257 = vector.load %arg22[%c4_313, %c200_314] : memref<8x384xf32, #tpu.memory_space<vmem>>, vector<4x16xf32>
    tpu.vector_store %arg22[%c4_313, %c200_314], %256 {strides = array<i32>} : memref<8x384xf32, #tpu.memory_space<vmem>>, vector<4x16xf32>,
    %258 = vector.extract_strided_slice %159 {offsets = [0, 199], sizes = [4, 16], strides = [1, 1]} : vector<4x324xf32> to vector<4x16xf32>
    %c0_315 = arith.constant 0 : index
    %c218_316 = arith.constant 218 : index
    %259 = vector.load %arg22[%c0_315, %c218_316] : memref<8x384xf32, #tpu.memory_space<vmem>>, vector<4x16xf32>
    tpu.vector_store %arg22[%c0_315, %c218_316], %258 {strides = array<i32>} : memref<8x384xf32, #tpu.memory_space<vmem>>, vector<4x16xf32>,
    %260 = vector.extract_strided_slice %217 {offsets = [0, 199], sizes = [4, 16], strides = [1, 1]} : vector<4x324xf32> to vector<4x16xf32>
    %c4_317 = arith.constant 4 : index
    %c218_318 = arith.constant 218 : index
    %261 = vector.load %arg22[%c4_317, %c218_318] : memref<8x384xf32, #tpu.memory_space<vmem>>, vector<4x16xf32>
    tpu.vector_store %arg22[%c4_317, %c218_318], %260 {strides = array<i32>} : memref<8x384xf32, #tpu.memory_space<vmem>>, vector<4x16xf32>,
    %262 = vector.extract_strided_slice %159 {offsets = [0, 217], sizes = [4, 16], strides = [1, 1]} : vector<4x324xf32> to vector<4x16xf32>
    %c0_319 = arith.constant 0 : index
    %c236_320 = arith.constant 236 : index
    %263 = vector.load %arg22[%c0_319, %c236_320] : memref<8x384xf32, #tpu.memory_space<vmem>>, vector<4x16xf32>
    tpu.vector_store %arg22[%c0_319, %c236_320], %262 {strides = array<i32>} : memref<8x384xf32, #tpu.memory_space<vmem>>, vector<4x16xf32>,
    %264 = vector.extract_strided_slice %217 {offsets = [0, 217], sizes = [4, 16], strides = [1, 1]} : vector<4x324xf32> to vector<4x16xf32>
    %c4_321 = arith.constant 4 : index
    %c236_322 = arith.constant 236 : index
    %265 = vector.load %arg22[%c4_321, %c236_322] : memref<8x384xf32, #tpu.memory_space<vmem>>, vector<4x16xf32>
    tpu.vector_store %arg22[%c4_321, %c236_322], %264 {strides = array<i32>} : memref<8x384xf32, #tpu.memory_space<vmem>>, vector<4x16xf32>,
    %266 = vector.extract_strided_slice %159 {offsets = [0, 235], sizes = [4, 16], strides = [1, 1]} : vector<4x324xf32> to vector<4x16xf32>
    %c0_323 = arith.constant 0 : index
    %c254_324 = arith.constant 254 : index
    %267 = vector.load %arg22[%c0_323, %c254_324] : memref<8x384xf32, #tpu.memory_space<vmem>>, vector<4x16xf32>
    tpu.vector_store %arg22[%c0_323, %c254_324], %266 {strides = array<i32>} : memref<8x384xf32, #tpu.memory_space<vmem>>, vector<4x16xf32>,
    %268 = vector.extract_strided_slice %217 {offsets = [0, 235], sizes = [4, 16], strides = [1, 1]} : vector<4x324xf32> to vector<4x16xf32>
    %c4_325 = arith.constant 4 : index
    %c254_326 = arith.constant 254 : index
    %269 = vector.load %arg22[%c4_325, %c254_326] : memref<8x384xf32, #tpu.memory_space<vmem>>, vector<4x16xf32>
    tpu.vector_store %arg22[%c4_325, %c254_326], %268 {strides = array<i32>} : memref<8x384xf32, #tpu.memory_space<vmem>>, vector<4x16xf32>,
    %270 = vector.extract_strided_slice %159 {offsets = [0, 253], sizes = [4, 16], strides = [1, 1]} : vector<4x324xf32> to vector<4x16xf32>
    %c0_327 = arith.constant 0 : index
    %c272_328 = arith.constant 272 : index
    %271 = vector.load %arg22[%c0_327, %c272_328] : memref<8x384xf32, #tpu.memory_space<vmem>>, vector<4x16xf32>
    tpu.vector_store %arg22[%c0_327, %c272_328], %270 {strides = array<i32>} : memref<8x384xf32, #tpu.memory_space<vmem>>, vector<4x16xf32>,
    %272 = vector.extract_strided_slice %217 {offsets = [0, 253], sizes = [4, 16], strides = [1, 1]} : vector<4x324xf32> to vector<4x16xf32>
    %c4_329 = arith.constant 4 : index
    %c272_330 = arith.constant 272 : index
    %273 = vector.load %arg22[%c4_329, %c272_330] : memref<8x384xf32, #tpu.memory_space<vmem>>, vector<4x16xf32>
    tpu.vector_store %arg22[%c4_329, %c272_330], %272 {strides = array<i32>} : memref<8x384xf32, #tpu.memory_space<vmem>>, vector<4x16xf32>,
    %274 = vector.extract_strided_slice %159 {offsets = [0, 271], sizes = [4, 16], strides = [1, 1]} : vector<4x324xf32> to vector<4x16xf32>
    %c0_331 = arith.constant 0 : index
    %c290_332 = arith.constant 290 : index
    %275 = vector.load %arg22[%c0_331, %c290_332] : memref<8x384xf32, #tpu.memory_space<vmem>>, vector<4x16xf32>
    tpu.vector_store %arg22[%c0_331, %c290_332], %274 {strides = array<i32>} : memref<8x384xf32, #tpu.memory_space<vmem>>, vector<4x16xf32>,
    %276 = vector.extract_strided_slice %217 {offsets = [0, 271], sizes = [4, 16], strides = [1, 1]} : vector<4x324xf32> to vector<4x16xf32>
    %c4_333 = arith.constant 4 : index
    %c290_334 = arith.constant 290 : index
    %277 = vector.load %arg22[%c4_333, %c290_334] : memref<8x384xf32, #tpu.memory_space<vmem>>, vector<4x16xf32>
    tpu.vector_store %arg22[%c4_333, %c290_334], %276 {strides = array<i32>} : memref<8x384xf32, #tpu.memory_space<vmem>>, vector<4x16xf32>,
    %278 = vector.extract_strided_slice %159 {offsets = [0, 289], sizes = [4, 16], strides = [1, 1]} : vector<4x324xf32> to vector<4x16xf32>
    %c0_335 = arith.constant 0 : index
    %c308_336 = arith.constant 308 : index
    %279 = vector.load %arg22[%c0_335, %c308_336] : memref<8x384xf32, #tpu.memory_space<vmem>>, vector<4x16xf32>
    tpu.vector_store %arg22[%c0_335, %c308_336], %278 {strides = array<i32>} : memref<8x384xf32, #tpu.memory_space<vmem>>, vector<4x16xf32>,
    %280 = vector.extract_strided_slice %217 {offsets = [0, 289], sizes = [4, 16], strides = [1, 1]} : vector<4x324xf32> to vector<4x16xf32>
    %c4_337 = arith.constant 4 : index
    %c308_338 = arith.constant 308 : index
    %281 = vector.load %arg22[%c4_337, %c308_338] : memref<8x384xf32, #tpu.memory_space<vmem>>, vector<4x16xf32>
    tpu.vector_store %arg22[%c4_337, %c308_338], %280 {strides = array<i32>} : memref<8x384xf32, #tpu.memory_space<vmem>>, vector<4x16xf32>,
    %c0_339 = arith.constant 0 : index
    %c19_340 = arith.constant 19 : index
    %282 = vector.load %arg22[%c0_339, %c19_340] : memref<8x384xf32, #tpu.memory_space<vmem>>, vector<8x324xf32>
    %cst_341 = arith.constant dense<0.000000e+00> : vector<8xf32>
    %283 = vector.multi_reduction <add>, %282, %cst_341 [1] : vector<8x324xf32> to vector<8xf32>
    %284 = vector.shape_cast %283 : vector<8xf32> to vector<8x1xf32>
    %cst_342 = arith.constant 3.906250e-03 : f32
    %285 = vector.broadcast %cst_342 : f32 to vector<8x1xf32>
    %286 = arith.mulf %284, %285 : vector<8x1xf32>
    %287 = vector.shape_cast %286 : vector<8x1xf32> to vector<8x1xf32>
    %288 = vector.broadcast %287 : vector<8x1xf32> to vector<8x8xf32>
    %c0_343 = arith.constant 0 : index
    %c0_344 = arith.constant 0 : index
    %289 = vector.load %arg11[%c0_343, %c0_344] : memref<8x8xf32, #tpu.memory_space<vmem>>, vector<8x8xf32>
    %cst_345 = arith.constant dense<0.000000e+00> : vector<8x8xf32>
    %290 = tpu.matmul %289, %288, %cst_345 {dimension_numbers = #tpu.dot_dimension_numbers<[1], [0], [0], [1], [0, 0, 1, 1], [], []>} : vector<8x8xf32>, vector<8x8xf32>, vector<8x8xf32> -> vector<8x8xf32>
    %cst_346 = arith.constant 0.000000e+00 : f32
    %291 = vector.broadcast %cst_346 : f32 to vector<8x8xf32>
    %292 = arith.maximumf %290, %291 : vector<8x8xf32>
    %c0_347 = arith.constant 0 : index
    %c0_348 = arith.constant 0 : index
    %293 = vector.load %arg12[%c0_347, %c0_348] : memref<8x8xf32, #tpu.memory_space<vmem>>, vector<8x8xf32>
    %cst_349 = arith.constant dense<0.000000e+00> : vector<8x8xf32>
    %294 = tpu.matmul %293, %292, %cst_349 {dimension_numbers = #tpu.dot_dimension_numbers<[1], [0], [0], [1], [0, 0, 1, 1], [], []>} : vector<8x8xf32>, vector<8x8xf32>, vector<8x8xf32> -> vector<8x8xf32>
    %295 = arith.negf %294 : vector<8x8xf32>
    %296 = math.exp %295 : vector<8x8xf32>
    %cst_350 = arith.constant 1.000000e+00 : f32
    %297 = vector.broadcast %cst_350 : f32 to vector<8x8xf32>
    %298 = arith.addf %297, %296 : vector<8x8xf32>
    %299 = arith.divf %297, %298 : vector<8x8xf32>
    %300 = vector.extract_strided_slice %299 {offsets = [0, 0], sizes = [8, 1], strides = [1, 1]} : vector<8x8xf32> to vector<8x1xf32>
    %c0_351 = arith.constant 0 : index
    %c0_352 = arith.constant 0 : index
    %301 = vector.load %arg22[%c0_351, %c0_352] : memref<8x384xf32, #tpu.memory_space<vmem>>, vector<8x384xf32>
    %302 = vector.broadcast %300 : vector<8x1xf32> to vector<8x384xf32>
    %303 = arith.mulf %301, %302 : vector<8x384xf32>
    %c0_353 = arith.constant 0 : index
    %c0_354 = arith.constant 0 : index
    %304 = vector.load %arg22[%c0_353, %c0_354] : memref<8x384xf32, #tpu.memory_space<vmem>>, vector<8x384xf32>
    tpu.vector_store %arg22[%c0_353, %c0_354], %303 {strides = array<i32>} : memref<8x384xf32, #tpu.memory_space<vmem>>, vector<8x384xf32>,
    %cst_355 = arith.constant 0.000000e+00 : f32
    %305 = vector.broadcast %cst_355 : f32 to vector<8x324xf32>
    %c0_356 = arith.constant 0 : index
    %c0_357 = arith.constant 0 : index
    %c0_358 = arith.constant 0 : index
    %c0_359 = arith.constant 0 : index
    %306 = vector.load %arg13[%c0_356, %c0_357, %c0_358, %c0_359] : memref<3x3x8x8xf32, #tpu.memory_space<vmem>>, vector<1x1x8x8xf32>
    %307 = vector.shape_cast %306 : vector<1x1x8x8xf32> to vector<8x8xf32>
    %c0_360 = arith.constant 0 : index
    %c0_361 = arith.constant 0 : index
    %308 = vector.load %arg22[%c0_360, %c0_361] : memref<8x384xf32, #tpu.memory_space<vmem>>, vector<8x324xf32>
    %cst_362 = arith.constant dense<0.000000e+00> : vector<8x324xf32>
    %309 = tpu.matmul %307, %308, %cst_362 {dimension_numbers = #tpu.dot_dimension_numbers<[1], [0], [0], [1], [0, 0, 1, 1], [], []>} : vector<8x8xf32>, vector<8x324xf32>, vector<8x324xf32> -> vector<8x324xf32>
    %310 = arith.addf %305, %309 : vector<8x324xf32>
    %c0_363 = arith.constant 0 : index
    %c1_364 = arith.constant 1 : index
    %c0_365 = arith.constant 0 : index
    %c0_366 = arith.constant 0 : index
    %311 = vector.load %arg13[%c0_363, %c1_364, %c0_365, %c0_366] : memref<3x3x8x8xf32, #tpu.memory_space<vmem>>, vector<1x1x8x8xf32>
    %312 = vector.shape_cast %311 : vector<1x1x8x8xf32> to vector<8x8xf32>
    %c0_367 = arith.constant 0 : index
    %c1_368 = arith.constant 1 : index
    %313 = vector.load %arg22[%c0_367, %c1_368] : memref<8x384xf32, #tpu.memory_space<vmem>>, vector<8x324xf32>
    %cst_369 = arith.constant dense<0.000000e+00> : vector<8x324xf32>
    %314 = tpu.matmul %312, %313, %cst_369 {dimension_numbers = #tpu.dot_dimension_numbers<[1], [0], [0], [1], [0, 0, 1, 1], [], []>} : vector<8x8xf32>, vector<8x324xf32>, vector<8x324xf32> -> vector<8x324xf32>
    %315 = arith.addf %310, %314 : vector<8x324xf32>
    %c0_370 = arith.constant 0 : index
    %c2_371 = arith.constant 2 : index
    %c0_372 = arith.constant 0 : index
    %c0_373 = arith.constant 0 : index
    %316 = vector.load %arg13[%c0_370, %c2_371, %c0_372, %c0_373] : memref<3x3x8x8xf32, #tpu.memory_space<vmem>>, vector<1x1x8x8xf32>
    %317 = vector.shape_cast %316 : vector<1x1x8x8xf32> to vector<8x8xf32>
    %c0_374 = arith.constant 0 : index
    %c2_375 = arith.constant 2 : index
    %318 = vector.load %arg22[%c0_374, %c2_375] : memref<8x384xf32, #tpu.memory_space<vmem>>, vector<8x324xf32>
    %cst_376 = arith.constant dense<0.000000e+00> : vector<8x324xf32>
    %319 = tpu.matmul %317, %318, %cst_376 {dimension_numbers = #tpu.dot_dimension_numbers<[1], [0], [0], [1], [0, 0, 1, 1], [], []>} : vector<8x8xf32>, vector<8x324xf32>, vector<8x324xf32> -> vector<8x324xf32>
    %320 = arith.addf %315, %319 : vector<8x324xf32>
    %c1_377 = arith.constant 1 : index
    %c0_378 = arith.constant 0 : index
    %c0_379 = arith.constant 0 : index
    %c0_380 = arith.constant 0 : index
    %321 = vector.load %arg13[%c1_377, %c0_378, %c0_379, %c0_380] : memref<3x3x8x8xf32, #tpu.memory_space<vmem>>, vector<1x1x8x8xf32>
    %322 = vector.shape_cast %321 : vector<1x1x8x8xf32> to vector<8x8xf32>
    %c0_381 = arith.constant 0 : index
    %c18_382 = arith.constant 18 : index
    %323 = vector.load %arg22[%c0_381, %c18_382] : memref<8x384xf32, #tpu.memory_space<vmem>>, vector<8x324xf32>
    %cst_383 = arith.constant dense<0.000000e+00> : vector<8x324xf32>
    %324 = tpu.matmul %322, %323, %cst_383 {dimension_numbers = #tpu.dot_dimension_numbers<[1], [0], [0], [1], [0, 0, 1, 1], [], []>} : vector<8x8xf32>, vector<8x324xf32>, vector<8x324xf32> -> vector<8x324xf32>
    %325 = arith.addf %320, %324 : vector<8x324xf32>
    %c1_384 = arith.constant 1 : index
    %c1_385 = arith.constant 1 : index
    %c0_386 = arith.constant 0 : index
    %c0_387 = arith.constant 0 : index
    %326 = vector.load %arg13[%c1_384, %c1_385, %c0_386, %c0_387] : memref<3x3x8x8xf32, #tpu.memory_space<vmem>>, vector<1x1x8x8xf32>
    %327 = vector.shape_cast %326 : vector<1x1x8x8xf32> to vector<8x8xf32>
    %c0_388 = arith.constant 0 : index
    %c19_389 = arith.constant 19 : index
    %328 = vector.load %arg22[%c0_388, %c19_389] : memref<8x384xf32, #tpu.memory_space<vmem>>, vector<8x324xf32>
    %cst_390 = arith.constant dense<0.000000e+00> : vector<8x324xf32>
    %329 = tpu.matmul %327, %328, %cst_390 {dimension_numbers = #tpu.dot_dimension_numbers<[1], [0], [0], [1], [0, 0, 1, 1], [], []>} : vector<8x8xf32>, vector<8x324xf32>, vector<8x324xf32> -> vector<8x324xf32>
    %330 = arith.addf %325, %329 : vector<8x324xf32>
    %c1_391 = arith.constant 1 : index
    %c2_392 = arith.constant 2 : index
    %c0_393 = arith.constant 0 : index
    %c0_394 = arith.constant 0 : index
    %331 = vector.load %arg13[%c1_391, %c2_392, %c0_393, %c0_394] : memref<3x3x8x8xf32, #tpu.memory_space<vmem>>, vector<1x1x8x8xf32>
    %332 = vector.shape_cast %331 : vector<1x1x8x8xf32> to vector<8x8xf32>
    %c0_395 = arith.constant 0 : index
    %c20_396 = arith.constant 20 : index
    %333 = vector.load %arg22[%c0_395, %c20_396] : memref<8x384xf32, #tpu.memory_space<vmem>>, vector<8x324xf32>
    %cst_397 = arith.constant dense<0.000000e+00> : vector<8x324xf32>
    %334 = tpu.matmul %332, %333, %cst_397 {dimension_numbers = #tpu.dot_dimension_numbers<[1], [0], [0], [1], [0, 0, 1, 1], [], []>} : vector<8x8xf32>, vector<8x324xf32>, vector<8x324xf32> -> vector<8x324xf32>
    %335 = arith.addf %330, %334 : vector<8x324xf32>
    %c2_398 = arith.constant 2 : index
    %c0_399 = arith.constant 0 : index
    %c0_400 = arith.constant 0 : index
    %c0_401 = arith.constant 0 : index
    %336 = vector.load %arg13[%c2_398, %c0_399, %c0_400, %c0_401] : memref<3x3x8x8xf32, #tpu.memory_space<vmem>>, vector<1x1x8x8xf32>
    %337 = vector.shape_cast %336 : vector<1x1x8x8xf32> to vector<8x8xf32>
    %c0_402 = arith.constant 0 : index
    %c36_403 = arith.constant 36 : index
    %338 = vector.load %arg22[%c0_402, %c36_403] : memref<8x384xf32, #tpu.memory_space<vmem>>, vector<8x324xf32>
    %cst_404 = arith.constant dense<0.000000e+00> : vector<8x324xf32>
    %339 = tpu.matmul %337, %338, %cst_404 {dimension_numbers = #tpu.dot_dimension_numbers<[1], [0], [0], [1], [0, 0, 1, 1], [], []>} : vector<8x8xf32>, vector<8x324xf32>, vector<8x324xf32> -> vector<8x324xf32>
    %340 = arith.addf %335, %339 : vector<8x324xf32>
    %c2_405 = arith.constant 2 : index
    %c1_406 = arith.constant 1 : index
    %c0_407 = arith.constant 0 : index
    %c0_408 = arith.constant 0 : index
    %341 = vector.load %arg13[%c2_405, %c1_406, %c0_407, %c0_408] : memref<3x3x8x8xf32, #tpu.memory_space<vmem>>, vector<1x1x8x8xf32>
    %342 = vector.shape_cast %341 : vector<1x1x8x8xf32> to vector<8x8xf32>
    %c0_409 = arith.constant 0 : index
    %c37_410 = arith.constant 37 : index
    %343 = vector.load %arg22[%c0_409, %c37_410] : memref<8x384xf32, #tpu.memory_space<vmem>>, vector<8x324xf32>
    %cst_411 = arith.constant dense<0.000000e+00> : vector<8x324xf32>
    %344 = tpu.matmul %342, %343, %cst_411 {dimension_numbers = #tpu.dot_dimension_numbers<[1], [0], [0], [1], [0, 0, 1, 1], [], []>} : vector<8x8xf32>, vector<8x324xf32>, vector<8x324xf32> -> vector<8x324xf32>
    %345 = arith.addf %340, %344 : vector<8x324xf32>
    %c2_412 = arith.constant 2 : index
    %c2_413 = arith.constant 2 : index
    %c0_414 = arith.constant 0 : index
    %c0_415 = arith.constant 0 : index
    %346 = vector.load %arg13[%c2_412, %c2_413, %c0_414, %c0_415] : memref<3x3x8x8xf32, #tpu.memory_space<vmem>>, vector<1x1x8x8xf32>
    %347 = vector.shape_cast %346 : vector<1x1x8x8xf32> to vector<8x8xf32>
    %c0_416 = arith.constant 0 : index
    %c38_417 = arith.constant 38 : index
    %348 = vector.load %arg22[%c0_416, %c38_417] : memref<8x384xf32, #tpu.memory_space<vmem>>, vector<8x324xf32>
    %cst_418 = arith.constant dense<0.000000e+00> : vector<8x324xf32>
    %349 = tpu.matmul %347, %348, %cst_418 {dimension_numbers = #tpu.dot_dimension_numbers<[1], [0], [0], [1], [0, 0, 1, 1], [], []>} : vector<8x8xf32>, vector<8x324xf32>, vector<8x324xf32> -> vector<8x324xf32>
    %350 = arith.addf %345, %349 : vector<8x324xf32>
    %c0_419 = arith.constant 0 : index
    %c0_420 = arith.constant 0 : index
    %351 = vector.load %arg14[%c0_419, %c0_420] : memref<8x1xf32, #tpu.memory_space<vmem>>, vector<8x1xf32>
    %352 = vector.broadcast %351 : vector<8x1xf32> to vector<8x324xf32>
    %353 = arith.addf %350, %352 : vector<8x324xf32>
    %cst_421 = arith.constant 0.000000e+00 : f32
    %354 = vector.broadcast %cst_421 : f32 to vector<8x324xf32>
    %355 = arith.maximumf %353, %354 : vector<8x324xf32>
    %c0_422 = arith.constant 0 : index
    %c0_423 = arith.constant 0 : index
    %356 = vector.load %arg15[%c0_422, %c0_423] : memref<4x8xf32, #tpu.memory_space<vmem>>, vector<4x8xf32>
    %cst_424 = arith.constant dense<0.000000e+00> : vector<4x324xf32>
    %357 = tpu.matmul %356, %355, %cst_424 {dimension_numbers = #tpu.dot_dimension_numbers<[1], [0], [0], [1], [0, 0, 1, 1], [], []>} : vector<4x8xf32>, vector<8x324xf32>, vector<4x324xf32> -> vector<4x324xf32>
    %c0_425 = arith.constant 0 : index
    %c0_426 = arith.constant 0 : index
    %358 = vector.load %arg16[%c0_425, %c0_426] : memref<4x1xf32, #tpu.memory_space<vmem>>, vector<4x1xf32>
    %359 = vector.broadcast %358 : vector<4x1xf32> to vector<4x324xf32>
    %360 = arith.addf %357, %359 : vector<4x324xf32>
    %cst_427 = arith.constant 0.000000e+00 : f32
    %361 = vector.broadcast %cst_427 : f32 to vector<4x324xf32>
    %362 = arith.maximumf %360, %361 : vector<4x324xf32>
    %c0_428 = arith.constant 0 : index
    %c19_429 = arith.constant 19 : index
    %363 = vector.load %arg20[%c0_428, %c19_429] : memref<4x384xf32, #tpu.memory_space<vmem>>, vector<4x324xf32>
    %364 = arith.addf %362, %363 : vector<4x324xf32>
    %c0_430 = arith.constant 0 : index
    %c0_431 = arith.constant 0 : index
    %365 = vector.load %arg17[%c0_430, %c0_431] : memref<4x4xf32, #tpu.memory_space<vmem>>, vector<4x4xf32>
    %cst_432 = arith.constant dense<0.000000e+00> : vector<4x324xf32>
    %366 = tpu.matmul %365, %364, %cst_432 {dimension_numbers = #tpu.dot_dimension_numbers<[1], [0], [0], [1], [0, 0, 1, 1], [], []>} : vector<4x4xf32>, vector<4x324xf32>, vector<4x324xf32> -> vector<4x324xf32>
    %c0_433 = arith.constant 0 : index
    %c0_434 = arith.constant 0 : index
    %367 = vector.load %arg18[%c0_433, %c0_434] : memref<4x1xf32, #tpu.memory_space<vmem>>, vector<4x1xf32>
    %368 = vector.broadcast %367 : vector<4x1xf32> to vector<4x324xf32>
    %369 = arith.addf %366, %368 : vector<4x324xf32>
    %370 = vector.extract_strided_slice %369 {offsets = [0, 19], sizes = [4, 16], strides = [1, 1]} : vector<4x324xf32> to vector<4x16xf32>
    %c0_435 = arith.constant 0 : index
    %c0_436 = arith.constant 0 : index
    %c0_437 = arith.constant 0 : index
    %371 = vector.load %arg19[%c0_435, %c0_436, %c0_437] : memref<1x4x256xf32, #tpu.memory_space<vmem>>, vector<1x4x16xf32>
    %372 = vector.shape_cast %371 : vector<1x4x16xf32> to vector<4x16xf32>
    %373 = vector.shape_cast %370 : vector<4x16xf32> to vector<1x4x16xf32>
    tpu.vector_store %arg19[%c0_435, %c0_436, %c0_437], %373 {strides = array<i32>} : memref<1x4x256xf32, #tpu.memory_space<vmem>>, vector<1x4x16xf32>,
    %374 = vector.extract_strided_slice %369 {offsets = [0, 37], sizes = [4, 16], strides = [1, 1]} : vector<4x324xf32> to vector<4x16xf32>
    %c0_438 = arith.constant 0 : index
    %c0_439 = arith.constant 0 : index
    %c16_440 = arith.constant 16 : index
    %375 = vector.load %arg19[%c0_438, %c0_439, %c16_440] : memref<1x4x256xf32, #tpu.memory_space<vmem>>, vector<1x4x16xf32>
    %376 = vector.shape_cast %375 : vector<1x4x16xf32> to vector<4x16xf32>
    %377 = vector.shape_cast %374 : vector<4x16xf32> to vector<1x4x16xf32>
    tpu.vector_store %arg19[%c0_438, %c0_439, %c16_440], %377 {strides = array<i32>} : memref<1x4x256xf32, #tpu.memory_space<vmem>>, vector<1x4x16xf32>,
    %378 = vector.extract_strided_slice %369 {offsets = [0, 55], sizes = [4, 16], strides = [1, 1]} : vector<4x324xf32> to vector<4x16xf32>
    %c0_441 = arith.constant 0 : index
    %c0_442 = arith.constant 0 : index
    %c32_443 = arith.constant 32 : index
    %379 = vector.load %arg19[%c0_441, %c0_442, %c32_443] : memref<1x4x256xf32, #tpu.memory_space<vmem>>, vector<1x4x16xf32>
    %380 = vector.shape_cast %379 : vector<1x4x16xf32> to vector<4x16xf32>
    %381 = vector.shape_cast %378 : vector<4x16xf32> to vector<1x4x16xf32>
    tpu.vector_store %arg19[%c0_441, %c0_442, %c32_443], %381 {strides = array<i32>} : memref<1x4x256xf32, #tpu.memory_space<vmem>>, vector<1x4x16xf32>,
    %382 = vector.extract_strided_slice %369 {offsets = [0, 73], sizes = [4, 16], strides = [1, 1]} : vector<4x324xf32> to vector<4x16xf32>
    %c0_444 = arith.constant 0 : index
    %c0_445 = arith.constant 0 : index
    %c48_446 = arith.constant 48 : index
    %383 = vector.load %arg19[%c0_444, %c0_445, %c48_446] : memref<1x4x256xf32, #tpu.memory_space<vmem>>, vector<1x4x16xf32>
    %384 = vector.shape_cast %383 : vector<1x4x16xf32> to vector<4x16xf32>
    %385 = vector.shape_cast %382 : vector<4x16xf32> to vector<1x4x16xf32>
    tpu.vector_store %arg19[%c0_444, %c0_445, %c48_446], %385 {strides = array<i32>} : memref<1x4x256xf32, #tpu.memory_space<vmem>>, vector<1x4x16xf32>,
    %386 = vector.extract_strided_slice %369 {offsets = [0, 91], sizes = [4, 16], strides = [1, 1]} : vector<4x324xf32> to vector<4x16xf32>
    %c0_447 = arith.constant 0 : index
    %c0_448 = arith.constant 0 : index
    %c64_449 = arith.constant 64 : index
    %387 = vector.load %arg19[%c0_447, %c0_448, %c64_449] : memref<1x4x256xf32, #tpu.memory_space<vmem>>, vector<1x4x16xf32>
    %388 = vector.shape_cast %387 : vector<1x4x16xf32> to vector<4x16xf32>
    %389 = vector.shape_cast %386 : vector<4x16xf32> to vector<1x4x16xf32>
    tpu.vector_store %arg19[%c0_447, %c0_448, %c64_449], %389 {strides = array<i32>} : memref<1x4x256xf32, #tpu.memory_space<vmem>>, vector<1x4x16xf32>,
    %390 = vector.extract_strided_slice %369 {offsets = [0, 109], sizes = [4, 16], strides = [1, 1]} : vector<4x324xf32> to vector<4x16xf32>
    %c0_450 = arith.constant 0 : index
    %c0_451 = arith.constant 0 : index
    %c80_452 = arith.constant 80 : index
    %391 = vector.load %arg19[%c0_450, %c0_451, %c80_452] : memref<1x4x256xf32, #tpu.memory_space<vmem>>, vector<1x4x16xf32>
    %392 = vector.shape_cast %391 : vector<1x4x16xf32> to vector<4x16xf32>
    %393 = vector.shape_cast %390 : vector<4x16xf32> to vector<1x4x16xf32>
    tpu.vector_store %arg19[%c0_450, %c0_451, %c80_452], %393 {strides = array<i32>} : memref<1x4x256xf32, #tpu.memory_space<vmem>>, vector<1x4x16xf32>,
    %394 = vector.extract_strided_slice %369 {offsets = [0, 127], sizes = [4, 16], strides = [1, 1]} : vector<4x324xf32> to vector<4x16xf32>
    %c0_453 = arith.constant 0 : index
    %c0_454 = arith.constant 0 : index
    %c96_455 = arith.constant 96 : index
    %395 = vector.load %arg19[%c0_453, %c0_454, %c96_455] : memref<1x4x256xf32, #tpu.memory_space<vmem>>, vector<1x4x16xf32>
    %396 = vector.shape_cast %395 : vector<1x4x16xf32> to vector<4x16xf32>
    %397 = vector.shape_cast %394 : vector<4x16xf32> to vector<1x4x16xf32>
    tpu.vector_store %arg19[%c0_453, %c0_454, %c96_455], %397 {strides = array<i32>} : memref<1x4x256xf32, #tpu.memory_space<vmem>>, vector<1x4x16xf32>,
    %398 = vector.extract_strided_slice %369 {offsets = [0, 145], sizes = [4, 16], strides = [1, 1]} : vector<4x324xf32> to vector<4x16xf32>
    %c0_456 = arith.constant 0 : index
    %c0_457 = arith.constant 0 : index
    %c112_458 = arith.constant 112 : index
    %399 = vector.load %arg19[%c0_456, %c0_457, %c112_458] : memref<1x4x256xf32, #tpu.memory_space<vmem>>, vector<1x4x16xf32>
    %400 = vector.shape_cast %399 : vector<1x4x16xf32> to vector<4x16xf32>
    %401 = vector.shape_cast %398 : vector<4x16xf32> to vector<1x4x16xf32>
    tpu.vector_store %arg19[%c0_456, %c0_457, %c112_458], %401 {strides = array<i32>} : memref<1x4x256xf32, #tpu.memory_space<vmem>>, vector<1x4x16xf32>,
    %402 = vector.extract_strided_slice %369 {offsets = [0, 163], sizes = [4, 16], strides = [1, 1]} : vector<4x324xf32> to vector<4x16xf32>
    %c0_459 = arith.constant 0 : index
    %c0_460 = arith.constant 0 : index
    %c128_461 = arith.constant 128 : index
    %403 = vector.load %arg19[%c0_459, %c0_460, %c128_461] : memref<1x4x256xf32, #tpu.memory_space<vmem>>, vector<1x4x16xf32>
    %404 = vector.shape_cast %403 : vector<1x4x16xf32> to vector<4x16xf32>
    %405 = vector.shape_cast %402 : vector<4x16xf32> to vector<1x4x16xf32>
    tpu.vector_store %arg19[%c0_459, %c0_460, %c128_461], %405 {strides = array<i32>} : memref<1x4x256xf32, #tpu.memory_space<vmem>>, vector<1x4x16xf32>,
    %406 = vector.extract_strided_slice %369 {offsets = [0, 181], sizes = [4, 16], strides = [1, 1]} : vector<4x324xf32> to vector<4x16xf32>
    %c0_462 = arith.constant 0 : index
    %c0_463 = arith.constant 0 : index
    %c144_464 = arith.constant 144 : index
    %407 = vector.load %arg19[%c0_462, %c0_463, %c144_464] : memref<1x4x256xf32, #tpu.memory_space<vmem>>, vector<1x4x16xf32>
    %408 = vector.shape_cast %407 : vector<1x4x16xf32> to vector<4x16xf32>
    %409 = vector.shape_cast %406 : vector<4x16xf32> to vector<1x4x16xf32>
    tpu.vector_store %arg19[%c0_462, %c0_463, %c144_464], %409 {strides = array<i32>} : memref<1x4x256xf32, #tpu.memory_space<vmem>>, vector<1x4x16xf32>,
    %410 = vector.extract_strided_slice %369 {offsets = [0, 199], sizes = [4, 16], strides = [1, 1]} : vector<4x324xf32> to vector<4x16xf32>
    %c0_465 = arith.constant 0 : index
    %c0_466 = arith.constant 0 : index
    %c160_467 = arith.constant 160 : index
    %411 = vector.load %arg19[%c0_465, %c0_466, %c160_467] : memref<1x4x256xf32, #tpu.memory_space<vmem>>, vector<1x4x16xf32>
    %412 = vector.shape_cast %411 : vector<1x4x16xf32> to vector<4x16xf32>
    %413 = vector.shape_cast %410 : vector<4x16xf32> to vector<1x4x16xf32>
    tpu.vector_store %arg19[%c0_465, %c0_466, %c160_467], %413 {strides = array<i32>} : memref<1x4x256xf32, #tpu.memory_space<vmem>>, vector<1x4x16xf32>,
    %414 = vector.extract_strided_slice %369 {offsets = [0, 217], sizes = [4, 16], strides = [1, 1]} : vector<4x324xf32> to vector<4x16xf32>
    %c0_468 = arith.constant 0 : index
    %c0_469 = arith.constant 0 : index
    %c176_470 = arith.constant 176 : index
    %415 = vector.load %arg19[%c0_468, %c0_469, %c176_470] : memref<1x4x256xf32, #tpu.memory_space<vmem>>, vector<1x4x16xf32>
    %416 = vector.shape_cast %415 : vector<1x4x16xf32> to vector<4x16xf32>
    %417 = vector.shape_cast %414 : vector<4x16xf32> to vector<1x4x16xf32>
    tpu.vector_store %arg19[%c0_468, %c0_469, %c176_470], %417 {strides = array<i32>} : memref<1x4x256xf32, #tpu.memory_space<vmem>>, vector<1x4x16xf32>,
    %418 = vector.extract_strided_slice %369 {offsets = [0, 235], sizes = [4, 16], strides = [1, 1]} : vector<4x324xf32> to vector<4x16xf32>
    %c0_471 = arith.constant 0 : index
    %c0_472 = arith.constant 0 : index
    %c192_473 = arith.constant 192 : index
    %419 = vector.load %arg19[%c0_471, %c0_472, %c192_473] : memref<1x4x256xf32, #tpu.memory_space<vmem>>, vector<1x4x16xf32>
    %420 = vector.shape_cast %419 : vector<1x4x16xf32> to vector<4x16xf32>
    %421 = vector.shape_cast %418 : vector<4x16xf32> to vector<1x4x16xf32>
    tpu.vector_store %arg19[%c0_471, %c0_472, %c192_473], %421 {strides = array<i32>} : memref<1x4x256xf32, #tpu.memory_space<vmem>>, vector<1x4x16xf32>,
    %422 = vector.extract_strided_slice %369 {offsets = [0, 253], sizes = [4, 16], strides = [1, 1]} : vector<4x324xf32> to vector<4x16xf32>
    %c0_474 = arith.constant 0 : index
    %c0_475 = arith.constant 0 : index
    %c208_476 = arith.constant 208 : index
    %423 = vector.load %arg19[%c0_474, %c0_475, %c208_476] : memref<1x4x256xf32, #tpu.memory_space<vmem>>, vector<1x4x16xf32>
    %424 = vector.shape_cast %423 : vector<1x4x16xf32> to vector<4x16xf32>
    %425 = vector.shape_cast %422 : vector<4x16xf32> to vector<1x4x16xf32>
    tpu.vector_store %arg19[%c0_474, %c0_475, %c208_476], %425 {strides = array<i32>} : memref<1x4x256xf32, #tpu.memory_space<vmem>>, vector<1x4x16xf32>,
    %426 = vector.extract_strided_slice %369 {offsets = [0, 271], sizes = [4, 16], strides = [1, 1]} : vector<4x324xf32> to vector<4x16xf32>
    %c0_477 = arith.constant 0 : index
    %c0_478 = arith.constant 0 : index
    %c224_479 = arith.constant 224 : index
    %427 = vector.load %arg19[%c0_477, %c0_478, %c224_479] : memref<1x4x256xf32, #tpu.memory_space<vmem>>, vector<1x4x16xf32>
    %428 = vector.shape_cast %427 : vector<1x4x16xf32> to vector<4x16xf32>
    %429 = vector.shape_cast %426 : vector<4x16xf32> to vector<1x4x16xf32>
    tpu.vector_store %arg19[%c0_477, %c0_478, %c224_479], %429 {strides = array<i32>} : memref<1x4x256xf32, #tpu.memory_space<vmem>>, vector<1x4x16xf32>,
    %430 = vector.extract_strided_slice %369 {offsets = [0, 289], sizes = [4, 16], strides = [1, 1]} : vector<4x324xf32> to vector<4x16xf32>
    %c0_480 = arith.constant 0 : index
    %c0_481 = arith.constant 0 : index
    %c240_482 = arith.constant 240 : index
    %431 = vector.load %arg19[%c0_480, %c0_481, %c240_482] : memref<1x4x256xf32, #tpu.memory_space<vmem>>, vector<1x4x16xf32>
    %432 = vector.shape_cast %431 : vector<1x4x16xf32> to vector<4x16xf32>
    %433 = vector.shape_cast %430 : vector<4x16xf32> to vector<1x4x16xf32>
    tpu.vector_store %arg19[%c0_480, %c0_481, %c240_482], %433 {strides = array<i32>} : memref<1x4x256xf32, #tpu.memory_space<vmem>>, vector<1x4x16xf32>,
    return
  }
  func.func @transform_0(%arg0: i32) -> (i32, i32, i32) {
    %c0_i32 = arith.constant 0 : i32
    %c0_i32_0 = arith.constant 0 : i32
    %c0_i32_1 = arith.constant 0 : i32
    return %arg0, %c0_i32, %c0_i32_0 : i32, i32, i32
  }
  func.func @transform_1(%arg0: i32) -> (i32, i32, i32) {
    %c0_i32 = arith.constant 0 : i32
    %c0_i32_0 = arith.constant 0 : i32
    %c0_i32_1 = arith.constant 0 : i32
    return %arg0, %c0_i32, %c0_i32_0 : i32, i32, i32
  }
  func.func @transform_2(%arg0: i32) -> (i32, i32, i32, i32) {
    %c0_i32 = arith.constant 0 : i32
    %c0_i32_0 = arith.constant 0 : i32
    %c0_i32_1 = arith.constant 0 : i32
    %c0_i32_2 = arith.constant 0 : i32
    %c0_i32_3 = arith.constant 0 : i32
    return %c0_i32, %c0_i32_0, %c0_i32_1, %c0_i32_2 : i32, i32, i32, i32
  }
  func.func @transform_3(%arg0: i32) -> (i32, i32) {
    %c0_i32 = arith.constant 0 : i32
    %c0_i32_0 = arith.constant 0 : i32
    %c0_i32_1 = arith.constant 0 : i32
    return %c0_i32, %c0_i32_0 : i32, i32
  }
  func.func @transform_4(%arg0: i32) -> (i32, i32) {
    %c0_i32 = arith.constant 0 : i32
    %c0_i32_0 = arith.constant 0 : i32
    %c0_i32_1 = arith.constant 0 : i32
    return %c0_i32, %c0_i32_0 : i32, i32
  }
  func.func @transform_5(%arg0: i32) -> (i32, i32) {
    %c0_i32 = arith.constant 0 : i32
    %c0_i32_0 = arith.constant 0 : i32
    %c0_i32_1 = arith.constant 0 : i32
    return %c0_i32, %c0_i32_0 : i32, i32
  }
  func.func @transform_6(%arg0: i32) -> (i32, i32, i32, i32) {
    %c0_i32 = arith.constant 0 : i32
    %c0_i32_0 = arith.constant 0 : i32
    %c0_i32_1 = arith.constant 0 : i32
    %c0_i32_2 = arith.constant 0 : i32
    %c0_i32_3 = arith.constant 0 : i32
    return %c0_i32, %c0_i32_0, %c0_i32_1, %c0_i32_2 : i32, i32, i32, i32
  }
  func.func @transform_7(%arg0: i32) -> (i32, i32) {
    %c0_i32 = arith.constant 0 : i32
    %c0_i32_0 = arith.constant 0 : i32
    %c0_i32_1 = arith.constant 0 : i32
    return %c0_i32, %c0_i32_0 : i32, i32
  }
  func.func @transform_8(%arg0: i32) -> (i32, i32) {
    %c0_i32 = arith.constant 0 : i32
    %c0_i32_0 = arith.constant 0 : i32
    %c0_i32_1 = arith.constant 0 : i32
    return %c0_i32, %c0_i32_0 : i32, i32
  }
  func.func @transform_9(%arg0: i32) -> (i32, i32) {
    %c0_i32 = arith.constant 0 : i32
    %c0_i32_0 = arith.constant 0 : i32
    %c0_i32_1 = arith.constant 0 : i32
    return %c0_i32, %c0_i32_0 : i32, i32
  }
  func.func @transform_10(%arg0: i32) -> (i32, i32) {
    %c0_i32 = arith.constant 0 : i32
    %c0_i32_0 = arith.constant 0 : i32
    %c0_i32_1 = arith.constant 0 : i32
    return %c0_i32, %c0_i32_0 : i32, i32
  }
  func.func @transform_11(%arg0: i32) -> (i32, i32) {
    %c0_i32 = arith.constant 0 : i32
    %c0_i32_0 = arith.constant 0 : i32
    %c0_i32_1 = arith.constant 0 : i32
    return %c0_i32, %c0_i32_0 : i32, i32
  }
  func.func @transform_12(%arg0: i32) -> (i32, i32, i32, i32) {
    %c0_i32 = arith.constant 0 : i32
    %c0_i32_0 = arith.constant 0 : i32
    %c0_i32_1 = arith.constant 0 : i32
    %c0_i32_2 = arith.constant 0 : i32
    %c0_i32_3 = arith.constant 0 : i32
    return %c0_i32, %c0_i32_0, %c0_i32_1, %c0_i32_2 : i32, i32, i32, i32
  }
  func.func @transform_13(%arg0: i32) -> (i32, i32) {
    %c0_i32 = arith.constant 0 : i32
    %c0_i32_0 = arith.constant 0 : i32
    %c0_i32_1 = arith.constant 0 : i32
    return %c0_i32, %c0_i32_0 : i32, i32
  }
  func.func @transform_14(%arg0: i32) -> (i32, i32) {
    %c0_i32 = arith.constant 0 : i32
    %c0_i32_0 = arith.constant 0 : i32
    %c0_i32_1 = arith.constant 0 : i32
    return %c0_i32, %c0_i32_0 : i32, i32
  }
  func.func @transform_15(%arg0: i32) -> (i32, i32) {
    %c0_i32 = arith.constant 0 : i32
    %c0_i32_0 = arith.constant 0 : i32
    %c0_i32_1 = arith.constant 0 : i32
    return %c0_i32, %c0_i32_0 : i32, i32
  }
  func.func @transform_16(%arg0: i32) -> (i32, i32) {
    %c0_i32 = arith.constant 0 : i32
    %c0_i32_0 = arith.constant 0 : i32
    %c0_i32_1 = arith.constant 0 : i32
    return %c0_i32, %c0_i32_0 : i32, i32
  }
  func.func @transform_17(%arg0: i32) -> (i32, i32) {
    %c0_i32 = arith.constant 0 : i32
    %c0_i32_0 = arith.constant 0 : i32
    %c0_i32_1 = arith.constant 0 : i32
    return %c0_i32, %c0_i32_0 : i32, i32
  }
  func.func @transform_18(%arg0: i32) -> (i32, i32, i32) {
    %c0_i32 = arith.constant 0 : i32
    %c0_i32_0 = arith.constant 0 : i32
    %c0_i32_1 = arith.constant 0 : i32
    return %arg0, %c0_i32, %c0_i32_0 : i32, i32, i32
  }
}

</mosaic_0001>

<bundles_post_ra>
// kernel: aux_sparse_upsampling_block.1
= control target key start
LH: loop header
LB: loop body
LE: loop exit
PB: predicated region body
PF: predicated region fallthrough
CT: control target
= control target key end

     0   :  { %s6967_s27 = smov 0   ;;  %s7728_s0 = inlined_call_operand.vmem [shape: f32[2,4,256], index: 0, kind: input, shape index: {}]   ;;  %s7729_s1 = inlined_call_operand.vmem [shape: f32[2,3,256], index: 1, kind: input, shape index: {}]   ;;  %s7730_s2 = inlined_call_operand.vmem [shape: f32[3,3,8,4], index: 2, kind: input, shape index: {}]   ;;  %s7731_s3 = inlined_call_operand.vmem [shape: f32[8,1], index: 3, kind: input, shape index: {}]   ;;  %s7732_s4 = inlined_call_operand.vmem [shape: f32[4,8], index: 4, kind: input, shape index: {}]   ;;  %s7733_s5 = inlined_call_operand.vmem [shape: f32[4,1], index: 5, kind: input, shape index: {}]   ;;  %s7734_s6 = inlined_call_operand.vmem [shape: f32[3,3,8,3], index: 6, kind: input, shape index: {}]   ;;  %s7735_s7 = inlined_call_operand.vmem [shape: f32[8,1], index: 7, kind: input, shape index: {}]   ;;  %s7736_s8 = inlined_call_operand.vmem [shape: f32[4,8], index: 8, kind: input, shape index: {}]   ;;  %s7737_s9 = inlined_call_operand.vmem [shape: f32[4,1], index: 9, kind: input, shape index: {}]   ;;  %s7738_s10 = inlined_call_operand.vmem [shape: f32[8,8], index: 10, kind: input, shape index: {}]   ;;  %s7739_s11 = inlined_call_operand.vmem [shape: f32[8,8], index: 11, kind: input, shape index: {}]   ;;  %s7740_s12 = inlined_call_operand.vmem [shape: f32[3,3,8,8], index: 12, kind: input, shape index: {}]   ;;  %s7741_s13 = inlined_call_operand.vmem [shape: f32[8,1], index: 13, kind: input, shape index: {}]   ;;  %s7742_s14 = inlined_call_operand.vmem [shape: f32[4,8], index: 14, kind: input, shape index: {}]   ;;  %s7743_s15 = inlined_call_operand.vmem [shape: f32[4,1], index: 15, kind: input, shape index: {}]   ;;  %s7744_s16 = inlined_call_operand.vmem [shape: f32[4,4], index: 16, kind: input, shape index: {}]   ;;  %s7745_s17 = inlined_call_operand.vmem [shape: f32[4,1], index: 17, kind: input, shape index: {}]   ;;  %s7746_s18 = inlined_call_operand.vmem [shape: f32[2,4,256], index: 18, kind: output, shape index: {}]  }
   0x1   :  { %7798 = sst [smem:[#allocation5_spill]] %s7728_s0 }
   0x2   :  { %7799 = sst [smem:[#allocation6_spill]] %s7729_s1 }
   0x3   :  { %7800 = sst [smem:[#allocation7_spill]] %s7730_s2 }
   0x4 LB: > { %s6363_s28 = sadd.s32 4294967295, %s6828_s27   ;;  %p6367_p0 = scmp.ge.s32.totalorder %s6828_s27, 1  ;;  %s6828_s27 = sphi %s6967_s27, %s28_s27  }
   0x5   : > { %p522_p1 = scmp.lt.s32.totalorder %s6828_s27, 3 }
   0x7   : > { %p523_p2 = pnand %p6367_p0, %p522_p1 }
   0x8   : > { %p581_p3 = scmp.lt.s32.totalorder (!%p523_p2), %s6363_s28, 1  ;;  %s7801_s19 = sld [smem:[#allocation5_spill]] (!%p523_p2) }
   0x9   : > { %526 = sbr.rel (%p523_p2) target bundleno = 2845 (0xb1d), region = 92  ;;  %s6831_s20 = smov (!%p523_p2), 48  }
   0xa   : > { %s6832_s21 = smov (!%p523_p2), 52   ;;  %s6833_s22 = smov (!%p523_p2), 50  }
   0xb   : > { %s6834_s2 = smov (!%p523_p2), 54   ;;  %s6835_s23 = smov (!%p523_p2), 38  }
   0xc   : > { %s6836_s24 = smov (!%p523_p2), 56   ;;  %s7749_s25 = smov (!%p523_p2), 62  }
   0xd   : > { %s7748_s26 = smov (!%p523_p2), 40   ;;  %s7751_s30 = smov (!%p523_p2), 42  }
   0xe   : > { %v6830_v0 = vmov 0.0   ;;  %s7877_s28 = smov (!%p581_p3, %s6363_s28), 1  ;;  %s7771_s0 = smov 60   ;;  %vm7783_vm0 = vcmask 125952   ;;  %vm7778_vm1 = vcmask 273552   ;;  %vm7777_vm2 = vcmask 421152  }
   0xf   : > { %596 = vst [vmem:[#allocation2] sm:$0xff] %v6830_v0  ;;  %597 = vst [vmem:[#allocation2 + $0x8] sm:$0xf] %v6830_v0  ;;  %6591 = vmatprep.subr.mxu1 %v6830_v0  ;;  %928 = vmatprep.mubr.f32.mxu0 %v6830_v0  ;;  %s6984_s29 = sshll.u32 %s7877_s28, 3  ;;  %s7750_s28 = smov 58   ;;  %vm7754_vm3 = vcmask 568752  }
  0x10   : > { %598 = vst [vmem:[#allocation3] sm:$0x77] %v6830_v0  ;;  %599 = vst [vmem:[#allocation3 + $0x8] sm:$0x7] %v6830_v0  ;;  %s6990_s1 = scalar_lea.vmem %s7801_s19, %s6984_s29  ;;  %s7762_s19 = smov 44   ;;  %vm7784_vm4 = vcmask 437552  }
  0x11   : > { %600 = vst [vmem:[#allocation4] sm:$0xff] %v6830_v0  ;;  %601 = vst [vmem:[#allocation4 + $0x8] sm:$0xff] %v6830_v0  ;;  %v673_v1 = vld [vmem:[%s6990_s1] sm:$0xf]  ;;  %v715_v4 = vld [vmem:[%s6990_s1 + $0x4] sm:$0xf] }
  0x12   : > { %602 = vst [vmem:[#allocation4 + $0x10] sm:$0xff] %v6830_v0  ;;  %v701_v2 = vld [vmem:[%s6990_s1] sm:$0xf]  ;;  %675 = vrot.lane.b32.xlu0 %v673_v1, %s6831_s20  ;;  %v729_v6 = vld [vmem:[%s6990_s1 + $0x4] sm:$0xf]  ;;  %vm7752_vm5 = vcmask 716352  }
  0x13   : > { %703 = vrot.lane.b32.xlu1 %v701_v2, %s6832_s21  ;;  %v687_v3 = vld [vmem:[%s6990_s1] sm:$0xf]  ;;  %v771_v7 = vld [vmem:[%s6990_s1 + $0x4] sm:$0xf]  ;;  %vm7782_vm6 = vcmask 585152   ;;  %vm7753_vm7 = vcmask 863952  }
  0x14   : > { %v603_v5 = vld [vmem:[%s6990_s1] sm:$0xf]  ;;  %v743_v9 = vld [vmem:[%s6990_s1 + $0x4] sm:$0xf]  ;;  %vm7781_vm8 = vcmask 732752   ;;  %vm7773_vm9 = vcmask 1044464  }
  0x15   : > { %v617_v8 = vld [vmem:[%s6990_s1] sm:$0xf]  ;;  %v757_v11 = vld [vmem:[%s6990_s1 + $0x4] sm:$0xf]  ;;  %vm7755_vm10 = vcmask 113668   ;;  %vm776_vm11 = vcmask 506880  }
  0x16   : > { %689 = vrot.lane.b32.xlu0 %v687_v3, %s6833_s22  ;;  %v631_v10 = vld [vmem:[%s6990_s1] sm:$0xf]  ;;  %v794_v14 = vld [vmem:[%s6990_s1 + $0x4] sm:$0xf]  ;;  %vm7775_vm12 = vcmask 1011552   ;;  %vm7780_vm13 = vcmask 880352   ;;  %vm781_vm14 = vmor %vm7755_vm10, %vm7773_vm9 }
  0x17   : > { %717 = vrot.lane.b32.xlu1 %v715_v4, %s6834_s2  ;;  %v645_v12 = vld [vmem:[%s6990_s1] sm:$0xf]  ;;  %v808_v15 = vld [vmem:[%s6990_s1 + $0x4] sm:$0xf]  ;;  %vm7779_vm15 = vcmask 1027952   ;;  %vm6847_vm10 = vmmov 0  }
  0x18   : > { %v659_v13 = vld [vmem:[%s6990_s1] sm:$0xf]  ;;  %v822_v16 = vld [vmem:[%s6990_s1 + $0x4] sm:$0xf]  ;;  %6593 = vmatprep.mubr.msk.f32.mxu1 %vm6847_vm10, %v6830_v0  ;;  %s7763_s1 = smov 126   ;;  %v6856_v51 = vmov 0  }
  0x19   : > { %6806 = vset.pattern.permute.xlu0 %v6856_v51  ;;  %6807 = vset.pattern.permute.xlu1 %v6856_v51  ;;  %v2338_v62 = vld [vmem:[%s7731_s3] sm:$0xff]  ;;  %vm7787_vm9 = vcmask 31744  }
  0x1a   : > { %605 = vrot.lane.b32.xlu0 %v603_v5, %s6835_s23 }
  0x1b   : > { %731 = vrot.lane.b32.xlu1 %v729_v6, %s6836_s24 }
  0x1e   : > { %773 = vrot.lane.b32.xlu0 %v771_v7, %s7749_s25  ;;  %s7758_s25 = smov 64  }
  0x1f   : > { %619 = vrot.lane.b32.xlu1 %v617_v8, %s7748_s26  ;;  %s7759_s26 = smov 46  }
  0x22   : > { %745 = vrot.lane.b32.xlu0 %v743_v9, %s7750_s28  ;;  %s7757_s28 = smov 66  }
  0x23   : > { %633 = vrot.lane.b32.xlu1 %v631_v10, %s7751_s30  ;;  %s7756_s30 = smov 68  }
  0x26   : > { %759 = vrot.lane.b32.xlu0 %v757_v11, %s7771_s0 }
  0x27   : > { %647 = vrot.lane.b32.xlu1 %v645_v12, %s7762_s19  ;;  %s6854_s19 = smov 91  }
  0x2a   : > { %661 = vrot.lane.b32.xlu0 %v659_v13, %s7759_s26  ;;  %s7767_s26 = smov 108  }
  0x2b   : > { %796 = vrot.lane.b32.xlu1 %v794_v14, %s7758_s25  ;;  %s7765_s25 = smov 109  }
  0x2e   : > { %810 = vrot.lane.b32.xlu0 %v808_v15, %s7757_s28  ;;  %s7769_s28 = smov 110  }
  0x2f   : > { %824 = vrot.lane.b32.xlu1 %v822_v16, %s7756_s30  ;;  %s7760_s30 = smov 127  }
  0x84   : > { %v676_v17 = vpop.permute.xlu0 %675 }
  0x85   : > { %v704_v18 = vpop.permute.xlu1 %703  ;;  %679 = vst.msk [vmem:[#allocation2 + $0x4] sm:$0xf] %vm7783_vm0, %v676_v17  ;;  %vm713_vm0 = vcmask 420128  }
  0x88   : > { %v690_v19 = vpop.permute.xlu0 %689 }
  0x89   : > { %v718_v20 = vpop.permute.xlu1 %717  ;;  %693 = vst.msk [vmem:[#allocation2 + $0x4] sm:$0xf] %vm7778_vm1, %v690_v19  ;;  %vm7789_vm1 = vcmask 752640  }
  0x8a   : > { %707 = vst.msk [vmem:[#allocation2 + $0x4] sm:$0xf] %vm7777_vm2, %v704_v18  ;;  %vm7790_vm2 = vcmask 883712  }
  0x8b   : > { %721 = vst.msk [vmem:[#allocation2 + $0x4] sm:$0xf] %vm7754_vm3, %v718_v20  ;;  %vm7772_vm3 = vcmask 552352  }
  0x8c   : > { %v606_v21 = vpop.permute.xlu0 %605 }
  0x8d   : > { %v732_v22 = vpop.permute.xlu1 %731  ;;  %609 = vst.msk [vmem:[#allocation2] sm:$0xf] %vm7784_vm4, %v606_v21  ;;  %vm727_vm4 = vcmask 567728  }
  0x8e   : > { %735 = vst.msk [vmem:[#allocation2 + $0x4] sm:$0xf] %vm7752_vm5, %v732_v22  ;;  %vm7776_vm5 = vcmask 257152  }
  0x90   : > { %v774_v23 = vpop.permute.xlu0 %773 }
  0x91   : > { %v620_v24 = vpop.permute.xlu1 %619  ;;  %v775_v27 = vrot.slane %v774_v23, 4 }
  0x92   : > { %623 = vst.msk [vmem:[#allocation2] sm:$0xf] %vm7782_vm6, %v620_v24  ;;  %vm699_vm6 = vcmask 272528  }
  0x93   : > { %v777_v30 = vsel %vm776_vm11, %v775_v27, %v774_v23 }
  0x94   : > { %v746_v25 = vpop.permute.xlu0 %745 }
  0x95   : > { %v634_v26 = vpop.permute.xlu1 %633  ;;  %749 = vst.msk [vmem:[#allocation2 + $0x4] sm:$0xf] %vm7753_vm7, %v746_v25  ;;  %vm7774_vm7 = vcmask 404752  }
  0x96   : > { %637 = vst.msk [vmem:[#allocation2] sm:$0xf] %vm7781_vm8, %v634_v26  ;;  %vm685_vm8 = vcmask 124928  }
  0x98   : > { %v760_v28 = vpop.permute.xlu0 %759 }
  0x99   : > { %v648_v29 = vpop.permute.xlu1 %647  ;;  %763 = vst.msk [vmem:[#allocation2 + $0x4] sm:$0xf] %vm7775_vm12, %v760_v28  ;;  %vm7795_vm12 = vcmask 900096  }
  0x9a   : > { %651 = vst.msk [vmem:[#allocation2] sm:$0xf] %vm7780_vm13, %v648_v29  ;;  %vm7786_vm13 = vcmask 736256  }
  0x9b   : > { %782 = vst.msk [vmem:[#allocation2 + $0x4] sm:$0xff] %vm781_vm14, %v777_v30  ;;  %vm7785_vm14 = vcmask 1043456  }
  0x9c   : > { %v662_v31 = vpop.permute.xlu0 %661 }
  0x9d   : > { %v797_v32 = vpop.permute.xlu1 %796  ;;  %665 = vst.msk [vmem:[#allocation2] sm:$0xf] %vm7779_vm15, %v662_v31  ;;  %vm7788_vm15 = vcmask 744448  }
  0x9e   : > { %800 = vst.msk [vmem:[#allocation2 + $0x8] sm:$0xf] %vm7776_vm5, %v797_v32  ;;  %vm7791_vm5 = vcmask 891904  }
  0xa0   : > { %v811_v33 = vpop.permute.xlu0 %810 }
  0xa1   : > { %v825_v34 = vpop.permute.xlu1 %824  ;;  %814 = vst.msk [vmem:[#allocation2 + $0x8] sm:$0xf] %vm7774_vm7, %v811_v33  ;;  %vm7796_vm7 = vcmask 1031168  }
  0xa2   : > { %828 = vst.msk [vmem:[#allocation2 + $0x8] sm:$0xf] %vm7772_vm3, %v825_v34  ;;  %vm7797_vm3 = vcmask 1039360  }
  0xa4   : > { %v7044_v35 = vld [vmem:[#allocation2] sm:$0xff] }
  0xa5   : > { %1162 = vrot.lane.b32.xlu1 %v7044_v35, %s7763_s1  ;;  %844 = vrot.lane.b32.xlu0 %v7044_v35, %s7760_s30  ;;  %v7052_v36 = vcombine.high %v7044_v35, %v7044_v35 }
  0xa9   : > { %1164 = vrot.lane.b32.xlu1 %v7052_v36, %s7763_s1  ;;  %1331 = vrot.lane.b32.xlu0 %v7044_v35, %s7769_s28  ;;  %v7058_v37 = vld [vmem:[#allocation2 + $0x8] sm:$0xf] }
  0xaa   : > { %v1158_v38 = vld [vmem:[#allocation2 + $0x8] sm:$0xf] }
  0xab   : > { %v1327_v39 = vld [vmem:[#allocation2 + $0x8] sm:$0xf] }
  0xac   : > { %v1496_v40 = vld [vmem:[#allocation2 + $0x8] sm:$0xf] }
  0xad   : > { %846 = vrot.lane.b32.xlu0 %v7052_v36, %s7760_s30  ;;  %848 = vrot.lane.b32.xlu1 %v7058_v37, %s7760_s30  ;;  %s7792_s30 = smov 92   ;;  %v1665_v41 = vld [vmem:[#allocation2 + $0x8] sm:$0xf] }
  0xae   : > { %v1834_v42 = vld [vmem:[#allocation2 + $0x8] sm:$0xf] }
  0xaf   : > { %v2003_v43 = vld [vmem:[#allocation2 + $0x8] sm:$0xf] }
  0xb0   : > { %v2172_v44 = vld [vmem:[#allocation2 + $0x8] sm:$0xf] }
  0xb1   : > { %1333 = vrot.lane.b32.xlu0 %v7052_v36, %s7769_s28  ;;  %1502 = vrot.lane.b32.xlu1 %v7052_v36, %s7765_s25 }
  0xb5   : > { %1671 = vrot.lane.b32.xlu0 %v7052_v36, %s7767_s26  ;;  %1500 = vrot.lane.b32.xlu1 %v7044_v35, %s7765_s25 }
  0xb9   : > { %1166 = vrot.lane.b32.xlu0 %v1158_v38, %s7763_s1  ;;  %1335 = vrot.lane.b32.xlu1 %v1327_v39, %s7769_s28  ;;  %s6855_s1 = smov 90   ;;  %s7802_s28 = sld [smem:[#allocation6_spill]] }
  0xbd   : > { %1669 = vrot.lane.b32.xlu0 %v7044_v35, %s7767_s26  ;;  %1840 = vrot.lane.b32.xlu1 %v7052_v36, %s7792_s30 }
  0xbf   : > { %s7094_s0 = scalar_lea.vmem %s7802_s28, %s6984_s29  ;;  %s7811_s28 = smov 66  }
  0xc0   : > { %v680_v45 = vld [vmem:[%s7094_s0] sm:$0x7]  ;;  %v722_v48 = vld [vmem:[%s7094_s0 + $0x4] sm:$0x7] }
  0xc1   : > { %1504 = vrot.lane.b32.xlu0 %v1496_v40, %s7765_s25  ;;  %1673 = vrot.lane.b32.xlu1 %v1665_v41, %s7767_s26  ;;  %v694_v46 = vld [vmem:[%s7094_s0] sm:$0x7]  ;;  %v736_v50 = vld [vmem:[%s7094_s0 + $0x4] sm:$0x7]  ;;  %s7807_s25 = smov 60   ;;  %s7810_s26 = smov 64  }
  0xc2   : > { %v708_v47 = vld [vmem:[%s7094_s0] sm:$0x7]  ;;  %v783_v52 = vld [vmem:[%s7094_s0 + $0x4] sm:$0x7] }
  0xc3   : > { %v610_v49 = vld [vmem:[%s7094_s0] sm:$0x7]  ;;  %v750_v54 = vld [vmem:[%s7094_s0 + $0x4] sm:$0x7] }
  0xc4   : > { %v624_v53 = vld [vmem:[%s7094_s0] sm:$0x7]  ;;  %v764_v56 = vld [vmem:[%s7094_s0 + $0x4] sm:$0x7] }
  0xc5   : > { %2009 = vrot.lane.b32.xlu0 %v7052_v36, %s6854_s19  ;;  %1838 = vrot.lane.b32.xlu1 %v7044_v35, %s7792_s30  ;;  %v638_v55 = vld [vmem:[%s7094_s0] sm:$0x7]  ;;  %v801_v59 = vld [vmem:[%s7094_s0 + $0x4] sm:$0x7] }
  0xc6   : > { %v652_v57 = vld [vmem:[%s7094_s0] sm:$0x7]  ;;  %v815_v60 = vld [vmem:[%s7094_s0 + $0x4] sm:$0x7] }
  0xc7   : > { %v666_v58 = vld [vmem:[%s7094_s0] sm:$0x7]  ;;  %v829_v61 = vld [vmem:[%s7094_s0 + $0x4] sm:$0x7]  ;;  %s7813_s0 = sld [smem:[#allocation7_spill]] }
  0xc9   : > { %1842 = vrot.lane.b32.xlu0 %v1834_v42, %s7792_s30  ;;  %2011 = vrot.lane.b32.xlu1 %v2003_v43, %s6854_s19 }
  0xcd   : > { %2007 = vrot.lane.b32.xlu0 %v7044_v35, %s6854_s19  ;;  %2178 = vrot.lane.b32.xlu1 %v7052_v36, %s6855_s1  ;;  %v6374_v6 = vld [vmem:[%s7813_s0 + $0x8] sm:$0xff]  ;;  %v836_v11 = vld [vmem:[%s7813_s0] sm:$0xff] }
  0xce   : > { %v6385_v14 = vld [vmem:[%s7813_s0 + $0x10] sm:$0xff]  ;;  %v6391_v19 = vld [vmem:[%s7813_s0 + $0x18] sm:$0xff]  ;;  %v6397_v24 = vld [vmem:[%s7813_s0 + $0x20] sm:$0xff] }
  0xcf   : > { %v6403_v29 = vld [vmem:[%s7813_s0 + $0x28] sm:$0xff]  ;;  %v6409_v34 = vld [vmem:[%s7813_s0 + $0x30] sm:$0xff]  ;;  %v6415_v39 = vld [vmem:[%s7813_s0 + $0x38] sm:$0xff] }
  0xd1   : > { %2180 = vrot.lane.b32.xlu0 %v2172_v44, %s6855_s1  ;;  %2176 = vrot.lane.b32.xlu1 %v7044_v35, %s6855_s1  ;;  %v6421_v44 = vld [vmem:[%s7813_s0 + $0x40] sm:$0xff]  ;;  %s6859_s0 = smov 103  }
  0xd5   : > { %682 = vrot.lane.b32.xlu0 %v680_v45, %s6831_s20  ;;  %696 = vrot.lane.b32.xlu1 %v694_v46, %s6833_s22  ;;  %s7803_s20 = smov 62   ;;  %s7805_s22 = smov 58  }
  0xd9   : > { %710 = vrot.lane.b32.xlu0 %v708_v47, %s6832_s21  ;;  %724 = vrot.lane.b32.xlu1 %v722_v48, %s6834_s2  ;;  %s7804_s21 = smov 40   ;;  %s7806_s2 = smov 42  }
  0xdd   : > { %612 = vrot.lane.b32.xlu0 %v610_v49, %s6835_s23  ;;  %738 = vrot.lane.b32.xlu1 %v736_v50, %s6836_s24  ;;  %s7808_s23 = smov 44   ;;  %s7809_s24 = smov 46  }
  0xe1   : > { %785 = vrot.lane.b32.xlu0 %v783_v52, %s7803_s20  ;;  %626 = vrot.lane.b32.xlu1 %v624_v53, %s7804_s21  ;;  %s7812_s20 = smov 68   ;;  %s6863_s21 = smov 89  }
  0xe5   : > { %752 = vrot.lane.b32.xlu0 %v750_v54, %s7805_s22  ;;  %640 = vrot.lane.b32.xlu1 %v638_v55, %s7806_s2  ;;  %s7814_s2 = smov 127   ;;  %s6864_s22 = smov 101  }
  0xe9   : > { %766 = vrot.lane.b32.xlu0 %v764_v56, %s7807_s25  ;;  %654 = vrot.lane.b32.xlu1 %v652_v57, %s7808_s23  ;;  %s7815_s25 = smov 110   ;;  %s7816_s23 = smov 126  }
  0xed   : > { %668 = vrot.lane.b32.xlu0 %v666_v58, %s7809_s24  ;;  %803 = vrot.lane.b32.xlu1 %v801_v59, %s7810_s26  ;;  %s7817_s24 = smov 108   ;;  %s7818_s26 = smov 109  }
  0xf1   : > { %817 = vrot.lane.b32.xlu0 %v815_v60, %s7811_s28  ;;  %831 = vrot.lane.b32.xlu1 %v829_v61, %s7812_s20  ;;  %s6857_s28 = smov 19   ;;  %s7848_s20 = smov 92  }
  0xf5   : > { %2341 = vperm.xlu0 %6806, %v2338_v62  }
 0x117   : > { %v1163_v63 = vpop.permute.xlu1 %1162  ;;  %v845_v1 = vpop.permute.xlu0 %844 }
 0x11b   : > { %v1165_v2 = vpop.permute.xlu1 %1164  ;;  %v1332_v3 = vpop.permute.xlu0 %1331 }
 0x11c   : > { %v1169_v18 = vsel %vm7796_vm7, %v1163_v63, %v1165_v2 }
 0x11f   : > { %v849_v4 = vpop.permute.xlu1 %848  ;;  %v847_v5 = vpop.permute.xlu0 %846 }
 0x120   : > { %6592 = vmatpush3.msk.msra.mxu1 %vm7785_vm14, %v849_v4  ;;  %v852_v7 = vsel %vm7797_vm3, %v847_v5, %v849_v4  ;;  %v851_v8 = vsel %vm7797_vm3, %v845_v1, %v847_v5 }
 0x121   : > { %6375 = vmatprep.subr.msk.mxu0 %vm7785_vm14, %v852_v7  ;;  %6596 = vmatprep.subr.mxu1 %v6830_v0 }
 0x122   : > { %6376 = vmatpush1.msk.msra.mxu0 %vm7785_vm14, %v851_v8  ;;  %6594 = vmatmul.mubr.msk.f32.vlgmr.msra.gmra.mxu1 %vm7787_vm9, %v6374_v6 }
 0x123   : > { %6597 = vmatpush3.msk.msra.mxu1 %vm7785_vm14, %v7058_v37  ;;  %v1503_v9 = vpop.permute.xlu1 %1502  ;;  %6377 = vmatmul.mubr.msk.f32.vlgmr.msra.gmra.mxu0 %vm7787_vm9, %v6374_v6  ;;  %v1334_v10 = vpop.permute.xlu0 %1333 }
 0x124   : > { %6380 = vmatprep.subr.msk.mxu0 %vm7785_vm14, %v7052_v36  ;;  %1078 = vmatprep.mubr.f32.mxu0 %v6830_v0  ;;  %v1338_v23 = vsel %vm7795_vm12, %v1332_v3, %v1334_v10 }
 0x125   : > { %6381 = vmatpush1.msk.msra.mxu0 %vm7785_vm14, %v7044_v35  ;;  %6598 = vmatprep.mubr.msk.f32.mxu1 %vm6847_vm10, %v6830_v0 }
 0x126   : > { %6599 = vmatmul.mubr.msk.f32.vlgmr.msra.gmra.mxu1 %vm7787_vm9, %v836_v11  ;;  %6601 = vmatprep.subr.mxu1 %v6830_v0 }
 0x127   : > { %v1501_v12 = vpop.permute.xlu1 %1500  ;;  %6382 = vmatmul.mubr.msk.f32.vlgmr.msra.gmra.mxu0 %vm7787_vm9, %v836_v11  ;;  %v1672_v13 = vpop.permute.xlu0 %1671  ;;  %6603 = vmatprep.mubr.msk.f32.mxu1 %vm6847_vm10, %v6830_v0 }
 0x128   : > { %1244 = vmatprep.mubr.f32.mxu0 %v6830_v0  ;;  %v1507_v28 = vsel %vm7791_vm5, %v1501_v12, %v1503_v9 }
 0x12b   : > { %v1336_v15 = vpop.permute.xlu1 %1335  ;;  %v1167_v16 = vpop.permute.xlu0 %1166 }
 0x12c   : > { %6602 = vmatpush3.msk.msra.mxu1 %vm7785_vm14, %v1167_v16  ;;  %v1170_v17 = vsel %vm7796_vm7, %v1165_v2, %v1167_v16  ;;  %v1339_v21 = vsel %vm7795_vm12, %v1334_v10, %v1336_v15 }
 0x12d   : > { %6386 = vmatprep.subr.msk.mxu0 %vm7785_vm14, %v1170_v17  ;;  %6604 = vmatmul.mubr.msk.f32.vlgmr.msra.gmra.mxu1 %vm7787_vm9, %v6385_v14 }
 0x12e   : > { %6606 = vmatprep.subr.mxu1 %v6830_v0  ;;  %6387 = vmatpush1.msk.msra.mxu0 %vm7785_vm14, %v1169_v18 }
 0x12f   : > { %6607 = vmatpush3.msk.msra.mxu1 %vm7785_vm14, %v1336_v15  ;;  %v1841_v20 = vpop.permute.xlu1 %1840  ;;  %6388 = vmatmul.mubr.msk.f32.vlgmr.msra.gmra.mxu0 %vm7787_vm9, %v6385_v14  ;;  %v1670_v22 = vpop.permute.xlu0 %1669 }
 0x130   : > { %6392 = vmatprep.subr.msk.mxu0 %vm7785_vm14, %v1339_v21  ;;  %6608 = vmatprep.mubr.msk.f32.mxu1 %vm6847_vm10, %v6830_v0  ;;  %v1676_v33 = vsel %vm7790_vm2, %v1670_v22, %v1672_v13 }
 0x131   : > { %6393 = vmatpush1.msk.msra.mxu0 %vm7785_vm14, %v1338_v23  ;;  %6609 = vmatmul.mubr.msk.f32.vlgmr.msra.gmra.mxu1 %vm7787_vm9, %v6391_v19 }
 0x132   : > { %1413 = vmatprep.mubr.f32.mxu0 %v6830_v0  ;;  %6611 = vmatprep.subr.mxu1 %v6830_v0 }
 0x133   : > { %v1674_v25 = vpop.permute.xlu1 %1673  ;;  %6394 = vmatmul.mubr.msk.f32.vlgmr.msra.gmra.mxu0 %vm7787_vm9, %v6391_v19  ;;  %v1505_v26 = vpop.permute.xlu0 %1504  ;;  %6613 = vmatprep.mubr.msk.f32.mxu1 %vm6847_vm10, %v6830_v0 }
 0x134   : > { %v1508_v27 = vsel %vm7791_vm5, %v1503_v9, %v1505_v26  ;;  %6612 = vmatpush3.msk.msra.mxu1 %vm7785_vm14, %v1505_v26  ;;  %1582 = vmatprep.mubr.f32.mxu0 %v6830_v0  ;;  %v1677_v31 = vsel %vm7790_vm2, %v1672_v13, %v1674_v25  ;;  %vm834_vm5 = vcmask 551328   ;;  %v3999_v26 = vld [vmem:[%s7735_s7] sm:$0xff] }
 0x135   : > { %6398 = vmatprep.subr.msk.mxu0 %vm7785_vm14, %v1508_v27  ;;  %6614 = vmatmul.mubr.msk.f32.vlgmr.msra.gmra.mxu1 %vm7787_vm9, %v6397_v24 }
 0x136   : > { %6616 = vmatprep.subr.mxu1 %v6830_v0  ;;  %6399 = vmatpush1.msk.msra.mxu0 %vm7785_vm14, %v1507_v28 }
 0x137   : > { %6617 = vmatpush3.msk.msra.mxu1 %vm7785_vm14, %v1674_v25  ;;  %v1839_v30 = vpop.permute.xlu1 %1838  ;;  %6400 = vmatmul.mubr.msk.f32.vlgmr.msra.gmra.mxu0 %vm7787_vm9, %v6397_v24  ;;  %v2010_v32 = vpop.permute.xlu0 %2009 }
 0x138   : > { %6404 = vmatprep.subr.msk.mxu0 %vm7785_vm14, %v1677_v31  ;;  %6618 = vmatprep.mubr.msk.f32.mxu1 %vm6847_vm10, %v6830_v0  ;;  %v1845_v38 = vsel %vm7789_vm1, %v1839_v30, %v1841_v20  ;;  %v4012_v30 = vld [vmem:[%s7737_s9] sm:$0xf] }
 0x139   : > { %6405 = vmatpush1.msk.msra.mxu0 %vm7785_vm14, %v1676_v33  ;;  %6619 = vmatmul.mubr.msk.f32.vlgmr.msra.gmra.mxu1 %vm7787_vm9, %v6403_v29 }
 0x13a   : > { %1751 = vmatprep.mubr.f32.mxu0 %v6830_v0  ;;  %6621 = vmatprep.subr.mxu1 %v6830_v0 }
 0x13b   : > { %v2012_v35 = vpop.permute.xlu1 %2011  ;;  %6406 = vmatmul.mubr.msk.f32.vlgmr.msra.gmra.mxu0 %vm7787_vm9, %v6403_v29  ;;  %v1843_v36 = vpop.permute.xlu0 %1842  ;;  %6623 = vmatprep.mubr.msk.f32.mxu1 %vm6847_vm10, %v6830_v0  ;;  %v2351_v29 = vld [vmem:[%s7733_s5] sm:$0xf] }
 0x13c   : > { %v1846_v37 = vsel %vm7789_vm1, %v1841_v20, %v1843_v36  ;;  %6622 = vmatpush3.msk.msra.mxu1 %vm7785_vm14, %v1843_v36  ;;  %1920 = vmatprep.mubr.f32.mxu0 %v6830_v0  ;;  %v2015_v41 = vsel %vm7788_vm15, %v2010_v32, %v2012_v35  ;;  %vm791_vm1 = vcmask 112644  }
 0x13d   : > { %6410 = vmatprep.subr.msk.mxu0 %vm7785_vm14, %v1846_v37  ;;  %6624 = vmatmul.mubr.msk.f32.vlgmr.msra.gmra.mxu1 %vm7787_vm9, %v6409_v34 }
 0x13e   : > { %6626 = vmatprep.subr.mxu1 %v6830_v0  ;;  %6411 = vmatpush1.msk.msra.mxu0 %vm7785_vm14, %v1845_v38 }
 0x13f   : > { %6627 = vmatpush3.msk.msra.mxu1 %vm7785_vm14, %v2012_v35  ;;  %v2179_v40 = vpop.permute.xlu1 %2178  ;;  %6412 = vmatmul.mubr.msk.f32.vlgmr.msra.gmra.mxu0 %vm7787_vm9, %v6409_v34  ;;  %v2008_v42 = vpop.permute.xlu0 %2007 }
 0x140   : > { %6416 = vmatprep.subr.msk.mxu0 %vm7785_vm14, %v2015_v41  ;;  %v2014_v43 = vsel %vm7788_vm15, %v2008_v42, %v2010_v32  ;;  %6628 = vmatprep.mubr.msk.f32.mxu1 %vm6847_vm10, %v6830_v0  ;;  %vm643_vm15 = vcmask 731728  }
 0x141   : > { %6417 = vmatpush1.msk.msra.mxu0 %vm7785_vm14, %v2014_v43  ;;  %6629 = vmatmul.mubr.msk.f32.vlgmr.msra.gmra.mxu1 %vm7787_vm9, %v6415_v39 }
 0x142   : > { %2089 = vmatprep.mubr.f32.mxu0 %v6830_v0  ;;  %6631 = vmatprep.subr.mxu1 %v6830_v0 }
 0x143   : > { %v2177_v45 = vpop.permute.xlu1 %2176  ;;  %6418 = vmatmul.mubr.msk.f32.vlgmr.msra.gmra.mxu0 %vm7787_vm9, %v6415_v39  ;;  %v2181_v46 = vpop.permute.xlu0 %2180  ;;  %6633 = vmatprep.mubr.msk.f32.mxu1 %vm6847_vm10, %v6830_v0 }
 0x144   : > { %v2183_v47 = vsel %vm7786_vm13, %v2177_v45, %v2179_v40  ;;  %v2184_v48 = vsel %vm7786_vm13, %v2179_v40, %v2181_v46  ;;  %6632 = vmatpush3.msk.msra.mxu1 %vm7785_vm14, %v2181_v46  ;;  %2258 = vmatprep.mubr.f32.mxu0 %v6830_v0  ;;  %vm741_vm13 = vcmask 715328  }
 0x145   : > { %6422 = vmatprep.subr.msk.mxu0 %vm7785_vm14, %v2184_v48  ;;  %6634 = vmatmul.mubr.msk.f32.vlgmr.msra.gmra.mxu1 %vm7787_vm9, %v6421_v44 }
 0x146   : > { %6423 = vmatpush1.msk.msra.mxu0 %vm7785_vm14, %v2183_v47  ;;  %6636 = vmatprep.subr.mxu1 %v6830_v0  ;;  %vm615_vm14 = vcmask 436528  }
 0x147   : > { %6424 = vmatmul.mubr.msk.f32.vlgmr.msra.gmra.mxu0 %vm7787_vm9, %v6421_v44  ;;  %v683_v49 = vpop.permute.xlu0 %682  ;;  %v697_v50 = vpop.permute.xlu1 %696  ;;  %6638 = vmatprep.mubr.msk.f32.mxu1 %vm6847_vm10, %v6830_v0  ;;  %vm629_vm9 = vcmask 584128  }
 0x148   : > { %686 = vst.msk [vmem:[#allocation3 + $0x4] sm:$0x7] %vm685_vm8, %v683_v49  ;;  %2425 = vmatprep.mubr.f32.mxu0 %v6830_v0  ;;  %vm755_vm8 = vcmask 862928  }
 0x149   : > { %700 = vst.msk [vmem:[#allocation3 + $0x4] sm:$0x7] %vm699_vm6, %v697_v50  ;;  %vm790_vm6 = vcmask 1043440  }
 0x14a   : > { %vm792_vm2 = vmor %vm791_vm1, %vm790_vm6  ;;  %vm2357_vm1 = vcmask 64512  }
 0x14b   : > { %v711_v51 = vpop.permute.xlu0 %710  ;;  %v725_v52 = vpop.permute.xlu1 %724 }
 0x14c   : > { %714 = vst.msk [vmem:[#allocation3 + $0x4] sm:$0x7] %vm713_vm0, %v711_v51  ;;  %vm769_vm0 = vcmask 1010528  }
 0x14d   : > { %728 = vst.msk [vmem:[#allocation3 + $0x4] sm:$0x7] %vm727_vm4, %v725_v52  ;;  %vm657_vm4 = vcmask 879328  }
 0x14f   : > { %v613_v53 = vpop.permute.xlu0 %612  ;;  %v739_v54 = vpop.permute.xlu1 %738 }
 0x150   : > { %616 = vst.msk [vmem:[#allocation3] sm:$0x7] %vm615_vm14, %v613_v53  ;;  %vm820_vm14 = vcmask 403728  }
 0x151   : > { %742 = vst.msk [vmem:[#allocation3 + $0x4] sm:$0x7] %vm741_vm13, %v739_v54  ;;  %vm806_vm13 = vcmask 256128  }
 0x153   : > { %v786_v55 = vpop.permute.xlu0 %785  ;;  %v627_v56 = vpop.permute.xlu1 %626 }
 0x154   : > { %630 = vst.msk [vmem:[#allocation3] sm:$0x7] %vm629_vm9, %v627_v56  ;;  %v787_v57 = vrot.slane %v786_v55, 4  ;;  %vm671_vm9 = vcmask 1026928  }
 0x156   : > { %v788_v60 = vsel %vm776_vm11, %v787_v57, %v786_v55  ;;  %vm7819_vm11 = vcmask 891904  }
 0x157   : > { %v753_v58 = vpop.permute.xlu0 %752  ;;  %v641_v59 = vpop.permute.xlu1 %640 }
 0x158   : > { %756 = vst.msk [vmem:[#allocation3 + $0x4] sm:$0x7] %vm755_vm8, %v753_v58  ;;  %vm7821_vm8 = vcmask 883712  }
 0x159   : > { %644 = vst.msk [vmem:[#allocation3] sm:$0x7] %vm643_vm15, %v641_v59  ;;  %vm7820_vm15 = vmmov %vm7819_vm11 }
 0x15a   : > { %vm7822_vm6 = vmmov %vm7821_vm8 }
 0x15b   : > { %v767_v61 = vpop.permute.xlu0 %766  ;;  %v655_v62 = vpop.permute.xlu1 %654 }
 0x15c   : > { %770 = vst.msk [vmem:[#allocation3 + $0x4] sm:$0x7] %vm769_vm0, %v767_v61  ;;  %vm7823_vm0 = vcmask 752640  }
 0x15d   : > { %658 = vst.msk [vmem:[#allocation3] sm:$0x7] %vm657_vm4, %v655_v62  ;;  %vm7824_vm4 = vmmov %vm7823_vm0 }
 0x15e   : > { %793 = vst.msk [vmem:[#allocation3 + $0x4] sm:$0x77] %vm792_vm2, %v788_v60  ;;  %vm2525_vm2 = vcmask 1042432  }
 0x15f   : > { %v669_v63 = vpop.permute.xlu0 %668  ;;  %v804_v1 = vpop.permute.xlu1 %803 }
 0x160   : > { %672 = vst.msk [vmem:[#allocation3] sm:$0x7] %vm671_vm9, %v669_v63  ;;  %vm7825_vm9 = vcmask 744448  }
 0x161   : > { %807 = vst.msk [vmem:[#allocation3 + $0x8] sm:$0x7] %vm806_vm13, %v804_v1  ;;  %vm7826_vm13 = vmmov %vm7825_vm9 }
 0x163   : > { %v818_v2 = vpop.permute.xlu0 %817  ;;  %v832_v3 = vpop.permute.xlu1 %831 }
 0x164   : > { %821 = vst.msk [vmem:[#allocation3 + $0x8] sm:$0x7] %vm820_vm14, %v818_v2  ;;  %vm7827_vm14 = vcmask 736256  }
 0x165   : > { %835 = vst.msk [vmem:[#allocation3 + $0x8] sm:$0x7] %vm834_vm5, %v832_v3  ;;  %vm2521_vm5 = vcmask 23552  }
 0x167   : > { %v7262_v4 = vld [vmem:[#allocation3] sm:$0x77] }
 0x168   : > { %v2993_v5 = vld [vmem:[#allocation3] sm:$0x77]  ;;  %2513 = vrot.lane.b32.xlu0 %v7262_v4, %s7814_s2  ;;  %v7268_v7 = vcombine.high %v7262_v4, %v7262_v4 }
 0x169   : > { %v2825_v6 = vld [vmem:[#allocation3] sm:$0x77]  ;;  %v2997_v8 = vcombine.high %v2993_v5, %v2993_v5 }
 0x16a   : > { %2515 = vrot.lane.b32.xlu1 %v7268_v7, %s7814_s2  ;;  %v2829_v9 = vcombine.high %v2825_v6, %v2825_v6  ;;  %v3329_v10 = vld [vmem:[#allocation3] sm:$0x77] }
 0x16b   : > { %v3333_v11 = vcombine.high %v3329_v10, %v3329_v10  ;;  %v3161_v13 = vld [vmem:[#allocation3] sm:$0x77] }
 0x16c   : > { %3000 = vrot.lane.b32.xlu0 %v2997_v8, %s7815_s25  ;;  %v7276_v12 = vld [vmem:[#allocation3 + $0x8] sm:$0x7]  ;;  %v3165_v15 = vcombine.high %v3161_v13, %v3161_v13  ;;  %v3665_v20 = vld [vmem:[#allocation3] sm:$0x77] }
 0x16d   : > { %v2826_v14 = vld [vmem:[#allocation3 + $0x8] sm:$0x7]  ;;  %v3497_v21 = vld [vmem:[#allocation3] sm:$0x77]  ;;  %v3669_v22 = vcombine.high %v3665_v20, %v3665_v20 }
 0x16e   : > { %2832 = vrot.lane.b32.xlu1 %v2829_v9, %s7816_s23  ;;  %v3162_v16 = vld [vmem:[#allocation3 + $0x8] sm:$0x7]  ;;  %v3501_v23 = vcombine.high %v3497_v21, %v3497_v21  ;;  %v3833_v27 = vld [vmem:[#allocation3] sm:$0x77] }
 0x16f   : > { %v2994_v17 = vld [vmem:[#allocation3 + $0x8] sm:$0x7]  ;;  %v3837_v28 = vcombine.high %v3833_v27, %v3833_v27 }
 0x170   : > { %2998 = vrot.lane.b32.xlu0 %v2993_v5, %s7815_s25  ;;  %v3498_v18 = vld [vmem:[#allocation3 + $0x8] sm:$0x7]  ;;  %v7308_v39 = vpop.permute.xlu0 %2341 }
 0x171   : > { %v3330_v19 = vld [vmem:[#allocation3 + $0x8] sm:$0x7] }
 0x172   : > { %2830 = vrot.lane.b32.xlu1 %v2825_v6, %s7816_s23  ;;  %v3834_v24 = vld [vmem:[#allocation3 + $0x8] sm:$0x7] }
 0x173   : > { %v3666_v25 = vld [vmem:[#allocation3 + $0x8] sm:$0x7] }
 0x174   : > { %3336 = vrot.lane.b32.xlu0 %v3333_v11, %s7817_s24 }
 0x176   : > { %2517 = vrot.lane.b32.xlu1 %v7276_v12, %s7814_s2 }
 0x178   : > { %2834 = vrot.lane.b32.xlu0 %v2826_v14, %s7816_s23 }
 0x17a   : > { %3168 = vrot.lane.b32.xlu1 %v3165_v15, %s7818_s26 }
 0x17c   : > { %3170 = vrot.lane.b32.xlu0 %v3162_v16, %s7818_s26 }
 0x17e   : > { %3166 = vrot.lane.b32.xlu1 %v3161_v13, %s7818_s26 }
 0x180   : > { %3334 = vrot.lane.b32.xlu0 %v3329_v10, %s7817_s24 }
 0x182   : > { %3002 = vrot.lane.b32.xlu1 %v2994_v17, %s7815_s25 }
 0x184   : > { %3506 = vrot.lane.b32.xlu0 %v3498_v18, %s7792_s30 }
 0x186   : > { %3338 = vrot.lane.b32.xlu1 %v3330_v19, %s7817_s24 }
 0x188   : > { %3672 = vrot.lane.b32.xlu0 %v3669_v22, %s6854_s19 }
 0x18a   : > { %3504 = vrot.lane.b32.xlu1 %v3501_v23, %s7792_s30 }
 0x18c   : > { %3670 = vrot.lane.b32.xlu0 %v3665_v20, %s6854_s19 }
 0x18e   : > { %3502 = vrot.lane.b32.xlu1 %v3497_v21, %s7792_s30  ;;  %s6858_s30 = smov 81  }
 0x190   : > { %3842 = vrot.lane.b32.xlu0 %v3834_v24, %s6855_s1 }
 0x192   : > { %3674 = vrot.lane.b32.xlu1 %v3666_v25, %s6854_s19 }
 0x194   : > { %4002 = vperm.xlu0 %6806, %v3999_v26  }
 0x196   : > { %3840 = vrot.lane.b32.xlu1 %v3837_v28, %s6855_s1 }
 0x198   : > { %2354 = vperm.xlu0 %6806, %v2351_v29  }
 0x19a   : > { %3838 = vrot.lane.b32.xlu1 %v3833_v27, %s6855_s1 }
 0x19e   : > { %4015 = vperm.xlu1 %6807, %v4012_v30  }
 0x1da   : > { %v7312_v49 = vpop.permute.xlu0 %2513 }
 0x1dc   : > { %v7306_v35 = vpop.permute.xlu1 %2515 }
 0x1de   : > { %v7316_v58 = vpop.permute.xlu0 %3000 }
 0x1e0   : > { %v7310_v40 = vpop.permute.xlu1 %2832 }
 0x1e2   : > { %v1001_v31 = vpop.f32.mrf.mxu1  ;;  %v7320_v10 = vpop.permute.xlu0 %2998 }
 0x1e3   : > { %v930_v32 = vpop.f32.mrf.mxu0 }
 0x1e4   : > { %v6595_v33 = vpop.f32.mrf.mxu1  ;;  %v7314_v50 = vpop.permute.xlu1 %2830 }
 0x1e5   : > { %v932_v34 = vpop.f32.mrf.mxu0 }
 0x1e6   : > { %v1151_v36 = vpop.f32.mrf.mxu1  ;;  %v7324_v26 = vpop.permute.xlu0 %3336 }
 0x1e7   : > { %v1080_v38 = vpop.f32.mrf.mxu0  ;;  %v1152_v41 = vadd.f32 %v1151_v36, %v1001_v31 }
 0x1e8   : > { %v6600_v37 = vpop.f32.mrf.mxu1  ;;  %v7318_v59 = vpop.permute.xlu1 %2517  ;;  %v1081_v63 = vadd.f32 %v1080_v38, %v930_v32 }
 0x1e9   : > { %v1082_v42 = vpop.f32.mrf.mxu0 }
 0x1ea   : > { %v1083_v3 = vadd.f32 %v1082_v42, %v932_v34 }
 0x1ec   : > { %v7322_v11 = vpop.permute.xlu1 %3168 }
 0x1ed   : > { %v1317_v43 = vpop.f32.mrf.mxu1 }
 0x1ee   : > { %v1323_v46 = vadd.f32 %v1317_v43, %v1152_v41 }
 0x1ef   : > { %v1246_v44 = vpop.f32.mrf.mxu0  ;;  %v6605_v45 = vpop.f32.mrf.mxu1 }
 0x1f0   : > { %v1321_v5 = vadd.f32 %v1246_v44, %v1081_v63  ;;  %v7326_v27 = vpop.permute.xlu1 %3166  ;;  %v2835_v45 = vpop.permute.xlu0 %2834  ;;  %v6446_v63 = vld [vmem:[%s7734_s6 + $0x18] sm:$0xff] }
 0x1f1   : > { %v1248_v47 = vpop.f32.mrf.mxu0  ;;  %v1486_v48 = vpop.f32.mrf.mxu1 }
 0x1f2   : > { %v1492_v53 = vadd.f32 %v1486_v48, %v1323_v46  ;;  %v1322_v13 = vadd.f32 %v1248_v47, %v1083_v3  ;;  %v2350_v48 = vld [vmem:[%s7732_s4] sm:$0xf] }
 0x1f3   : > { %v1415_v51 = vpop.f32.mrf.mxu0  ;;  %v6610_v52 = vpop.f32.mrf.mxu1  ;;  %v6452_v3 = vld [vmem:[%s7734_s6 + $0x20] sm:$0xff] }
 0x1f4   : > { %v1490_v14 = vadd.f32 %v1415_v51, %v1321_v5  ;;  %v3003_v51 = vpop.permute.xlu1 %3002 }
 0x1f5   : > { %v1417_v54 = vpop.f32.mrf.mxu0  ;;  %v1655_v55 = vpop.f32.mrf.mxu1 }
 0x1f6   : > { %v1661_v60 = vadd.f32 %v1655_v55, %v1492_v53  ;;  %v1491_v17 = vadd.f32 %v1417_v54, %v1322_v13  ;;  %v7338_v55 = vld [vmem:[#allocation4] sm:$0xff]  ;;  %v6464_v13 = vld [vmem:[%s7734_s6 + $0x30] sm:$0xff] }
 0x1f7   : > { %v1584_v56 = vpop.f32.mrf.mxu0  ;;  %v6615_v57 = vpop.f32.mrf.mxu1 }
 0x1f8   : > { %v1659_v18 = vadd.f32 %v1584_v56, %v1490_v14  ;;  %v6429_v56 = vld [vmem:[%s7734_s6 + $0x8] sm:$0xff]  ;;  %v3171_v57 = vpop.permute.xlu0 %3170 }
 0x1f9   : > { %v1586_v61 = vpop.f32.mrf.mxu0  ;;  %v1824_v62 = vpop.f32.mrf.mxu1 }
 0x1fa   : > { %v1830_v6 = vadd.f32 %v1824_v62, %v1661_v60  ;;  %v1660_v22 = vadd.f32 %v1586_v61, %v1491_v17  ;;  %v2520_v60 = vsel %vm7797_vm3, %v7306_v35, %v7318_v59  ;;  %v2519_v61 = vsel %vm7797_vm3, %v7312_v49, %v7306_v35  ;;  %v2505_v62 = vld [vmem:[%s7734_s6] sm:$0xff] }
 0x1fb   : > { %v1753_v1 = vpop.f32.mrf.mxu0  ;;  %v6620_v2 = vpop.f32.mrf.mxu1  ;;  %v2837_v35 = vsel %vm7796_vm7, %v7310_v40, %v2835_v45  ;;  %vm4242_vm3 = vcmask 261252  }
 0x1fc   : > { %v1828_v23 = vadd.f32 %v1753_v1, %v1659_v18  ;;  %v3173_v2 = vsel %vm7819_vm11, %v7322_v11, %v3171_v57  ;;  %v6470_v18 = vld [vmem:[%s7734_s6 + $0x38] sm:$0xff]  ;;  %vm7828_vm11 = vmmov %vm7827_vm14 }
 0x1fd   : > { %v1755_v8 = vpop.f32.mrf.mxu0  ;;  %v1993_v9 = vpop.f32.mrf.mxu1 }
 0x1fe   : > { %v1999_v19 = vadd.f32 %v1993_v9, %v1830_v6  ;;  %v1829_v28 = vadd.f32 %v1755_v8, %v1660_v22  ;;  %v6458_v9 = vld [vmem:[%s7734_s6 + $0x28] sm:$0xff] }
 0x1ff   : > { %v1922_v15 = vpop.f32.mrf.mxu0  ;;  %v6625_v16 = vpop.f32.mrf.mxu1 }
 0x200   : > { %v1997_v29 = vadd.f32 %v1922_v15, %v1828_v23  ;;  %v6476_v23 = vld [vmem:[%s7734_s6 + $0x40] sm:$0xff] }
 0x201   : > { %v1924_v20 = vpop.f32.mrf.mxu0  ;;  %v2162_v21 = vpop.f32.mrf.mxu1 }
 0x202   : > { %v2168_v30 = vadd.f32 %v2162_v21, %v1999_v19  ;;  %v1998_v33 = vadd.f32 %v1924_v20, %v1829_v28 }
 0x203   : > { %v2091_v24 = vpop.f32.mrf.mxu0  ;;  %v6630_v25 = vpop.f32.mrf.mxu1 }
 0x204   : > { %v2166_v34 = vadd.f32 %v2091_v24, %v1997_v29 }
 0x205   : > { %v2093_v31 = vpop.f32.mrf.mxu0  ;;  %v2331_v32 = vpop.f32.mrf.mxu1 }
 0x206   : > { %v2337_v36 = vadd.f32 %v2331_v32, %v2168_v30  ;;  %v2167_v41 = vadd.f32 %v2093_v31, %v1998_v33 }
 0x207   : > { %v2260_v37 = vpop.f32.mrf.mxu0  ;;  %v6635_v38 = vpop.f32.mrf.mxu1 }
 0x208   : > { %v2346_v42 = vadd.f32 %v7308_v39, %v2337_v36  ;;  %v2335_v43 = vadd.f32 %v2260_v37, %v2166_v34 }
 0x209   : > { %v2262_v44 = vpop.f32.mrf.mxu0 }
 0x20a   : > { %v2349_v46 = vmax.f32 %v2346_v42, 0.0  ;;  %v2336_v47 = vadd.f32 %v2262_v44, %v2167_v41  ;;  %v2344_v52 = vadd.f32 %v7308_v39, %v2335_v43 }
 0x20c   : > { %v2345_v53 = vadd.f32 %v7308_v39, %v2336_v47  ;;  %6637 = vmatpush3.msra.mxu1 %v2349_v46  ;;  %v2347_v39 = vmax.f32 %v2344_v52, 0.0 }
 0x20d   : > { %6639 = vmatmul.mubr.msk.f32.vlgmr.msra.gmra.mxu1 %vm2357_vm1, %v2350_v48  ;;  %6641 = vmatprep.subr.mxu1 %v6830_v0  ;;  %v3339_v0 = vpop.permute.xlu1 %3338 }
 0x20e   : > { %v2348_v54 = vmax.f32 %v2345_v53, 0.0  ;;  %6642 = vmatpush3.msk.msra.mxu1 %vm2525_vm2, %v7318_v59  ;;  %6643 = vmatprep.mubr.msk.f32.mxu1 %vm6847_vm10, %v7338_v55  ;;  %v2836_v59 = vsel %vm7796_vm7, %v7314_v50, %v7310_v40  ;;  %v3004_v50 = vsel %vm7795_vm12, %v7320_v10, %v7316_v58  ;;  %v3341_v6 = vsel %vm7821_vm8, %v7324_v26, %v3339_v0 }
 0x20f   : > { %6646 = vmatprep.subr.mxu1 %v7338_v55  ;;  %vm4195_vm8 = vcmask 154624   ;;  %vm4219_vm7 = vcmask 868052  }
 0x210   : > { %2391 = vmatprep.subr.mxu0 %v2348_v54 }
 0x211   : > { %2392 = vmatpush1.msra.mxu0 %v2347_v39  ;;  %6644 = vmatmul.mubr.msk.f32.vlgmr.msra.gmra.mxu1 %vm2521_vm5, %v6429_v56  ;;  %v3505_v49 = vpop.permute.xlu1 %3504 }
 0x212   : > { %6647 = vmatpush3.msk.msra.mxu1 %vm2525_vm2, %v7276_v12  ;;  %6427 = vmatmul.mubr.msk.f32.vlgmr.msra.gmra.mxu0 %vm2357_vm1, %v2350_v48  ;;  %v3335_v12 = vpop.permute.xlu0 %3334 }
 0x213   : > { %6430 = vmatprep.subr.msk.mxu0 %vm2525_vm2, %v2520_v60  ;;  %6648 = vmatprep.mubr.msk.f32.mxu1 %vm6847_vm10, %v7338_v55  ;;  %v3340_v10 = vsel %vm7822_vm6, %v3335_v12, %v7324_v26  ;;  %vm4225_vm6 = vcmask 109568  }
 0x214   : > { %6431 = vmatpush1.msk.msra.mxu0 %vm2525_vm2, %v2519_v61  ;;  %6651 = vmatprep.subr.mxu1 %v7338_v55 }
 0x215   : > { %6435 = vmatprep.subr.msk.mxu0 %vm2525_vm2, %v7268_v7  ;;  %2596 = vmatprep.mubr.f32.mxu0 %v7338_v55  ;;  %v6440_v7 = vld [vmem:[%s7734_s6 + $0x10] sm:$0xff]  ;;  %v3503_v40 = vpop.permute.xlu1 %3502 }
 0x216   : > { %6649 = vmatmul.mubr.msk.f32.vlgmr.msra.gmra.mxu1 %vm2521_vm5, %v2505_v62  ;;  %6432 = vmatmul.mubr.msk.f32.vlgmr.msra.gmra.mxu0 %vm2521_vm5, %v6429_v56  ;;  %v3507_v1 = vpop.permute.xlu0 %3506  ;;  %v3508_v16 = vsel %vm7824_vm4, %v3503_v40, %v3505_v49  ;;  %vm7833_vm4 = vcmask 880352  }
 0x217   : > { %6652 = vmatpush3.msk.msra.mxu1 %vm2525_vm2, %v2835_v45  ;;  %6436 = vmatpush1.msk.msra.mxu0 %vm2525_vm2, %v7262_v4  ;;  %v3005_v4 = vsel %vm7795_vm12, %v7316_v58, %v3003_v51  ;;  %v3172_v58 = vsel %vm7820_vm15, %v7326_v27, %v7322_v11  ;;  %v3509_v11 = vsel %vm7823_vm0, %v3505_v49, %v3507_v1  ;;  %vm7831_vm15 = vcmask 585152  }
 0x218   : > { %6441 = vmatprep.subr.msk.mxu0 %vm2525_vm2, %v2837_v35  ;;  %6653 = vmatprep.mubr.msk.f32.mxu1 %vm6847_vm10, %v7338_v55  ;;  %vm7832_vm0 = vcmask 732752   ;;  %vm4216_vm12 = vcmask 720452  }
 0x219   : > { %6656 = vmatprep.subr.mxu1 %v7338_v55  ;;  %2746 = vmatprep.mubr.f32.mxu0 %v7338_v55  ;;  %v3675_v8 = vpop.permute.xlu1 %3674 }
 0x21a   : > { %6654 = vmatmul.mubr.msk.f32.vlgmr.msra.gmra.mxu1 %vm2521_vm5, %v6440_v7  ;;  %6437 = vmatmul.mubr.msk.f32.vlgmr.msra.gmra.mxu0 %vm2521_vm5, %v2505_v62  ;;  %v3673_v5 = vpop.permute.xlu0 %3672 }
 0x21b   : > { %6657 = vmatpush3.msk.msra.mxu1 %vm2525_vm2, %v3003_v51  ;;  %6442 = vmatpush1.msk.msra.mxu0 %vm2525_vm2, %v2836_v59  ;;  %v3677_v17 = vsel %vm7825_vm9, %v3673_v5, %v3675_v8  ;;  %vm7834_vm9 = vcmask 1027952  }
 0x21c   : > { %6447 = vmatprep.subr.msk.mxu0 %vm2525_vm2, %v3005_v4  ;;  %6658 = vmatprep.mubr.msk.f32.mxu1 %vm6847_vm10, %v7338_v55 }
 0x21d   : > { %6661 = vmatprep.subr.mxu1 %v7338_v55  ;;  %2911 = vmatprep.mubr.f32.mxu0 %v7338_v55  ;;  %v3841_v15 = vpop.permute.xlu1 %3840 }
 0x21e   : > { %6659 = vmatmul.mubr.msk.f32.vlgmr.msra.gmra.mxu1 %vm2521_vm5, %v6446_v63  ;;  %6443 = vmatmul.mubr.msk.f32.vlgmr.msra.gmra.mxu0 %vm2521_vm5, %v6440_v7  ;;  %v3671_v14 = vpop.permute.xlu0 %3670 }
 0x21f   : > { %6662 = vmatpush3.msk.msra.mxu1 %vm2525_vm2, %v3171_v57  ;;  %6448 = vmatpush1.msk.msra.mxu0 %vm2525_vm2, %v3004_v50  ;;  %v3676_v20 = vsel %vm7826_vm13, %v3671_v14, %v3673_v5  ;;  %vm7835_vm13 = vcmask 273552  }
 0x220   : > { %6453 = vmatprep.subr.msk.mxu0 %vm2525_vm2, %v3173_v2  ;;  %6663 = vmatprep.mubr.msk.f32.mxu1 %vm6847_vm10, %v7338_v55 }
 0x221   : > { %6666 = vmatprep.subr.mxu1 %v7338_v55  ;;  %3079 = vmatprep.mubr.f32.mxu0 %v7338_v55  ;;  %v3839_v22 = vpop.permute.xlu1 %3838 }
 0x222   : > { %6664 = vmatmul.mubr.msk.f32.vlgmr.msra.gmra.mxu1 %vm2521_vm5, %v6452_v3  ;;  %6449 = vmatmul.mubr.msk.f32.vlgmr.msra.gmra.mxu0 %vm2521_vm5, %v6446_v63  ;;  %v3843_v19 = vpop.permute.xlu0 %3842  ;;  %v3844_v24 = vsel %vm7828_vm11, %v3839_v22, %v3841_v15  ;;  %vm7837_vm11 = vcmask 568752  }
 0x223   : > { %6667 = vmatpush3.msk.msra.mxu1 %vm2525_vm2, %v3339_v0  ;;  %6454 = vmatpush1.msk.msra.mxu0 %vm2525_vm2, %v3172_v58  ;;  %v3845_v21 = vsel %vm7827_vm14, %v3841_v15, %v3843_v19  ;;  %vm7836_vm14 = vcmask 421152  }
 0x224   : > { %6459 = vmatprep.subr.msk.mxu0 %vm2525_vm2, %v3341_v6  ;;  %6668 = vmatprep.mubr.msk.f32.mxu1 %vm6847_vm10, %v7338_v55 }
 0x225   : > { %6671 = vmatprep.subr.mxu1 %v7338_v55  ;;  %3247 = vmatprep.mubr.f32.mxu0 %v7338_v55 }
 0x226   : > { %6669 = vmatmul.mubr.msk.f32.vlgmr.msra.gmra.mxu1 %vm2521_vm5, %v6458_v9  ;;  %6455 = vmatmul.mubr.msk.f32.vlgmr.msra.gmra.mxu0 %vm2521_vm5, %v6452_v3  ;;  %v7485_v25 = vpop.permute.xlu0 %4002 }
 0x227   : > { %6672 = vmatpush3.msk.msra.mxu1 %vm2525_vm2, %v3507_v1  ;;  %6460 = vmatpush1.msk.msra.mxu0 %vm2525_vm2, %v3340_v10 }
 0x228   : > { %6465 = vmatprep.subr.msk.mxu0 %vm2525_vm2, %v3509_v11  ;;  %6673 = vmatprep.mubr.msk.f32.mxu1 %vm6847_vm10, %v7338_v55 }
 0x229   : > { %6676 = vmatprep.subr.mxu1 %v7338_v55  ;;  %3415 = vmatprep.mubr.f32.mxu0 %v7338_v55 }
 0x22a   : > { %6674 = vmatmul.mubr.msk.f32.vlgmr.msra.gmra.mxu1 %vm2521_vm5, %v6464_v13  ;;  %6461 = vmatmul.mubr.msk.f32.vlgmr.msra.gmra.mxu0 %vm2521_vm5, %v6458_v9  ;;  %v2355_v29 = vpop.permute.xlu0 %2354 }
 0x22b   : > { %6677 = vmatpush3.msk.msra.mxu1 %vm2525_vm2, %v3675_v8  ;;  %6466 = vmatpush1.msk.msra.mxu0 %vm2525_vm2, %v3508_v16 }
 0x22c   : > { %6471 = vmatprep.subr.msk.mxu0 %vm2525_vm2, %v3677_v17  ;;  %6678 = vmatprep.mubr.msk.f32.mxu1 %vm6847_vm10, %v7338_v55 }
 0x22d   : > { %6681 = vmatprep.subr.mxu1 %v7338_v55  ;;  %3583 = vmatprep.mubr.f32.mxu0 %v7338_v55 }
 0x22e   : > { %6679 = vmatmul.mubr.msk.f32.vlgmr.msra.gmra.mxu1 %vm2521_vm5, %v6470_v18  ;;  %6467 = vmatmul.mubr.msk.f32.vlgmr.msra.gmra.mxu0 %vm2521_vm5, %v6464_v13 }
 0x22f   : > { %6682 = vmatpush3.msk.msra.mxu1 %vm2525_vm2, %v3843_v19  ;;  %6472 = vmatpush1.msk.msra.mxu0 %vm2525_vm2, %v3676_v20 }
 0x230   : > { %6477 = vmatprep.subr.msk.mxu0 %vm2525_vm2, %v3845_v21  ;;  %6683 = vmatprep.mubr.msk.f32.mxu1 %vm6847_vm10, %v7338_v55 }
 0x231   : > { %3751 = vmatprep.mubr.f32.mxu0 %v7338_v55  ;;  %6686 = vmatprep.subr.mxu1 %v7338_v55 }
 0x232   : > { %6684 = vmatmul.mubr.msk.f32.vlgmr.msra.gmra.mxu1 %vm2521_vm5, %v6476_v23  ;;  %6473 = vmatmul.mubr.msk.f32.vlgmr.msra.gmra.mxu0 %vm2521_vm5, %v6470_v18 }
 0x233   : > { %6478 = vmatpush1.msk.msra.mxu0 %vm2525_vm2, %v3844_v24  ;;  %3919 = vmatprep.mubr.f32.mxu0 %v7338_v55  ;;  %vm7829_vm2 = vcmask 437552  }
 0x234   : > { %6688 = vmatprep.mubr.msk.f32.mxu1 %vm6847_vm10, %v7338_v55 }
 0x236   : > { %6479 = vmatmul.mubr.msk.f32.vlgmr.msra.gmra.mxu0 %vm2521_vm5, %v6476_v23  ;;  %vm7830_vm5 = vcmask 125952  }
 0x237   : > { %4085 = vmatprep.mubr.f32.mxu0 %v7338_v55 }
 0x2cd   : > { %v2498_v26 = vpop.f32.mrf.mxu1 }
 0x2ce   : > { %v2499_v43 = vadd.f32 %v2498_v26, %v2355_v29 }
 0x2cf   : > { %v6640_v27 = vpop.f32.mrf.mxu1 }
 0x2d0   : > { %v2504_v52 = vmax.f32 %v2499_v43, 0.0 }
 0x2d1   : > { %v2669_v28 = vpop.f32.mrf.mxu1 }
 0x2d2   : > { %v2427_v30 = vpop.f32.mrf.mxu0 }
 0x2d3   : > { %v2428_v31 = vadd.f32 %v2427_v30, %v2355_v29  ;;  %v6645_v32 = vpop.f32.mrf.mxu1 }
 0x2d4   : > { %v2429_v33 = vpop.f32.mrf.mxu0 }
 0x2d5   : > { %v2502_v34 = vmax.f32 %v2428_v31, 0.0  ;;  %v2430_v36 = vadd.f32 %v2429_v33, %v2355_v29 }
 0x2d6   : > { %v2819_v37 = vpop.f32.mrf.mxu1  ;;  %v2598_v38 = vpop.f32.mrf.mxu0 }
 0x2d7   : > { %4166 = vrot.lane.b32.xlu1 %v2502_v34, %s6857_s28  ;;  %v2503_v44 = vmax.f32 %v2430_v36, 0.0  ;;  %v2820_v45 = vadd.f32 %v2819_v37, %v2669_v28  ;;  %v4011_v36 = vld [vmem:[%s7736_s8] sm:$0xf] }
 0x2d8   : > { %v6650_v41 = vpop.f32.mrf.mxu1  ;;  %v2600_v42 = vpop.f32.mrf.mxu0 }
 0x2da   : > { %v2984_v46 = vpop.f32.mrf.mxu1  ;;  %v2748_v47 = vpop.f32.mrf.mxu0 }
 0x2db   : > { %4193 = vrot.lane.b32.xlu1 %v2503_v44, %s6857_s28  ;;  %v2990_v53 = vadd.f32 %v2984_v46, %v2820_v45  ;;  %v2749_v63 = vadd.f32 %v2748_v47, %v2598_v38  ;;  %v4016_v45 = vpop.permute.xlu1 %4015 }
 0x2dc   : > { %v6655_v48 = vpop.f32.mrf.mxu1  ;;  %v2750_v51 = vpop.f32.mrf.mxu0 }
 0x2dd   : > { %v2751_v2 = vadd.f32 %v2750_v51, %v2600_v42 }
 0x2de   : > { %v3152_v54 = vpop.f32.mrf.mxu1  ;;  %v2913_v56 = vpop.f32.mrf.mxu0 }
 0x2df   : > { %4231 = vrot.lane.b32.xlu1 %v2504_v52, %s6857_s28  ;;  %v3158_v0 = vadd.f32 %v3152_v54, %v2990_v53  ;;  %v2988_v3 = vadd.f32 %v2913_v56, %v2749_v63 }
 0x2e0   : > { %v6660_v39 = vpop.f32.mrf.mxu1  ;;  %v2915_v57 = vpop.f32.mrf.mxu0 }
 0x2e1   : > { %v2989_v6 = vadd.f32 %v2915_v57, %v2751_v2 }
 0x2e2   : > { %v3320_v60 = vpop.f32.mrf.mxu1  ;;  %v3081_v61 = vpop.f32.mrf.mxu0 }
 0x2e3   : > { %v3326_v35 = vadd.f32 %v3320_v60, %v3158_v0  ;;  %v3156_v8 = vadd.f32 %v3081_v61, %v2988_v3 }
 0x2e4   : > { %v6665_v62 = vpop.f32.mrf.mxu1  ;;  %v3083_v12 = vpop.f32.mrf.mxu0 }
 0x2e5   : > { %v3157_v13 = vadd.f32 %v3083_v12, %v2989_v6 }
 0x2e6   : > { %v3488_v49 = vpop.f32.mrf.mxu1  ;;  %v3249_v7 = vpop.f32.mrf.mxu0 }
 0x2e7   : > { %v3494_v1 = vadd.f32 %v3488_v49, %v3326_v35  ;;  %v3324_v14 = vadd.f32 %v3249_v7, %v3156_v8 }
 0x2e8   : > { %v6670_v59 = vpop.f32.mrf.mxu1  ;;  %v3251_v4 = vpop.f32.mrf.mxu0 }
 0x2e9   : > { %v3325_v17 = vadd.f32 %v3251_v4, %v3157_v13 }
 0x2ea   : > { %v3656_v40 = vpop.f32.mrf.mxu1  ;;  %v3417_v50 = vpop.f32.mrf.mxu0 }
 0x2eb   : > { %v3662_v9 = vadd.f32 %v3656_v40, %v3494_v1  ;;  %v3492_v18 = vadd.f32 %v3417_v50, %v3324_v14 }
 0x2ec   : > { %v6675_v58 = vpop.f32.mrf.mxu1  ;;  %v3419_v5 = vpop.f32.mrf.mxu0 }
 0x2ed   : > { %v3493_v22 = vadd.f32 %v3419_v5, %v3325_v17 }
 0x2ee   : > { %v3824_v10 = vpop.f32.mrf.mxu1  ;;  %v3585_v11 = vpop.f32.mrf.mxu0 }
 0x2ef   : > { %v3830_v19 = vadd.f32 %v3824_v10, %v3662_v9  ;;  %v3660_v23 = vadd.f32 %v3585_v11, %v3492_v18  ;;  %v4351_v18 = vld [vmem:[%s7739_s11] sm:$0xff] }
 0x2f0   : > { %v6680_v15 = vpop.f32.mrf.mxu1  ;;  %v3587_v16 = vpop.f32.mrf.mxu0 }
 0x2f1   : > { %v3661_v28 = vadd.f32 %v3587_v16, %v3493_v22  ;;  %v4276_v15 = vld [vmem:[%s7738_s10] sm:$0xff] }
 0x2f2   : > { %v3992_v20 = vpop.f32.mrf.mxu1  ;;  %v3753_v21 = vpop.f32.mrf.mxu0 }
 0x2f3   : > { %v3998_v24 = vadd.f32 %v3992_v20, %v3830_v19  ;;  %v3828_v30 = vadd.f32 %v3753_v21, %v3660_v23 }
 0x2f4   : > { %v3755_v26 = vpop.f32.mrf.mxu0  ;;  %v6685_v27 = vpop.f32.mrf.mxu1 }
 0x2f5   : > { %v4007_v29 = vadd.f32 %v7485_v25, %v3998_v24  ;;  %v3829_v33 = vadd.f32 %v3755_v26, %v3661_v28 }
 0x2f6   : > { %v3921_v31 = vpop.f32.mrf.mxu0 }
 0x2f7   : > { %v4010_v32 = vmax.f32 %v4007_v29, 0.0  ;;  %v3996_v34 = vadd.f32 %v3921_v31, %v3828_v30  ;;  %v5870_v31 = vld [vmem:[%s7741_s13] sm:$0xff] }
 0x2f8   : > { %v3923_v37 = vpop.f32.mrf.mxu0 }
 0x2f9   : > { %v3997_v38 = vadd.f32 %v3923_v37, %v3829_v33  ;;  %6687 = vmatpush3.msra.mxu1 %v4010_v32  ;;  %v4005_v41 = vadd.f32 %v7485_v25, %v3996_v34  ;;  %v6036_v32 = vld [vmem:[#allocation2] sm:$0xff] }
 0x2fa   : > { %6689 = vmatmul.mubr.msk.f32.vlgmr.msra.gmra.mxu1 %vm2357_vm1, %v4011_v36  ;;  %6696 = vmatprep.subr.mxu1 %v7338_v55  ;;  %v6040_v33 = vcombine.high %v6036_v32, %v6036_v32  ;;  %v5883_v34 = vld [vmem:[%s7743_s15] sm:$0xf] }
 0x2fb   : > { %v4006_v42 = vadd.f32 %v7485_v25, %v3997_v38  ;;  %6698 = vmatprep.mubr.msk.f32.mxu1 %vm6847_vm10, %v7338_v55  ;;  %v4008_v44 = vmax.f32 %v4005_v41, 0.0  ;;  %v6056_v37 = vld [vmem:[%s7745_s17] sm:$0xf] }
 0x2fd   : > { %v4009_v43 = vmax.f32 %v4006_v42, 0.0  ;;  %v6487_v42 = vld [vmem:[%s7740_s12 + $0x8] sm:$0xff] }
 0x2ff   : > { %4051 = vmatprep.subr.mxu0 %v4009_v43 }
 0x300   : > { %4052 = vmatpush1.msra.mxu0 %v4008_v44 }
 0x301   : > { %6482 = vmatmul.mubr.msk.f32.vlgmr.msra.gmra.mxu0 %vm2357_vm1, %v4011_v36  ;;  %6691 = vmatprep.subr.mxu0 %v7338_v55  ;;  %v6037_v36 = vld [vmem:[#allocation2 + $0x8] sm:$0xf] }
 0x302   : > { %6693 = vmatprep.mubr.msk.f32.mxu0 %vm6847_vm10, %v7338_v55 }
 0x349   : > { %v4167_v46 = vpop.permute.xlu1 %4166 }
 0x34a   : > { %4169 = vst.msk [vmem:[#allocation4] sm:$0xf] %vm7829_vm2, %v4167_v46  ;;  %vm7838_vm2 = vcmask 716352  }
 0x34b   : > { %4189 = vst.msk [vmem:[#allocation4 + $0x8] sm:$0xf] %vm7830_vm5, %v4167_v46  ;;  %vm7839_vm5 = vcmask 863952  }
 0x34c   : > { %4177 = vst.msk [vmem:[#allocation4] sm:$0xf] %vm7831_vm15, %v4167_v46  ;;  %vm7840_vm15 = vcmask 257152  }
 0x34d   : > { %4180 = vst.msk [vmem:[#allocation4] sm:$0xf] %vm7832_vm0, %v4167_v46  ;;  %v4194_v25 = vpop.permute.xlu1 %4193  ;;  %vm7841_vm0 = vcmask 1011552  }
 0x34e   : > { %4183 = vst.msk [vmem:[#allocation4] sm:$0xf] %vm7833_vm4, %v4167_v46  ;;  %v4196_v47 = vsel %vm4195_vm8, %v4167_v46, %v4194_v25  ;;  %vm7842_vm4 = vcmask 404752  }
 0x34f   : > { %4186 = vst.msk [vmem:[#allocation4] sm:$0xf] %vm7834_vm9, %v4167_v46  ;;  %vm7844_vm9 = vcmask 552352   ;;  %v4442_v46 = vld [vmem:[%s7740_s12] sm:$0xff] }
 0x350   : > { %4226 = vst.msk [vmem:[#allocation4 + $0x10] sm:$0xf] %vm4225_vm6, %v4194_v25  ;;  %vm7843_vm6 = vcmask 1044464  }
 0x351   : > { %4198 = vst.msk [vmem:[#allocation4 + $0x8] sm:$0xf] %vm7835_vm13, %v4196_v47  ;;  %v4232_v48 = vpop.permute.xlu1 %4231  ;;  %vm4175_vm13 = vcmask 441652  }
 0x352   : > { %4208 = vst.msk [vmem:[#allocation4 + $0x8] sm:$0xf] %vm7836_vm14, %v4194_v25  ;;  %v4233_v51 = vsel %vm4195_vm8, %v4194_v25, %v4232_v48  ;;  %vm4190_vm14 = vcmask 130052  }
 0x353   : > { %4212 = vst.msk [vmem:[#allocation4 + $0x8] sm:$0xf] %vm7837_vm11, %v4194_v25  ;;  %vm4178_vm11 = vcmask 589252  }
 0x354   : > { %4215 = vst.msk [vmem:[#allocation4 + $0x8] sm:$0xf] %vm7838_vm2, %v4194_v25  ;;  %vm4181_vm2 = vcmask 736852  }
 0x355   : > { %4218 = vst.msk [vmem:[#allocation4 + $0x8] sm:$0xf] %vm7839_vm5, %v4194_v25  ;;  %vm4184_vm5 = vcmask 884452  }
 0x356   : > { %4235 = vst.msk [vmem:[#allocation4 + $0x10] sm:$0xf] %vm7840_vm15, %v4233_v51  ;;  %vm4187_vm15 = vcmask 1032052  }
 0x357   : > { %4221 = vst.msk [vmem:[#allocation4 + $0x8] sm:$0xf] %vm7841_vm0, %v4194_v25  ;;  %vm4205_vm0 = vcmask 277652  }
 0x358   : > { %4245 = vst.msk [vmem:[#allocation4 + $0x10] sm:$0xf] %vm7842_vm4, %v4232_v48  ;;  %vm4210_vm4 = vcmask 425252  }
 0x359   : > { %4224 = vst.msk [vmem:[#allocation4 + $0x8] sm:$0xf] %vm7843_vm6, %v4194_v25  ;;  %vm4213_vm6 = vcmask 572852  }
 0x35a   : > { %4249 = vst.msk [vmem:[#allocation4 + $0x10] sm:$0xf] %vm7844_vm9, %v4232_v48  ;;  %vm7845_vm9 = vcmask 113668   ;;  %v6492_v48 = vld [vmem:[%s7740_s12 + $0x10] sm:$0xff] }
 0x3ba   : > { %v4158_v52 = vpop.f32.mrf.mxu1 }
 0x3bb   : > { %v4159_v61 = vadd.f32 %v4158_v52, %v4016_v45 }
 0x3bc   : > { %v6690_v53 = vpop.f32.mrf.mxu1 }
 0x3bd   : > { %v4164_v12 = vmax.f32 %v4159_v61, 0.0 }
 0x3bf   : > { %v4237_v49 = vrot.slane %v4164_v12, 4 }
 0x3c1   : > { %v4087_v54 = vpop.f32.mrf.mxu0 }
 0x3c2   : > { %v4088_v56 = vadd.f32 %v4087_v54, %v4016_v45  ;;  %v6495_v54 = vld [vmem:[%s7740_s12 + $0x18] sm:$0xff] }
 0x3c3   : > { %v4089_v39 = vpop.f32.mrf.mxu0 }
 0x3c4   : > { %v4162_v57 = vmax.f32 %v4088_v56, 0.0  ;;  %v4090_v0 = vadd.f32 %v4089_v39, %v4016_v45 }
 0x3c6   : > { %v4171_v60 = vrot.slane %v4162_v57, 4  ;;  %v4163_v62 = vmax.f32 %v4090_v0, 0.0 }
 0x3c8   : > { %4172 = vrot.lane.b32.xlu0 %v4171_v60, %s6857_s28  ;;  %v4200_v35 = vrot.slane %v4163_v62, 4 }
 0x3cc   : > { %4201 = vrot.lane.b32.xlu0 %v4200_v35, %s6857_s28  ;;  %v6498_v35 = vld [vmem:[%s7740_s12 + $0x20] sm:$0xff] }
 0x3d0   : > { %4238 = vrot.lane.b32.xlu0 %v4237_v49, %s6857_s28  ;;  %s6861_s28 = smov 107  }
 0x43a   : > { %v4173_v7 = vpop.permute.xlu0 %4172 }
 0x43b   : > { %4176 = vst.msk [vmem:[#allocation4] sm:$0xf0] %vm4175_vm13, %v4173_v7  ;;  %vm4222_vm13 = vcmask 1015652  }
 0x43c   : > { %4191 = vst.msk [vmem:[#allocation4 + $0x8] sm:$0xf0] %vm4190_vm14, %v4173_v7  ;;  %vm4247_vm14 = vcmask 408852  }
 0x43d   : > { %4179 = vst.msk [vmem:[#allocation4] sm:$0xf0] %vm4178_vm11, %v4173_v7  ;;  %vm4227_vm11 = vcmask 1048564  }
 0x43e   : > { %4182 = vst.msk [vmem:[#allocation4] sm:$0xf0] %vm4181_vm2, %v4173_v7  ;;  %v4202_v59 = vpop.permute.xlu0 %4201  ;;  %vm4250_vm2 = vcmask 556452  }
 0x43f   : > { %4185 = vst.msk [vmem:[#allocation4] sm:$0xf0] %vm4184_vm5, %v4173_v7  ;;  %v4203_v4 = vsel %vm4195_vm8, %v4173_v7, %v4202_v59 }
 0x440   : > { %4188 = vst.msk [vmem:[#allocation4] sm:$0xf0] %vm4187_vm15, %v4173_v7  ;;  %vm7851_vm15 = vcmask 1031168  }
 0x441   : > { %4229 = vst.msk [vmem:[#allocation4 + $0x10] sm:$0xf0] %vm7845_vm9, %v4202_v59 }
 0x442   : > { %4206 = vst.msk [vmem:[#allocation4 + $0x8] sm:$0xf0] %vm4205_vm0, %v4203_v4  ;;  %v4239_v63 = vpop.permute.xlu0 %4238  ;;  %vm7852_vm0 = vmmov %vm7851_vm15 }
 0x443   : > { %4211 = vst.msk [vmem:[#allocation4 + $0x8] sm:$0xf0] %vm4210_vm4, %v4202_v59  ;;  %v4240_v1 = vsel %vm4195_vm8, %v4202_v59, %v4239_v63  ;;  %vm7846_vm8 = vcmask 891904   ;;  %vm7853_vm4 = vcmask 900096  }
 0x444   : > { %4214 = vst.msk [vmem:[#allocation4 + $0x8] sm:$0xf0] %vm4213_vm6, %v4202_v59  ;;  %vm7854_vm6 = vmmov %vm7853_vm4 }
 0x445   : > { %4217 = vst.msk [vmem:[#allocation4 + $0x8] sm:$0xf0] %vm4216_vm12, %v4202_v59  ;;  %vm4270_vm12 = vcmask 556032  }
 0x446   : > { %4220 = vst.msk [vmem:[#allocation4 + $0x8] sm:$0xf0] %vm4219_vm7, %v4202_v59  ;;  %vm7849_vm7 = vcmask 1039360  }
 0x447   : > { %4243 = vst.msk [vmem:[#allocation4 + $0x10] sm:$0xf0] %vm4242_vm3, %v4240_v1  ;;  %v4252_v40 = vld [vmem:[#allocation4] sm:$0xff]  ;;  %vm7847_vm3 = vmmov %vm7846_vm8 }
 0x448   : > { %4223 = vst.msk [vmem:[#allocation4 + $0x8] sm:$0xf0] %vm4222_vm13, %v4202_v59  ;;  %4258 = vrot.lane.b32.xlu1 %v4252_v40, %s7818_s26  ;;  %vm7850_vm5 = vmmov %vm7849_vm7 }
 0x449   : > { %4248 = vst.msk [vmem:[#allocation4 + $0x10] sm:$0xf0] %vm4247_vm14, %v4239_v63  ;;  %vm7855_vm9 = vmmov %vm7847_vm3  ;;  %vm7857_vm14 = vcmask 883712  }
 0x44a   : > { %4228 = vst.msk [vmem:[#allocation4 + $0x8] sm:$0xf0] %vm4227_vm11, %v4202_v59  ;;  %vm7856_vm13 = vmmov %vm7847_vm3 }
 0x44b   : > { %4251 = vst.msk [vmem:[#allocation4 + $0x10] sm:$0xf0] %vm4250_vm2, %v4239_v63  ;;  %vm7858_vm11 = vmmov %vm7857_vm14  ;;  %vm7859_vm2 = vcmask 752640  }
 0x451   : > { %v4253_v50 = vld [vmem:[#allocation4 + $0x8] sm:$0xff] }
 0x452   : > { %v4254_v2 = vld [vmem:[#allocation4 + $0x10] sm:$0xff]  ;;  %4260 = vrot.lane.b32.xlu0 %v4253_v50, %s7818_s26 }
 0x453   : > { %4262 = vrot.lane.b32.xlu1 %v4254_v2, %s7818_s26 }
 0x4ba   : > { %v4259_v3 = vpop.permute.xlu1 %4258 }
 0x4c4   : > { %v4261_v5 = vpop.permute.xlu0 %4260 }
 0x4c5   : > { %v4263_v58 = vpop.permute.xlu1 %4262  ;;  %v4264_v6 = vsel %vm7846_vm8, %v4259_v3, %v4261_v5  ;;  %vm7861_vm8 = vcmask 744448  }
 0x4c6   : > { %v4265_v8 = vsel %vm7847_vm3, %v4261_v5, %v4263_v58  ;;  %v4271_v10 = vsel %vm4270_vm12, %v4263_v58, 0.0  ;;  %v6504_v5 = vld [vmem:[%s7740_s12 + $0x30] sm:$0xff]  ;;  %vm7860_vm12 = vmmov %vm7859_vm2 }
 0x4c7   : > { %v4269_v9 = vadd.f32 %v4265_v8, %v4264_v6  ;;  %vm7862_vm3 = vmmov %vm7861_vm8 }
 0x4c9   : > { %v4272_v11 = vadd.f32 %v4271_v10, %v4269_v9 }
 0x4cb   : > { %4273 = vadd.xlane.f32.xlu0 %v4272_v11  ;;  %v6507_v11 = vld [vmem:[%s7740_s12 + $0x38] sm:$0xff] }
 0x554   : > { %v4274_v13 = vpop.xlane.xlu0 %4273 }
 0x555   : > { %v4275_v14 = vmul.f32 0.00390625, %v4274_v13 }
 0x557   : > { %6692 = vmatpush3.msra.mxu0 %v4275_v14 }
 0x558   : > { %6694 = vmatmul.mubr.msk.f32.vlgmr.msra.gmra.mxu0 %vm2357_vm1, %v4276_v15 }
 0x559   : > { %4529 = vmatprep.mubr.f32.mxu0 %v7338_v55 }
 0x618   : > { %v4346_v16 = vpop.f32.mrf.mxu0 }
 0x619   : > { %v4350_v17 = vmax.f32 %v4346_v16, 0.0 }
 0x61a   : > { %v6695_v19 = vpop.f32.mrf.mxu0 }
 0x61b   : > { %6697 = vmatpush3.msra.mxu1 %v4350_v17  ;;  %v6510_v17 = vld [vmem:[%s7740_s12 + $0x40] sm:$0xff] }
 0x61c   : > { %6699 = vmatmul.mubr.msk.f32.vlgmr.msra.gmra.mxu1 %vm2357_vm1, %v4351_v18  ;;  %6701 = vmatprep.subr.mxu1 %v7338_v55 }
 0x61d   : > { %6703 = vmatprep.mubr.msk.f32.mxu1 %vm6847_vm10, %v7338_v55 }
 0x6dc   : > { %v4421_v20 = vpop.f32.mrf.mxu1 }
 0x6dd   : > { %v6486_v21 = vmul.f32 -1.442695, %v4421_v20 }
 0x6de   : > { %v6700_v22 = vpop.f32.mrf.mxu1 }
 0x6df   : > { %6817 = vpow2.f32 %v6486_v21 }
 0x6ec   : > { %v6818_v23 = vpop.eup %6817 }
 0x6ed   : > { %v4428_v24 = vadd.f32 1.0, %v6818_v23 }
 0x6ef   : > { %6819 = vrcp.f32 %v4428_v24 }
 0x6fc   : > { %v6820_v26 = vpop.eup %6819 }
 0x6fd   : > { %4433 = vperm.xlu1 %6807, %v6820_v26  }
 0x778   : > { %v4434_v27 = vpop.permute.xlu1 %4433 }
 0x779   : > { %v4436_v28 = vmul.f32 %v4434_v27, %v4252_v40  ;;  %v4437_v29 = vmul.f32 %v4434_v27, %v4253_v50  ;;  %v4438_v30 = vmul.f32 %v4434_v27, %v4254_v2  ;;  %v6501_v40 = vld [vmem:[%s7740_s12 + $0x28] sm:$0xff] }
 0x77b   : > { %4439 = vst [vmem:[#allocation4] sm:$0xff] %v4436_v28  ;;  %4440 = vst [vmem:[#allocation4 + $0x8] sm:$0xff] %v4437_v29  ;;  %4916 = vrot.lane.b32.xlu0 %v4438_v30, %s7815_s25  ;;  %4453 = vrot.lane.b32.xlu1 %v4437_v29, %s7814_s2 }
 0x77c   : > { %4441 = vst [vmem:[#allocation4 + $0x10] sm:$0xff] %v4438_v30 }
 0x77f   : > { %4455 = vrot.lane.b32.xlu1 %v4438_v30, %s7814_s2  ;;  %5232 = vrot.lane.b32.xlu0 %v4436_v28, %s7817_s24 }
 0x783   : > { %5396 = vrot.lane.b32.xlu0 %v4438_v30, %s7848_s20  ;;  %4451 = vrot.lane.b32.xlu1 %v4436_v28, %s7814_s2  ;;  %s6865_s2 = smov 87  }
 0x787   : > { %5554 = vrot.lane.b32.xlu0 %v4437_v29, %s6854_s19  ;;  %4754 = vrot.lane.b32.xlu1 %v4437_v29, %s7816_s23 }
 0x78b   : > { %5552 = vrot.lane.b32.xlu0 %v4436_v28, %s6854_s19  ;;  %4756 = vrot.lane.b32.xlu1 %v4438_v30, %s7816_s23 }
 0x78f   : > { %5716 = vrot.lane.b32.xlu0 %v4438_v30, %s6855_s1  ;;  %4752 = vrot.lane.b32.xlu1 %v4436_v28, %s7816_s23  ;;  %s6868_s23 = smov 83  }
 0x793   : > { %5873 = vperm.xlu0 %6806, %v5870_v31   ;;  %4914 = vrot.lane.b32.xlu1 %v4437_v29, %s7815_s25 }
 0x797   : > { %6043 = vrot.lane.b32.xlu0 %v6040_v33, %s7818_s26  ;;  %4912 = vrot.lane.b32.xlu1 %v4436_v28, %s7815_s25  ;;  %s6866_s25 = smov 99  }
 0x79b   : > { %6041 = vrot.lane.b32.xlu0 %v6036_v32, %s7818_s26  ;;  %5074 = vrot.lane.b32.xlu1 %v4437_v29, %s7818_s26 }
 0x79f   : > { %5076 = vrot.lane.b32.xlu1 %v4438_v30, %s7818_s26 }
 0x7a3   : > { %5072 = vrot.lane.b32.xlu1 %v4436_v28, %s7818_s26 }
 0x7a7   : > { %5234 = vrot.lane.b32.xlu1 %v4437_v29, %s7817_s24 }
 0x7ab   : > { %5236 = vrot.lane.b32.xlu1 %v4438_v30, %s7817_s24  ;;  %s6869_s24 = smov 79  }
 0x7af   : > { %5394 = vrot.lane.b32.xlu1 %v4437_v29, %s7848_s20 }
 0x7b3   : > { %5392 = vrot.lane.b32.xlu1 %v4436_v28, %s7848_s20  ;;  %s6862_s20 = smov 105  }
 0x7b7   : > { %5556 = vrot.lane.b32.xlu1 %v4438_v30, %s6854_s19 }
 0x7bb   : > { %5714 = vrot.lane.b32.xlu1 %v4437_v29, %s6855_s1 }
 0x7bf   : > { %5712 = vrot.lane.b32.xlu1 %v4436_v28, %s6855_s1  ;;  %s6860_s1 = smov 93  }
 0x7c3   : > { %5886 = vperm.xlu1 %6807, %v5883_v34  }
 0x7c7   : > { %6045 = vrot.lane.b32.xlu1 %v6037_v36, %s7818_s26 }
 0x7cb   : > { %6059 = vperm.xlu1 %6807, %v6056_v37  }
 0x7ed   : > { %v4454_v38 = vpop.permute.xlu1 %4453  ;;  %v4917_v52 = vpop.permute.xlu0 %4916 }
 0x7f1   : > { %v4456_v41 = vpop.permute.xlu1 %4455  ;;  %v5233_v49 = vpop.permute.xlu0 %5232 }
 0x7f2   : > { %6702 = vmatpush3.msra.mxu1 %v4456_v41  ;;  %v4458_v43 = vsel %vm7849_vm7, %v4454_v38, %v4456_v41  ;;  %vm7863_vm7 = vcmask 736256  }
 0x7f3   : > { %4495 = vmatprep.subr.mxu0 %v4458_v43  ;;  %6706 = vmatprep.subr.mxu1 %v7338_v55 }
 0x7f4   : > { %6704 = vmatmul.mubr.msk.f32.vlgmr.msra.gmra.mxu1 %vm2357_vm1, %v6487_v42 }
 0x7f5   : > { %6707 = vmatpush3.msra.mxu1 %v4438_v30  ;;  %v4452_v44 = vpop.permute.xlu1 %4451  ;;  %6708 = vmatprep.mubr.msk.f32.mxu1 %vm6847_vm10, %v7338_v55  ;;  %v5397_v63 = vpop.permute.xlu0 %5396 }
 0x7f6   : > { %v4457_v45 = vsel %vm7850_vm5, %v4452_v44, %v4454_v38  ;;  %6711 = vmatprep.subr.mxu1 %v7338_v55  ;;  %vm7864_vm5 = vmmov %vm7863_vm7 }
 0x7f7   : > { %4496 = vmatpush1.msra.mxu0 %v4457_v45 }
 0x7f8   : > { %4639 = vmatprep.subr.mxu0 %v4437_v29  ;;  %6488 = vmatmul.mubr.msk.f32.vlgmr.msra.gmra.mxu0 %vm2357_vm1, %v6487_v42 }
 0x7f9   : > { %4640 = vmatpush1.msra.mxu0 %v4436_v28  ;;  %v4755_v25 = vpop.permute.xlu1 %4754  ;;  %6709 = vmatmul.mubr.msk.f32.vlgmr.msra.gmra.mxu1 %vm2357_vm1, %v4442_v46  ;;  %v5555_v3 = vpop.permute.xlu0 %5554 }
 0x7fa   : > { %6713 = vmatprep.mubr.msk.f32.mxu1 %vm6847_vm10, %v7338_v55  ;;  %4673 = vmatprep.mubr.f32.mxu0 %v7338_v55 }
 0x7fc   : > { %6490 = vmatmul.mubr.msk.f32.vlgmr.msra.gmra.mxu0 %vm2357_vm1, %v4442_v46 }
 0x7fd   : > { %v4757_v47 = vpop.permute.xlu1 %4756  ;;  %4830 = vmatprep.mubr.f32.mxu0 %v7338_v55  ;;  %v5553_v9 = vpop.permute.xlu0 %5552 }
 0x7fe   : > { %6712 = vmatpush3.msra.mxu1 %v4757_v47  ;;  %v4759_v51 = vsel %vm7851_vm15, %v4755_v25, %v4757_v47  ;;  %v5558_v15 = vsel %vm7862_vm3, %v5553_v9, %v5555_v3  ;;  %vm7866_vm15 = vcmask 31744   ;;  %vm6237_vm3 = vcmask 650752  }
 0x7ff   : > { %4796 = vmatprep.subr.mxu0 %v4759_v51  ;;  %6716 = vmatprep.subr.mxu1 %v7338_v55 }
 0x800   : > { %6714 = vmatmul.mubr.msk.f32.vlgmr.msra.gmra.mxu1 %vm2357_vm1, %v6492_v48 }
 0x801   : > { %6717 = vmatpush3.msra.mxu1 %v4917_v52  ;;  %v4753_v53 = vpop.permute.xlu1 %4752  ;;  %6718 = vmatprep.mubr.msk.f32.mxu1 %vm6847_vm10, %v7338_v55  ;;  %v5717_v16 = vpop.permute.xlu0 %5716 }
 0x802   : > { %v4758_v56 = vsel %vm7852_vm0, %v4753_v53, %v4755_v25  ;;  %6721 = vmatprep.subr.mxu1 %v7338_v55 }
 0x803   : > { %4797 = vmatpush1.msra.mxu0 %v4758_v56 }
 0x804   : > { %6493 = vmatmul.mubr.msk.f32.vlgmr.msra.gmra.mxu0 %vm2357_vm1, %v6492_v48  ;;  %6719 = vmatmul.mubr.msk.f32.vlgmr.msra.gmra.mxu1 %vm2357_vm1, %v6495_v54 }
 0x805   : > { %v4915_v39 = vpop.permute.xlu1 %4914  ;;  %4990 = vmatprep.mubr.f32.mxu0 %v7338_v55  ;;  %6723 = vmatprep.mubr.msk.f32.mxu1 %vm6847_vm10, %v7338_v55 }
 0x806   : > { %v4919_v57 = vsel %vm7853_vm4, %v4915_v39, %v4917_v52 }
 0x807   : > { %4956 = vmatprep.subr.mxu0 %v4919_v57 }
 0x809   : > { %v4913_v0 = vpop.permute.xlu1 %4912 }
 0x80a   : > { %v4918_v60 = vsel %vm7854_vm6, %v4913_v0, %v4915_v39 }
 0x80b   : > { %4957 = vmatpush1.msra.mxu0 %v4918_v60 }
 0x80c   : > { %6496 = vmatmul.mubr.msk.f32.vlgmr.msra.gmra.mxu0 %vm2357_vm1, %v6495_v54 }
 0x80d   : > { %v5075_v61 = vpop.permute.xlu1 %5074  ;;  %5150 = vmatprep.mubr.f32.mxu0 %v7338_v55 }
 0x811   : > { %v5077_v62 = vpop.permute.xlu1 %5076 }
 0x812   : > { %6722 = vmatpush3.msra.mxu1 %v5077_v62  ;;  %v5079_v12 = vsel %vm7855_vm9, %v5075_v61, %v5077_v62 }
 0x813   : > { %5116 = vmatprep.subr.mxu0 %v5079_v12  ;;  %6724 = vmatmul.mubr.msk.f32.vlgmr.msra.gmra.mxu1 %vm2357_vm1, %v6498_v35 }
 0x814   : > { %6726 = vmatprep.subr.mxu1 %v7338_v55  ;;  %6728 = vmatprep.mubr.msk.f32.mxu1 %vm6847_vm10, %v7338_v55 }
 0x815   : > { %v5073_v7 = vpop.permute.xlu1 %5072 }
 0x816   : > { %v5078_v59 = vsel %vm7856_vm13, %v5073_v7, %v5075_v61  ;;  %vm7872_vm13 = vcmask 125952  }
 0x817   : > { %5117 = vmatpush1.msra.mxu0 %v5078_v59 }
 0x818   : > { %6499 = vmatmul.mubr.msk.f32.vlgmr.msra.gmra.mxu0 %vm2357_vm1, %v6498_v35 }
 0x819   : > { %v5235_v4 = vpop.permute.xlu1 %5234  ;;  %5310 = vmatprep.mubr.f32.mxu0 %v7338_v55 }
 0x81a   : > { %v5238_v2 = vsel %vm7858_vm11, %v5233_v49, %v5235_v4  ;;  %vm7874_vm11 = vcmask 257152  }
 0x81d   : > { %v5237_v1 = vpop.permute.xlu1 %5236 }
 0x81e   : > { %6727 = vmatpush3.msra.mxu1 %v5237_v1  ;;  %v5239_v50 = vsel %vm7857_vm14, %v5235_v4, %v5237_v1  ;;  %vm7873_vm14 = vmmov %vm7872_vm13 }
 0x81f   : > { %5276 = vmatprep.subr.mxu0 %v5239_v50  ;;  %6731 = vmatprep.subr.mxu1 %v7338_v55 }
 0x820   : > { %5277 = vmatpush1.msra.mxu0 %v5238_v2  ;;  %6729 = vmatmul.mubr.msk.f32.vlgmr.msra.gmra.mxu1 %vm2357_vm1, %v6501_v40 }
 0x821   : > { %6732 = vmatpush3.msra.mxu1 %v5397_v63  ;;  %6502 = vmatmul.mubr.msk.f32.vlgmr.msra.gmra.mxu0 %vm2357_vm1, %v6501_v40  ;;  %v5395_v58 = vpop.permute.xlu1 %5394 }
 0x822   : > { %v5399_v6 = vsel %vm7859_vm2, %v5395_v58, %v5397_v63  ;;  %6733 = vmatprep.mubr.msk.f32.mxu1 %vm6847_vm10, %v7338_v55  ;;  %5470 = vmatprep.mubr.f32.mxu0 %v7338_v55  ;;  %vm6227_vm2 = vcmask 388352  }
 0x823   : > { %5436 = vmatprep.subr.mxu0 %v5399_v6  ;;  %6736 = vmatprep.subr.mxu1 %v7338_v55  ;;  %v5874_v6 = vpop.permute.xlu0 %5873 }
 0x824   : > { %6734 = vmatmul.mubr.msk.f32.vlgmr.msra.gmra.mxu1 %vm2357_vm1, %v6504_v5 }
 0x825   : > { %v5393_v8 = vpop.permute.xlu1 %5392  ;;  %6738 = vmatprep.mubr.msk.f32.mxu1 %vm6847_vm10, %v7338_v55 }
 0x826   : > { %v5398_v10 = vsel %vm7860_vm12, %v5393_v8, %v5395_v58  ;;  %vm6232_vm12 = vcmask 519552  }
 0x827   : > { %5437 = vmatpush1.msra.mxu0 %v5398_v10 }
 0x828   : > { %6505 = vmatmul.mubr.msk.f32.vlgmr.msra.gmra.mxu0 %vm2357_vm1, %v6504_v5 }
 0x829   : > { %v5557_v13 = vpop.permute.xlu1 %5556  ;;  %5630 = vmatprep.mubr.f32.mxu0 %v7338_v55 }
 0x82a   : > { %6737 = vmatpush3.msra.mxu1 %v5557_v13  ;;  %v5559_v14 = vsel %vm7861_vm8, %v5555_v3, %v5557_v13  ;;  %vm7875_vm8 = vmmov %vm7874_vm11 }
 0x82b   : > { %5596 = vmatprep.subr.mxu0 %v5559_v14  ;;  %6739 = vmatmul.mubr.msk.f32.vlgmr.msra.gmra.mxu1 %vm2357_vm1, %v6507_v11 }
 0x82c   : > { %6741 = vmatprep.subr.mxu1 %v7338_v55  ;;  %5597 = vmatpush1.msra.mxu0 %v5558_v15 }
 0x82d   : > { %6742 = vmatpush3.msra.mxu1 %v5717_v16  ;;  %6508 = vmatmul.mubr.msk.f32.vlgmr.msra.gmra.mxu0 %vm2357_vm1, %v6507_v11  ;;  %v5715_v18 = vpop.permute.xlu1 %5714 }
 0x82e   : > { %6743 = vmatprep.mubr.msk.f32.mxu1 %vm6847_vm10, %v7338_v55  ;;  %v5719_v19 = vsel %vm7863_vm7, %v5715_v18, %v5717_v16  ;;  %5790 = vmatprep.mubr.f32.mxu0 %v7338_v55  ;;  %vm6242_vm7 = vcmask 781952  }
 0x82f   : > { %5756 = vmatprep.subr.mxu0 %v5719_v19  ;;  %6744 = vmatmul.mubr.msk.f32.vlgmr.msra.gmra.mxu1 %vm2357_vm1, %v6510_v17 }
 0x830   : > { %6746 = vmatprep.subr.mxu1 %v7338_v55  ;;  %6748 = vmatprep.mubr.msk.f32.mxu1 %vm6847_vm10, %v7338_v55 }
 0x831   : > { %v5713_v20 = vpop.permute.xlu1 %5712 }
 0x832   : > { %v5718_v21 = vsel %vm7864_vm5, %v5713_v20, %v5715_v18  ;;  %v5882_v18 = vld [vmem:[%s7742_s14] sm:$0xf]  ;;  %vm6284_vm5 = vcmask 678912  }
 0x833   : > { %5757 = vmatpush1.msra.mxu0 %v5718_v21 }
 0x834   : > { %6511 = vmatmul.mubr.msk.f32.vlgmr.msra.gmra.mxu0 %vm2357_vm1, %v6510_v17 }
 0x835   : > { %5956 = vmatprep.mubr.f32.mxu0 %v7338_v55 }
 0x8b4   : > { %v4602_v22 = vpop.f32.mrf.mxu1 }
 0x8b6   : > { %v6705_v23 = vpop.f32.mrf.mxu1 }
 0x8b8   : > { %v4531_v27 = vpop.f32.mrf.mxu0 }
 0x8b9   : > { %v4746_v24 = vpop.f32.mrf.mxu1 }
 0x8ba   : > { %v4533_v28 = vpop.f32.mrf.mxu0  ;;  %v4747_v43 = vadd.f32 %v4746_v24, %v4602_v22 }
 0x8bb   : > { %v6710_v26 = vpop.f32.mrf.mxu1 }
 0x8bc   : > { %v4675_v31 = vpop.f32.mrf.mxu0 }
 0x8bd   : > { %v4676_v51 = vadd.f32 %v4675_v31, %v4531_v27 }
 0x8be   : > { %v4677_v34 = vpop.f32.mrf.mxu0 }
 0x8bf   : > { %v4678_v54 = vadd.f32 %v4677_v34, %v4533_v28  ;;  %v5887_v28 = vpop.permute.xlu1 %5886 }
 0x8c0   : > { %v4903_v29 = vpop.f32.mrf.mxu1 }
 0x8c1   : > { %v4909_v45 = vadd.f32 %v4903_v29, %v4747_v43 }
 0x8c2   : > { %v6715_v30 = vpop.f32.mrf.mxu1 }
 0x8c4   : > { %v5063_v32 = vpop.f32.mrf.mxu1  ;;  %v4832_v36 = vpop.f32.mrf.mxu0 }
 0x8c5   : > { %v5069_v25 = vadd.f32 %v5063_v32, %v4909_v45  ;;  %v4907_v57 = vadd.f32 %v4832_v36, %v4676_v51  ;;  %v6055_v36 = vld [vmem:[%s7744_s16] sm:$0xf] }
 0x8c6   : > { %v6720_v33 = vpop.f32.mrf.mxu1  ;;  %v4834_v37 = vpop.f32.mrf.mxu0 }
 0x8c7   : > { %v4908_v61 = vadd.f32 %v4834_v37, %v4678_v54  ;;  %v6046_v33 = vpop.permute.xlu1 %6045  ;;  %v6044_v37 = vpop.permute.xlu0 %6043 }
 0x8cb   : > { %v6042_v43 = vpop.permute.xlu0 %6041  ;;  %v6060_v51 = vpop.permute.xlu1 %6059 }
 0x8cc   : > { %v4992_v41 = vpop.f32.mrf.mxu0 }
 0x8cd   : > { %v5067_v35 = vadd.f32 %v4992_v41, %v4907_v57 }
 0x8ce   : > { %v4994_v44 = vpop.f32.mrf.mxu0 }
 0x8cf   : > { %v5068_v7 = vadd.f32 %v4994_v44, %v4908_v61 }
 0x8d3   : > { %v5223_v38 = vpop.f32.mrf.mxu1 }
 0x8d4   : > { %v5229_v56 = vadd.f32 %v5223_v38, %v5069_v25 }
 0x8d5   : > { %v6725_v42 = vpop.f32.mrf.mxu1 }
 0x8d8   : > { %v5152_v46 = vpop.f32.mrf.mxu0 }
 0x8d9   : > { %v5227_v63 = vadd.f32 %v5152_v46, %v5067_v35 }
 0x8da   : > { %v5154_v47 = vpop.f32.mrf.mxu0 }
 0x8db   : > { %v5228_v2 = vadd.f32 %v5154_v47, %v5068_v7 }
 0x8e0   : > { %v5383_v48 = vpop.f32.mrf.mxu1 }
 0x8e1   : > { %v5312_v52 = vpop.f32.mrf.mxu0  ;;  %v5389_v62 = vadd.f32 %v5383_v48, %v5229_v56 }
 0x8e2   : > { %v6730_v53 = vpop.f32.mrf.mxu1  ;;  %v5387_v3 = vadd.f32 %v5312_v52, %v5227_v63 }
 0x8e3   : > { %v5314_v0 = vpop.f32.mrf.mxu0 }
 0x8e4   : > { %v5543_v39 = vpop.f32.mrf.mxu1  ;;  %v5388_v8 = vadd.f32 %v5314_v0, %v5228_v2 }
 0x8e5   : > { %v5549_v4 = vadd.f32 %v5543_v39, %v5389_v62 }
 0x8e6   : > { %v6735_v60 = vpop.f32.mrf.mxu1 }
 0x8e8   : > { %v5472_v12 = vpop.f32.mrf.mxu0 }
 0x8e9   : > { %v5547_v9 = vadd.f32 %v5472_v12, %v5387_v3 }
 0x8ea   : > { %v5474_v49 = vpop.f32.mrf.mxu0 }
 0x8eb   : > { %v5703_v59 = vpop.f32.mrf.mxu1  ;;  %v5548_v14 = vadd.f32 %v5474_v49, %v5388_v8 }
 0x8ec   : > { %v5709_v40 = vadd.f32 %v5703_v59, %v5549_v4 }
 0x8ed   : > { %v6740_v1 = vpop.f32.mrf.mxu1  ;;  %v5632_v50 = vpop.f32.mrf.mxu0 }
 0x8ee   : > { %v5707_v15 = vadd.f32 %v5632_v50, %v5547_v9 }
 0x8ef   : > { %v5863_v58 = vpop.f32.mrf.mxu1  ;;  %v5634_v11 = vpop.f32.mrf.mxu0 }
 0x8f0   : > { %v5869_v5 = vadd.f32 %v5863_v58, %v5709_v40  ;;  %v5708_v19 = vadd.f32 %v5634_v11, %v5548_v14 }
 0x8f1   : > { %v6745_v10 = vpop.f32.mrf.mxu1 }
 0x8f2   : > { %v5878_v13 = vadd.f32 %v5874_v6, %v5869_v5 }
 0x8f4   : > { %v5881_v16 = vmax.f32 %v5878_v13, 0.0  ;;  %v5792_v17 = vpop.f32.mrf.mxu0 }
 0x8f5   : > { %v5867_v20 = vadd.f32 %v5792_v17, %v5707_v15 }
 0x8f6   : > { %v5794_v21 = vpop.f32.mrf.mxu0  ;;  %6747 = vmatpush3.msra.mxu1 %v5881_v16 }
 0x8f7   : > { %v5868_v22 = vadd.f32 %v5794_v21, %v5708_v19  ;;  %6749 = vmatmul.mubr.msk.f32.vlgmr.msra.gmra.mxu1 %vm2357_vm1, %v5882_v18  ;;  %6751 = vmatprep.subr.mxu1 %v7338_v55  ;;  %v5876_v23 = vadd.f32 %v5874_v6, %v5867_v20 }
 0x8f8   : > { %6753 = vmatprep.mubr.msk.f32.mxu1 %vm6847_vm10, %v7338_v55  ;;  %vm7865_vm10 = vcmask 1043456  }
 0x8f9   : > { %v5877_v24 = vadd.f32 %v5874_v6, %v5868_v22  ;;  %v5879_v27 = vmax.f32 %v5876_v23, 0.0  ;;  %vm7869_vm4 = vmmov %vm7865_vm10 }
 0x8fa   : > { %vm7870_vm6 = vmmov %vm7869_vm4 }
 0x8fb   : > { %v5880_v26 = vmax.f32 %v5877_v24, 0.0 }
 0x8fd   : > { %5922 = vmatprep.subr.mxu0 %v5880_v26 }
 0x8fe   : > { %5923 = vmatpush1.msra.mxu0 %v5879_v27 }
 0x8ff   : > { %6513 = vmatmul.mubr.msk.f32.vlgmr.msra.gmra.mxu0 %vm2357_vm1, %v5882_v18  ;;  %vm7867_vm1 = vmmov %vm7855_vm9 }
 0x900   : > { %6138 = vmatprep.mubr.f32.mxu0 %v7338_v55  ;;  %v6048_v46 = vsel %vm7867_vm1, %v6044_v37, %v6046_v33  ;;  %vm7868_vm0 = vmmov %vm7867_vm1  ;;  %vm6249_vm1 = vcmask 793600  }
 0x901   : > { %v6047_v25 = vsel %vm7868_vm0, %v6042_v43, %v6044_v37  ;;  %vm7871_vm9 = vmmov %vm7866_vm15 }
 0x9b7   : > { %v6029_v29 = vpop.f32.mrf.mxu1 }
 0x9b8   : > { %v6030_v30 = vadd.f32 %v6029_v29, %v5887_v28 }
 0x9b9   : > { %v6750_v31 = vpop.f32.mrf.mxu1 }
 0x9ba   : > { %v6035_v32 = vmax.f32 %v6030_v30, 0.0 }
 0x9bc   : > { %v6054_v34 = vadd.f32 %v6046_v33, %v6035_v32 }
 0x9be   : > { %6752 = vmatpush3.msk.msra.mxu1 %vm7865_vm10, %v6054_v34  ;;  %vm6252_vm10 = vcmask 913152  }
 0x9bf   : > { %v5958_v38 = vpop.f32.mrf.mxu0  ;;  %6754 = vmatmul.mubr.msk.f32.vlgmr.msra.gmra.mxu1 %vm7866_vm15, %v6055_v36  ;;  %vm6257_vm15 = vcmask 1044352  }
 0x9c0   : > { %v5959_v41 = vadd.f32 %v5958_v38, %v5887_v28 }
 0x9c1   : > { %v5960_v42 = vpop.f32.mrf.mxu0 }
 0x9c2   : > { %v5961_v55 = vadd.f32 %v5960_v42, %v5887_v28  ;;  %v6033_v44 = vmax.f32 %v5959_v41, 0.0 }
 0x9c4   : > { %v6034_v45 = vmax.f32 %v5961_v55, 0.0  ;;  %v6052_v48 = vadd.f32 %v6047_v25, %v6033_v44 }
 0x9c6   : > { %v6053_v47 = vadd.f32 %v6048_v46, %v6034_v45 }
 0x9c8   : > { %6515 = vmatprep.subr.msk.mxu0 %vm7869_vm4, %v6053_v47 }
 0x9c9   : > { %6516 = vmatpush1.msk.msra.mxu0 %vm7870_vm6, %v6052_v48 }
 0x9ca   : > { %6517 = vmatmul.mubr.msk.f32.vlgmr.msra.gmra.mxu0 %vm7871_vm9, %v6055_v36 }
 0xa7f   : > { %v6211_v52 = vpop.f32.mrf.mxu1 }
 0xa80   : > { %v6212_v53 = vadd.f32 %v6211_v52, %v6060_v51 }
 0xa81   : > { %v6755_v54 = vpop.f32.mrf.mxu1 }
 0xa82   : > { %6288 = vrot.lane.b32.xlu1 %v6212_v53, %s6858_s30  ;;  %s6871_s30 = smov 95  }
 0xa8a   : > { %v6140_v56 = vpop.f32.mrf.mxu0 }
 0xa8b   : > { %v6141_v39 = vadd.f32 %v6140_v56, %v6060_v51 }
 0xa8c   : > { %v6142_v57 = vpop.f32.mrf.mxu0 }
 0xa8d   : > { %6229 = vrot.lane.b32.xlu1 %v6141_v39, %s6859_s0  ;;  %6216 = vrot.lane.b32.xlu0 %v6141_v39, %s7818_s26  ;;  %v6143_v0 = vadd.f32 %v6142_v57, %v6060_v51  ;;  %s6867_s26 = smov 85  }
 0xa8f   : > { %v6280_v60 = vcombine.low %v6143_v0, %v6212_v53  ;;  %v6245_v61 = vcombine.low %v6141_v39, %v6143_v0 }
 0xa91   : > { %6259 = vrot.lane.b32.xlu1 %v6143_v0, %s6860_s1  ;;  %6220 = vrot.lane.b32.xlu0 %v6141_v39, %s6861_s28  ;;  %s7703_s28 = scalar_lea.vmem %s7746_s18, %s6984_s29 }
 0xa95   : > { %6263 = vrot.lane.b32.xlu1 %v6143_v0, %s6854_s19  ;;  %6224 = vrot.lane.b32.xlu0 %v6141_v39, %s6862_s20  ;;  %s6870_s19 = smov 97  }
 0xa99   : > { %6267 = vrot.lane.b32.xlu1 %v6143_v0, %s6863_s21  ;;  %6234 = vrot.lane.b32.xlu0 %v6141_v39, %s6864_s22 }
 0xa9d   : > { %6271 = vrot.lane.b32.xlu1 %v6143_v0, %s6865_s2  ;;  %6239 = vrot.lane.b32.xlu0 %v6141_v39, %s6866_s25 }
 0xaa1   : > { %6275 = vrot.lane.b32.xlu1 %v6143_v0, %s6867_s26  ;;  %6281 = vrot.lane.b32.xlu0 %v6280_v60, %s6868_s23 }
 0xaa5   : > { %6292 = vrot.lane.b32.xlu1 %v6212_v53, %s6869_s24  ;;  %6246 = vrot.lane.b32.xlu0 %v6245_v61, %s6870_s19 }
 0xaa9   : > { %6254 = vrot.lane.b32.xlu0 %v6143_v0, %s6871_s30 }
 0xaf4   : > { %v6289_v62 = vpop.permute.xlu1 %6288 }
 0xaff   : > { %v6230_v12 = vpop.permute.xlu1 %6229  ;;  %v6217_v35 = vpop.permute.xlu0 %6216 }
 0xb00   : > { %6219 = vst.msk [vmem:[%s7703_s28] sm:$0xf] %vm7872_vm13, %v6217_v35 }
 0xb03   : > { %v6260_v49 = vpop.permute.xlu1 %6259  ;;  %v6221_v7 = vpop.permute.xlu0 %6220 }
 0xb04   : > { %6262 = vst.msk [vmem:[%s7703_s28 + $0x4] sm:$0xf] %vm7873_vm14, %v6260_v49 }
 0xb05   : > { %6223 = vst.msk [vmem:[%s7703_s28] sm:$0xf] %vm7874_vm11, %v6221_v7 }
 0xb07   : > { %v6264_v59 = vpop.permute.xlu1 %6263  ;;  %v6225_v4 = vpop.permute.xlu0 %6224 }
 0xb08   : > { %6266 = vst.msk [vmem:[%s7703_s28 + $0x4] sm:$0xf] %vm7875_vm8, %v6264_v59 }
 0xb09   : > { %6228 = vst.msk [vmem:[%s7703_s28] sm:$0xf] %vm6227_vm2, %v6225_v4 }
 0xb0a   : > { %6233 = vst.msk [vmem:[%s7703_s28] sm:$0xf] %vm6232_vm12, %v6230_v12 }
 0xb0b   : > { %v6268_v63 = vpop.permute.xlu1 %6267  ;;  %v6235_v1 = vpop.permute.xlu0 %6234 }
 0xb0c   : > { %6270 = vst.msk [vmem:[%s7703_s28 + $0x4] sm:$0xf] %vm6227_vm2, %v6268_v63 }
 0xb0d   : > { %6238 = vst.msk [vmem:[%s7703_s28] sm:$0xf] %vm6237_vm3, %v6235_v1 }
 0xb0f   : > { %v6272_v40 = vpop.permute.xlu1 %6271  ;;  %v6240_v50 = vpop.permute.xlu0 %6239 }
 0xb10   : > { %6274 = vst.msk [vmem:[%s7703_s28 + $0x4] sm:$0xf] %vm6232_vm12, %v6272_v40 }
 0xb11   : > { %6243 = vst.msk [vmem:[%s7703_s28] sm:$0xf] %vm6242_vm7, %v6240_v50 }
 0xb13   : > { %v6276_v2 = vpop.permute.xlu1 %6275  ;;  %v6282_v3 = vpop.permute.xlu0 %6281 }
 0xb14   : > { %6278 = vst.msk [vmem:[%s7703_s28 + $0x4] sm:$0xf] %vm6237_vm3, %v6276_v2  ;;  %v6283_v58 = vrot.slane %v6282_v3, 4 }
 0xb16   : > { %v6285_v5 = vsel %vm6284_vm5, %v6282_v3, %v6283_v58 }
 0xb17   : > { %6287 = vst.msk [vmem:[%s7703_s28 + $0x4] sm:$0xf] %vm6242_vm7, %v6285_v5  ;;  %v6293_v6 = vpop.permute.xlu1 %6292  ;;  %v6247_v8 = vpop.permute.xlu0 %6246 }
 0xb18   : > { %6291 = vst.msk [vmem:[%s7703_s28 + $0x4] sm:$0xf] %vm6252_vm10, %v6289_v62  ;;  %v6248_v9 = vrot.slane %v6247_v8, 4 }
 0xb19   : > { %6295 = vst.msk [vmem:[%s7703_s28 + $0x4] sm:$0xf] %vm6257_vm15, %v6293_v6 }
 0xb1a   : > { %v6250_v10 = vsel %vm6249_vm1, %v6247_v8, %v6248_v9 }
 0xb1b   : > { %6253 = vst.msk [vmem:[%s7703_s28] sm:$0xf] %vm6252_vm10, %v6250_v10  ;;  %v6255_v11 = vpop.permute.xlu0 %6254 }
 0xb1c   : > { %6258 = vst.msk [vmem:[%s7703_s28] sm:$0xf] %vm6257_vm15, %v6255_v11 }
 0xb1d PF: > { %s28_s27 = sadd.s32 1, %s6828_s27  }
 0xb1e   : > { %p25_p4 = scmp.ge.s32.totalorder %s28_s27, 4  }
 0xb20   :  { %27 = sbr.rel (!%p25_p4) target bundleno = 4 (0x4), region = 149 }

</bundles_post_ra>
